<compile_context>
chip_gen: v6e
topology: v6e:2x2x1
jax: 0.10.0
libtpu: 0.0.40
codegen_flags: <defaults>
</compile_context>

<pallas_src>
import functools

import numpy as np
import jax
import jax.numpy as jnp
from jax.experimental import pallas as pl
from jax.experimental.pallas import tpu as pltpu

_EPS = 1e-5


# ---------------------------------------------------------------------------
# One-time constant preparation (prepare-time only, never per step)
# ---------------------------------------------------------------------------
def _build_conv_matrix_T(w, H, W):
    """PyTorch conv weight (Cout, Cin, K, K), valid conv, stride 1 ->
    matrix A of shape (Cin*H*W, Cout*Ho*Wo) such that for one sample flattened
    channel-major (NCHW order):  y_flat_row = x_flat_row @ A."""
    Cout, Cin, K, _ = w.shape
    Ho, Wo = H - K + 1, W - K + 1
    ih = (np.arange(Ho)[:, None, None] + np.arange(K)[None, :, None]
          == np.arange(H)[None, None, :]).astype(np.float32)
    iw = (np.arange(Wo)[:, None, None] + np.arange(K)[None, :, None]
          == np.arange(W)[None, None, :]).astype(np.float32)
    a = jnp.einsum("ockl,ikh,jlw->chwoij", w, jnp.asarray(ih), jnp.asarray(iw))
    return a.reshape(Cin * H * W, Cout * Ho * Wo)


def _channel_mats(C, S):
    """E  (C*S, C): per-channel column-sum matrix with 1/S folded in.
       ET (C, C*S): per-channel lane broadcast matrix."""
    eye = np.eye(C, dtype=np.float32)
    E = np.kron(eye, np.full((S, 1), 1.0 / S, np.float32))
    ET = np.kron(eye, np.ones((1, S), np.float32))
    return jnp.asarray(E), jnp.asarray(ET)


def _pad2d(x, rows, cols):
    return jnp.pad(x, ((0, rows - x.shape[0]), (0, cols - x.shape[1])))


def prepare_params(params, H, W, *, weight_dtype=jnp.bfloat16, pad_to_128=False):
    """Fold all layout permutations / conv unrolling into constants.

    weight_dtype: dtype of the big matmul constants (bf16 halves the weight
        DMA, which dominates per-call cost; f32 accumulation is kept in-kernel).
    pad_to_128:  zero-pad conv feature dims to multiples of 128 (unmasked MXU
        tiles / loads).  Adds ~20% weight bytes, so off by default at tiny B.
    """
    c1w, c2w = params["conv1_w"], params["conv2_w"]
    C1, Cin, K1, _ = c1w.shape
    C2, _, K2, _ = c2w.shape
    H1, W1 = H - K1 + 1, W - K1 + 1
    H2, W2 = H1 - K2 + 1, W1 - K2 + 1
    S1, S2 = H1 * W1, H2 * W2
    din, d1, d2 = Cin * H * W, C1 * S1, C2 * S2

    rnd = (lambda n: ((n + 127) // 128) * 128) if pad_to_128 else (lambda n: n)
    din_p, d1_p, d2_p = rnd(din), rnd(d1), rnd(d2)

    a1 = _build_conv_matrix_T(c1w, H, W)        # (din, d1)
    a2 = _build_conv_matrix_T(c2w, H1, W1)      # (d1, d2)
    e1, et1 = _channel_mats(C1, S1)             # (d1, C1), (C1, d1)
    e2, et2 = _channel_mats(C2, S2)             # (d2, C2), (C2, d2)

    # NOTE: conv1_b / conv2_b are intentionally unused -- a per-channel bias
    # before training-mode BatchNorm is exactly removed by the mean subtraction.
    return dict(
        dims=(Cin, H, W, C1, S1, C2, S2),
        din=din, din_p=din_p, wdtype=weight_dtype,
        # conv1 / bn1 (E/ET kept in f32: tiny, and preserves BN stat precision)
        a1=_pad2d(a1, din_p, d1_p).astype(weight_dtype),
        e1=_pad2d(e1, d1_p, C1), et1=_pad2d(et1, C1, d1_p),
        g1=params["bn1_g"][None, :], bb1=params["bn1_b"][None, :],
        # conv2 / bn2
        a2=_pad2d(a2, d1_p, d2_p).astype(weight_dtype),
        e2=_pad2d(e2, d2_p, C2), et2=_pad2d(et2, C2, d2_p),
        g2=params["bn2_g"][None, :], bb2=params["bn2_b"][None, :],
        # MLP head (lw1 rows are already in torch.flatten(NCHW) order)
        w1a=_pad2d(params["lw1"][:d2, :], d2_p,
                   params["lw1"].shape[1]).astype(weight_dtype),
        w1b=params["lw1"][d2:, :].astype(weight_dtype),
        b1=params["lb1"][None, :],
        w2=params["lw2"].astype(weight_dtype), b2=params["lb2"][None, :],
        w3=params["lw3"].astype(weight_dtype), b3=params["lb3"][None, :],
    )


# ---------------------------------------------------------------------------
# Fully fused Pallas kernel  (layout: activations are (B, features))
# ---------------------------------------------------------------------------
def _make_fused_kernel(inv_b, wdtype):
    """inv_b = 1/BatchSize (the 1/S part of the BN divisor is folded into E)."""

    def kernel(x_ref, x2_ref,
               a1_ref, e1_ref, et1_ref, g1_ref, bb1_ref,
               a2_ref, e2_ref, et2_ref, g2_ref, bb2_ref,
               w1a_ref, w1b_ref, b1_ref, w2_ref, b2_ref, w3_ref, b3_ref,
               out_ref):
        f32 = jnp.float32

        def conv_bn_relu(xb, a_ref, e_ref, et_ref, g_ref, bb_ref):
            # Valid conv == ONE (B, Din) @ (Din, C*S) MXU matmul, f32 accumulate.
            y = jnp.dot(xb, a_ref[...], preferred_element_type=f32)     # (B, C*S)
            # BatchNorm2d training-mode statistics over (N, H, W):
            # per-channel E[y], E[y^2] via the (C*S, C) reduce matrix (1/S folded).
            m1 = jnp.sum(jnp.dot(y, e_ref[...], preferred_element_type=f32),
                         axis=0, keepdims=True) * inv_b                 # (1, C)
            m2 = jnp.sum(jnp.dot(y * y, e_ref[...], preferred_element_type=f32),
                         axis=0, keepdims=True) * inv_b                 # (1, C)
            var = m2 - m1 * m1
            s_c = g_ref[...] * jax.lax.rsqrt(var + _EPS)                # (1, C)
            t_c = bb_ref[...] - s_c * m1                                # (1, C)
            # Broadcast per-channel scale/shift to (1, C*S): tiny M=1 matmuls.
            s_full = jnp.dot(s_c, et_ref[...], preferred_element_type=f32)
            t_full = jnp.dot(t_c, et_ref[...], preferred_element_type=f32)
            return jnp.maximum(y * s_full + t_full, 0.0)                # (B, C*S)

        h1 = conv_bn_relu(x_ref[...], a1_ref, e1_ref, et1_ref, g1_ref, bb1_ref)
        h2 = conv_bn_relu(h1.astype(wdtype),
                          a2_ref, e2_ref, et2_ref, g2_ref, bb2_ref)

        # h2 columns are already in torch.flatten(NCHW) order; the x2 concat is
        # folded into a second small matmul (no in-kernel concat of activations).
        h4 = jnp.maximum(
            jnp.dot(h2.astype(wdtype), w1a_ref[...], preferred_element_type=f32)
            + jnp.dot(x2_ref[...], w1b_ref[...], preferred_element_type=f32)
            + b1_ref[...], 0.0)                                         # (B, HID)
        h5 = jnp.maximum(
            jnp.dot(h4.astype(wdtype), w2_ref[...], preferred_element_type=f32)
            + b2_ref[...], 0.0)                                         # (B, HID)
        out_ref[...] = (jnp.dot(h5.astype(wdtype), w3_ref[...],
                                preferred_element_type=f32)
                        + b3_ref[...])                                  # (B, 1)

    return kernel


def q_network_forward(prep, x1, x2):
    """x1: (B, 3, H, W) NCHW like PyTorch; x2: (B, 4).  Returns (B, 1)."""
    B = x1.shape[0]
    wdtype = prep["wdtype"]

    # Minimal per-call glue: NCHW flatten to (B, Cin*H*W) (a free reshape),
    # zero-pad features if the 128-padded variant is used, cast to matmul dtype.
    xf = x1.reshape(B, prep["din"])
    if prep["din_p"] != prep["din"]:
        xf = jnp.pad(xf, ((0, 0), (0, prep["din_p"] - prep["din"])))
    xf = xf.astype(wdtype)
    x2c = x2.astype(wdtype)

    args = (xf, x2c,
            prep["a1"], prep["e1"], prep["et1"], prep["g1"], prep["bb1"],
            prep["a2"], prep["e2"], prep["et2"], prep["g2"], prep["bb2"],
            prep["w1a"], prep["w1b"], prep["b1"], prep["w2"], prep["b2"],
            prep["w3"], prep["b3"])
    vmem_spec = pl.BlockSpec(memory_space=pltpu.MemorySpace.VMEM)

    # Gridless single block: all operands (<2 MB total) live in VMEM for the
    # whole call; every intermediate stays in vregs/VMEM (no HBM round trips).
    out = pl.pallas_call(
        _make_fused_kernel(1.0 / B, wdtype),
        out_shape=jax.ShapeDtypeStruct((B, 1), jnp.float32),
        in_specs=[vmem_spec] * len(args),
        out_specs=vmem_spec,
    )(*args)
    return out


# ---------------------------------------------------------------------------
# Pure-jnp reference (independent construction, mirrors the PyTorch module)
# ---------------------------------------------------------------------------
def _im2col_nchw(x, k):
    B, C, H, W = x.shape
    Ho, Wo = H - k + 1, W - k + 1
    cols = []
    for ci in range(C):
        for ki in range(k):
            for kj in range(k):
                cols.append(x[:, ci, ki: ki + Ho, kj: kj + Wo])
    p = jnp.stack(cols, axis=-1)
    return p.reshape(B * Ho * Wo, C * k * k), (B, Ho, Wo)


def _conv_w_to_mat(w):
    cout = w.shape[0]
    return jnp.transpose(w, (1, 2, 3, 0)).reshape(-1, cout)


def _bn_train(y, g, b):
    mean = jnp.mean(y, axis=0, keepdims=True)
    var = jnp.mean(jnp.square(y - mean), axis=0, keepdims=True)
    return g[None, :] * (y - mean) * jax.lax.rsqrt(var + _EPS) + b[None, :]


def q_network_reference(params, x1, x2):
    k1 = params["conv1_w"].shape[-1]
    c1 = params["conv1_w"].shape[0]
    p1, (B, H1, W1) = _im2col_nchw(x1, k1)
    y1 = p1 @ _conv_w_to_mat(params["conv1_w"]) + params["conv1_b"][None, :]
    h1 = jnp.maximum(_bn_train(y1, params["bn1_g"], params["bn1_b"]), 0.0)
    h1_nchw = jnp.transpose(h1.reshape(B, H1, W1, c1), (0, 3, 1, 2))

    k2 = params["conv2_w"].shape[-1]
    c2 = params["conv2_w"].shape[0]
    p2, (_, H2, W2) = _im2col_nchw(h1_nchw, k2)
    y2 = p2 @ _conv_w_to_mat(params["conv2_w"]) + params["conv2_b"][None, :]
    h2 = jnp.maximum(_bn_train(y2, params["bn2_g"], params["bn2_b"]), 0.0)
    h2_nchw = jnp.transpose(h2.reshape(B, H2, W2, c2), (0, 3, 1, 2))
    h3 = jnp.concatenate([h2_nchw.reshape(B, -1), x2], axis=1)

    h4 = jnp.maximum(h3 @ params["lw1"] + params["lb1"][None, :], 0.0)
    h5 = jnp.maximum(h4 @ params["lw2"] + params["lb2"][None, :], 0.0)
    return h5 @ params["lw3"] + params["lb3"][None, :]


# ---------------------------------------------------------------------------
if __name__ == "__main__":
    # Small, module-consistent sizes.
    B, H, W = 2, 12, 12          # BatchSize, MapHeight, MapWidth
    C_IN = 3
    C1, K1 = 8, 3                # Covn1OutChan, Conv1Kernel
    C2, K2 = 8, 3                # Covn2OutChan, Conv2Kernel
    HID = 32                     # HiddenSize

    H1, W1 = H - K1 + 1, W - K1 + 1
    H2, W2 = H1 - K2 + 1, W1 - K2 + 1
    D = H2 * W2 * C2             # linear_input_dim

    key = jax.random.PRNGKey(0)
    ks = jax.random.split(key, 16)

    params = {
        "conv1_w": 0.1 * jax.random.normal(ks[0], (C1, C_IN, K1, K1), jnp.float32),
        "conv1_b": 0.1 * jax.random.normal(ks[1], (C1,), jnp.float32),
        "bn1_g": 1.0 + 0.1 * jax.random.normal(ks[2], (C1,), jnp.float32),
        "bn1_b": 0.1 * jax.random.normal(ks[3], (C1,), jnp.float32),
        "conv2_w": 0.1 * jax.random.normal(ks[4], (C2, C1, K2, K2), jnp.float32),
        "conv2_b": 0.1 * jax.random.normal(ks[5], (C2,), jnp.float32),
        "bn2_g": 1.0 + 0.1 * jax.random.normal(ks[6], (C2,), jnp.float32),
        "bn2_b": 0.1 * jax.random.normal(ks[7], (C2,), jnp.float32),
        "lw1": 0.05 * jax.random.normal(ks[8], (D + 4, HID), jnp.float32),
        "lb1": 0.05 * jax.random.normal(ks[9], (HID,), jnp.float32),
        "lw2": 0.05 * jax.random.normal(ks[10], (HID, HID), jnp.float32),
        "lb2": 0.05 * jax.random.normal(ks[11], (HID,), jnp.float32),
        "lw3": 0.05 * jax.random.normal(ks[12], (HID, 1), jnp.float32),
        "lb3": 0.05 * jax.random.normal(ks[13], (1,), jnp.float32),
    }

    x1 = jax.random.normal(ks[14], (B, C_IN, H, W), jnp.float32)  # NCHW like PyTorch
    x2 = jax.random.normal(ks[15], (B, 4), jnp.float32)

    ref = q_network_reference(params, x1, x2)

    # 1) f32-weights variant: validates the fused math tightly.
    prep_f32 = prepare_params(params, H, W, weight_dtype=jnp.float32)
    out_f32 = jax.block_until_ready(
        jax.jit(functools.partial(q_network_forward, prep_f32))(x1, x2))
    assert out_f32.shape == (B, 1), out_f32.shape
    assert jnp.allclose(out_f32, ref, atol=1e-3, rtol=1e-3), (out_f32, ref)

    # 2) bf16-weights variant (the fast / default path): halves weight DMA.
    prep_bf16 = prepare_params(params, H, W)
    out_bf16 = jax.block_until_ready(
        jax.jit(functools.partial(q_network_forward, prep_bf16))(x1, x2))
    assert out_bf16.shape == (B, 1), out_bf16.shape
    assert jnp.allclose(out_bf16, ref, atol=2e-2, rtol=2e-2), (out_bf16, ref)

    # 3) bf16 + feature dims zero-padded to multiples of 128 (v6e full-tile variant).
    prep_pad = prepare_params(params, H, W, pad_to_128=True)
    out_pad = jax.block_until_ready(
        jax.jit(functools.partial(q_network_forward, prep_pad))(x1, x2))
    assert out_pad.shape == (B, 1), out_pad.shape
    assert jnp.allclose(out_pad, ref, atol=2e-2, rtol=2e-2), (out_pad, ref)

    print("KERNEL_OK")
</pallas_src>

<mosaic_0001>
module attributes {stable_mosaic.version = 11 : i64} {
  func.func @kernel(%arg0: memref<2x432xf32, #tpu.memory_space<vmem>>, %arg1: memref<2x4xf32, #tpu.memory_space<vmem>>, %arg2: memref<432x800xf32, #tpu.memory_space<vmem>>, %arg3: memref<800x8xf32, #tpu.memory_space<vmem>>, %arg4: memref<8x800xf32, #tpu.memory_space<vmem>>, %arg5: memref<1x8xf32, #tpu.memory_space<vmem>>, %arg6: memref<1x8xf32, #tpu.memory_space<vmem>>, %arg7: memref<800x512xf32, #tpu.memory_space<vmem>>, %arg8: memref<512x8xf32, #tpu.memory_space<vmem>>, %arg9: memref<8x512xf32, #tpu.memory_space<vmem>>, %arg10: memref<1x8xf32, #tpu.memory_space<vmem>>, %arg11: memref<1x8xf32, #tpu.memory_space<vmem>>, %arg12: memref<512x32xf32, #tpu.memory_space<vmem>>, %arg13: memref<4x32xf32, #tpu.memory_space<vmem>>, %arg14: memref<1x32xf32, #tpu.memory_space<vmem>>, %arg15: memref<32x32xf32, #tpu.memory_space<vmem>>, %arg16: memref<1x32xf32, #tpu.memory_space<vmem>>, %arg17: memref<32x1xf32, #tpu.memory_space<vmem>>, %arg18: memref<1x1xf32, #tpu.memory_space<vmem>>, %arg19: memref<2x1xf32, #tpu.memory_space<vmem>>) attributes {dimension_semantics = [], scalar_prefetch = 0 : i64, scratch_operands = 0 : i64, tpu.core_type = #tpu.core_type<tc>} {
    %c0 = arith.constant 0 : index
    %c0_0 = arith.constant 0 : index
    %0 = vector.load %arg0[%c0, %c0_0] : memref<2x432xf32, #tpu.memory_space<vmem>>, vector<2x432xf32>
    %c0_1 = arith.constant 0 : index
    %c0_2 = arith.constant 0 : index
    %1 = vector.load %arg2[%c0_1, %c0_2] : memref<432x800xf32, #tpu.memory_space<vmem>>, vector<432x800xf32>
    %cst = arith.constant dense<0.000000e+00> : vector<2x800xf32>
    %2 = tpu.matmul %0, %1, %cst {dimension_numbers = #tpu.dot_dimension_numbers<[1], [0], [0], [1], [0, 0, 1, 1], [], []>} : vector<2x432xf32>, vector<432x800xf32>, vector<2x800xf32> -> vector<2x800xf32>
    %c0_3 = arith.constant 0 : index
    %c0_4 = arith.constant 0 : index
    %3 = vector.load %arg3[%c0_3, %c0_4] : memref<800x8xf32, #tpu.memory_space<vmem>>, vector<800x8xf32>
    %cst_5 = arith.constant dense<0.000000e+00> : vector<2x8xf32>
    %4 = tpu.matmul %2, %3, %cst_5 {dimension_numbers = #tpu.dot_dimension_numbers<[1], [0], [0], [1], [0, 0, 1, 1], [], []>} : vector<2x800xf32>, vector<800x8xf32>, vector<2x8xf32> -> vector<2x8xf32>
    %cst_6 = arith.constant dense<0.000000e+00> : vector<8xf32>
    %5 = vector.multi_reduction <add>, %4, %cst_6 [0] : vector<2x8xf32> to vector<8xf32>
    %6 = vector.shape_cast %5 : vector<8xf32> to vector<1x8xf32>
    %cst_7 = arith.constant 5.000000e-01 : f32
    %7 = vector.broadcast %cst_7 : f32 to vector<1x8xf32>
    %8 = arith.mulf %6, %7 : vector<1x8xf32>
    %9 = arith.mulf %2, %2 : vector<2x800xf32>
    %c0_8 = arith.constant 0 : index
    %c0_9 = arith.constant 0 : index
    %10 = vector.load %arg3[%c0_8, %c0_9] : memref<800x8xf32, #tpu.memory_space<vmem>>, vector<800x8xf32>
    %cst_10 = arith.constant dense<0.000000e+00> : vector<2x8xf32>
    %11 = tpu.matmul %9, %10, %cst_10 {dimension_numbers = #tpu.dot_dimension_numbers<[1], [0], [0], [1], [0, 0, 1, 1], [], []>} : vector<2x800xf32>, vector<800x8xf32>, vector<2x8xf32> -> vector<2x8xf32>
    %cst_11 = arith.constant dense<0.000000e+00> : vector<8xf32>
    %12 = vector.multi_reduction <add>, %11, %cst_11 [0] : vector<2x8xf32> to vector<8xf32>
    %13 = vector.shape_cast %12 : vector<8xf32> to vector<1x8xf32>
    %cst_12 = arith.constant 5.000000e-01 : f32
    %14 = vector.broadcast %cst_12 : f32 to vector<1x8xf32>
    %15 = arith.mulf %13, %14 : vector<1x8xf32>
    %16 = arith.mulf %8, %8 : vector<1x8xf32>
    %17 = arith.subf %15, %16 : vector<1x8xf32>
    %c0_13 = arith.constant 0 : index
    %c0_14 = arith.constant 0 : index
    %18 = vector.load %arg5[%c0_13, %c0_14] : memref<1x8xf32, #tpu.memory_space<vmem>>, vector<1x8xf32>
    %cst_15 = arith.constant 9.99999974E-6 : f32
    %19 = vector.broadcast %cst_15 : f32 to vector<1x8xf32>
    %20 = arith.addf %17, %19 : vector<1x8xf32>
    %21 = math.rsqrt %20 : vector<1x8xf32>
    %22 = arith.mulf %18, %21 : vector<1x8xf32>
    %c0_16 = arith.constant 0 : index
    %c0_17 = arith.constant 0 : index
    %23 = vector.load %arg6[%c0_16, %c0_17] : memref<1x8xf32, #tpu.memory_space<vmem>>, vector<1x8xf32>
    %24 = arith.mulf %22, %8 : vector<1x8xf32>
    %25 = arith.subf %23, %24 : vector<1x8xf32>
    %c0_18 = arith.constant 0 : index
    %c0_19 = arith.constant 0 : index
    %26 = vector.load %arg4[%c0_18, %c0_19] : memref<8x800xf32, #tpu.memory_space<vmem>>, vector<8x800xf32>
    %cst_20 = arith.constant dense<0.000000e+00> : vector<1x800xf32>
    %27 = tpu.matmul %22, %26, %cst_20 {dimension_numbers = #tpu.dot_dimension_numbers<[1], [0], [0], [1], [0, 0, 1, 1], [], []>} : vector<1x8xf32>, vector<8x800xf32>, vector<1x800xf32> -> vector<1x800xf32>
    %c0_21 = arith.constant 0 : index
    %c0_22 = arith.constant 0 : index
    %28 = vector.load %arg4[%c0_21, %c0_22] : memref<8x800xf32, #tpu.memory_space<vmem>>, vector<8x800xf32>
    %cst_23 = arith.constant dense<0.000000e+00> : vector<1x800xf32>
    %29 = tpu.matmul %25, %28, %cst_23 {dimension_numbers = #tpu.dot_dimension_numbers<[1], [0], [0], [1], [0, 0, 1, 1], [], []>} : vector<1x8xf32>, vector<8x800xf32>, vector<1x800xf32> -> vector<1x800xf32>
    %30 = vector.broadcast %27 : vector<1x800xf32> to vector<2x800xf32>
    %31 = arith.mulf %2, %30 : vector<2x800xf32>
    %32 = vector.broadcast %29 : vector<1x800xf32> to vector<2x800xf32>
    %33 = arith.addf %31, %32 : vector<2x800xf32>
    %cst_24 = arith.constant 0.000000e+00 : f32
    %34 = vector.broadcast %cst_24 : f32 to vector<2x800xf32>
    %35 = arith.maximumf %33, %34 : vector<2x800xf32>
    %c0_25 = arith.constant 0 : index
    %c0_26 = arith.constant 0 : index
    %36 = vector.load %arg7[%c0_25, %c0_26] : memref<800x512xf32, #tpu.memory_space<vmem>>, vector<800x512xf32>
    %cst_27 = arith.constant dense<0.000000e+00> : vector<2x512xf32>
    %37 = tpu.matmul %35, %36, %cst_27 {dimension_numbers = #tpu.dot_dimension_numbers<[1], [0], [0], [1], [0, 0, 1, 1], [], []>} : vector<2x800xf32>, vector<800x512xf32>, vector<2x512xf32> -> vector<2x512xf32>
    %c0_28 = arith.constant 0 : index
    %c0_29 = arith.constant 0 : index
    %38 = vector.load %arg8[%c0_28, %c0_29] : memref<512x8xf32, #tpu.memory_space<vmem>>, vector<512x8xf32>
    %cst_30 = arith.constant dense<0.000000e+00> : vector<2x8xf32>
    %39 = tpu.matmul %37, %38, %cst_30 {dimension_numbers = #tpu.dot_dimension_numbers<[1], [0], [0], [1], [0, 0, 1, 1], [], []>} : vector<2x512xf32>, vector<512x8xf32>, vector<2x8xf32> -> vector<2x8xf32>
    %cst_31 = arith.constant dense<0.000000e+00> : vector<8xf32>
    %40 = vector.multi_reduction <add>, %39, %cst_31 [0] : vector<2x8xf32> to vector<8xf32>
    %41 = vector.shape_cast %40 : vector<8xf32> to vector<1x8xf32>
    %cst_32 = arith.constant 5.000000e-01 : f32
    %42 = vector.broadcast %cst_32 : f32 to vector<1x8xf32>
    %43 = arith.mulf %41, %42 : vector<1x8xf32>
    %44 = arith.mulf %37, %37 : vector<2x512xf32>
    %c0_33 = arith.constant 0 : index
    %c0_34 = arith.constant 0 : index
    %45 = vector.load %arg8[%c0_33, %c0_34] : memref<512x8xf32, #tpu.memory_space<vmem>>, vector<512x8xf32>
    %cst_35 = arith.constant dense<0.000000e+00> : vector<2x8xf32>
    %46 = tpu.matmul %44, %45, %cst_35 {dimension_numbers = #tpu.dot_dimension_numbers<[1], [0], [0], [1], [0, 0, 1, 1], [], []>} : vector<2x512xf32>, vector<512x8xf32>, vector<2x8xf32> -> vector<2x8xf32>
    %cst_36 = arith.constant dense<0.000000e+00> : vector<8xf32>
    %47 = vector.multi_reduction <add>, %46, %cst_36 [0] : vector<2x8xf32> to vector<8xf32>
    %48 = vector.shape_cast %47 : vector<8xf32> to vector<1x8xf32>
    %cst_37 = arith.constant 5.000000e-01 : f32
    %49 = vector.broadcast %cst_37 : f32 to vector<1x8xf32>
    %50 = arith.mulf %48, %49 : vector<1x8xf32>
    %51 = arith.mulf %43, %43 : vector<1x8xf32>
    %52 = arith.subf %50, %51 : vector<1x8xf32>
    %c0_38 = arith.constant 0 : index
    %c0_39 = arith.constant 0 : index
    %53 = vector.load %arg10[%c0_38, %c0_39] : memref<1x8xf32, #tpu.memory_space<vmem>>, vector<1x8xf32>
    %cst_40 = arith.constant 9.99999974E-6 : f32
    %54 = vector.broadcast %cst_40 : f32 to vector<1x8xf32>
    %55 = arith.addf %52, %54 : vector<1x8xf32>
    %56 = math.rsqrt %55 : vector<1x8xf32>
    %57 = arith.mulf %53, %56 : vector<1x8xf32>
    %c0_41 = arith.constant 0 : index
    %c0_42 = arith.constant 0 : index
    %58 = vector.load %arg11[%c0_41, %c0_42] : memref<1x8xf32, #tpu.memory_space<vmem>>, vector<1x8xf32>
    %59 = arith.mulf %57, %43 : vector<1x8xf32>
    %60 = arith.subf %58, %59 : vector<1x8xf32>
    %c0_43 = arith.constant 0 : index
    %c0_44 = arith.constant 0 : index
    %61 = vector.load %arg9[%c0_43, %c0_44] : memref<8x512xf32, #tpu.memory_space<vmem>>, vector<8x512xf32>
    %cst_45 = arith.constant dense<0.000000e+00> : vector<1x512xf32>
    %62 = tpu.matmul %57, %61, %cst_45 {dimension_numbers = #tpu.dot_dimension_numbers<[1], [0], [0], [1], [0, 0, 1, 1], [], []>} : vector<1x8xf32>, vector<8x512xf32>, vector<1x512xf32> -> vector<1x512xf32>
    %c0_46 = arith.constant 0 : index
    %c0_47 = arith.constant 0 : index
    %63 = vector.load %arg9[%c0_46, %c0_47] : memref<8x512xf32, #tpu.memory_space<vmem>>, vector<8x512xf32>
    %cst_48 = arith.constant dense<0.000000e+00> : vector<1x512xf32>
    %64 = tpu.matmul %60, %63, %cst_48 {dimension_numbers = #tpu.dot_dimension_numbers<[1], [0], [0], [1], [0, 0, 1, 1], [], []>} : vector<1x8xf32>, vector<8x512xf32>, vector<1x512xf32> -> vector<1x512xf32>
    %65 = vector.broadcast %62 : vector<1x512xf32> to vector<2x512xf32>
    %66 = arith.mulf %37, %65 : vector<2x512xf32>
    %67 = vector.broadcast %64 : vector<1x512xf32> to vector<2x512xf32>
    %68 = arith.addf %66, %67 : vector<2x512xf32>
    %cst_49 = arith.constant 0.000000e+00 : f32
    %69 = vector.broadcast %cst_49 : f32 to vector<2x512xf32>
    %70 = arith.maximumf %68, %69 : vector<2x512xf32>
    %c0_50 = arith.constant 0 : index
    %c0_51 = arith.constant 0 : index
    %71 = vector.load %arg12[%c0_50, %c0_51] : memref<512x32xf32, #tpu.memory_space<vmem>>, vector<512x32xf32>
    %cst_52 = arith.constant dense<0.000000e+00> : vector<2x32xf32>
    %72 = tpu.matmul %70, %71, %cst_52 {dimension_numbers = #tpu.dot_dimension_numbers<[1], [0], [0], [1], [0, 0, 1, 1], [], []>} : vector<2x512xf32>, vector<512x32xf32>, vector<2x32xf32> -> vector<2x32xf32>
    %c0_53 = arith.constant 0 : index
    %c0_54 = arith.constant 0 : index
    %73 = vector.load %arg1[%c0_53, %c0_54] : memref<2x4xf32, #tpu.memory_space<vmem>>, vector<2x4xf32>
    %c0_55 = arith.constant 0 : index
    %c0_56 = arith.constant 0 : index
    %74 = vector.load %arg13[%c0_55, %c0_56] : memref<4x32xf32, #tpu.memory_space<vmem>>, vector<4x32xf32>
    %cst_57 = arith.constant dense<0.000000e+00> : vector<2x32xf32>
    %75 = tpu.matmul %73, %74, %cst_57 {dimension_numbers = #tpu.dot_dimension_numbers<[1], [0], [0], [1], [0, 0, 1, 1], [], []>} : vector<2x4xf32>, vector<4x32xf32>, vector<2x32xf32> -> vector<2x32xf32>
    %76 = arith.addf %72, %75 : vector<2x32xf32>
    %c0_58 = arith.constant 0 : index
    %c0_59 = arith.constant 0 : index
    %77 = vector.load %arg14[%c0_58, %c0_59] : memref<1x32xf32, #tpu.memory_space<vmem>>, vector<1x32xf32>
    %78 = vector.broadcast %77 : vector<1x32xf32> to vector<2x32xf32>
    %79 = arith.addf %76, %78 : vector<2x32xf32>
    %cst_60 = arith.constant 0.000000e+00 : f32
    %80 = vector.broadcast %cst_60 : f32 to vector<2x32xf32>
    %81 = arith.maximumf %79, %80 : vector<2x32xf32>
    %c0_61 = arith.constant 0 : index
    %c0_62 = arith.constant 0 : index
    %82 = vector.load %arg15[%c0_61, %c0_62] : memref<32x32xf32, #tpu.memory_space<vmem>>, vector<32x32xf32>
    %cst_63 = arith.constant dense<0.000000e+00> : vector<2x32xf32>
    %83 = tpu.matmul %81, %82, %cst_63 {dimension_numbers = #tpu.dot_dimension_numbers<[1], [0], [0], [1], [0, 0, 1, 1], [], []>} : vector<2x32xf32>, vector<32x32xf32>, vector<2x32xf32> -> vector<2x32xf32>
    %c0_64 = arith.constant 0 : index
    %c0_65 = arith.constant 0 : index
    %84 = vector.load %arg16[%c0_64, %c0_65] : memref<1x32xf32, #tpu.memory_space<vmem>>, vector<1x32xf32>
    %85 = vector.broadcast %84 : vector<1x32xf32> to vector<2x32xf32>
    %86 = arith.addf %83, %85 : vector<2x32xf32>
    %cst_66 = arith.constant 0.000000e+00 : f32
    %87 = vector.broadcast %cst_66 : f32 to vector<2x32xf32>
    %88 = arith.maximumf %86, %87 : vector<2x32xf32>
    %c0_67 = arith.constant 0 : index
    %c0_68 = arith.constant 0 : index
    %89 = vector.load %arg17[%c0_67, %c0_68] : memref<32x1xf32, #tpu.memory_space<vmem>>, vector<32x1xf32>
    %cst_69 = arith.constant dense<0.000000e+00> : vector<2x1xf32>
    %90 = tpu.matmul %88, %89, %cst_69 {dimension_numbers = #tpu.dot_dimension_numbers<[1], [0], [0], [1], [0, 0, 1, 1], [], []>} : vector<2x32xf32>, vector<32x1xf32>, vector<2x1xf32> -> vector<2x1xf32>
    %c0_70 = arith.constant 0 : index
    %c0_71 = arith.constant 0 : index
    %91 = vector.load %arg18[%c0_70, %c0_71] : memref<1x1xf32, #tpu.memory_space<vmem>>, vector<1x1xf32>
    %92 = vector.broadcast %91 : vector<1x1xf32> to vector<2x1xf32>
    %93 = arith.addf %90, %92 : vector<2x1xf32>
    %c0_72 = arith.constant 0 : index
    %c0_73 = arith.constant 0 : index
    %94 = vector.load %arg19[%c0_72, %c0_73] : memref<2x1xf32, #tpu.memory_space<vmem>>, vector<2x1xf32>
    tpu.vector_store %arg19[%c0_72, %c0_73], %93 {strides = array<i32>} : memref<2x1xf32, #tpu.memory_space<vmem>>, vector<2x1xf32>,
    return
  }
}

</mosaic_0001>

<bundles_post_ra>
// kernel: q_network_forward.1
= control target key start
LH: loop header
LB: loop body
LE: loop exit
PB: predicated region body
PF: predicated region fallthrough
CT: control target
= control target key end

     0   :  { %s6846_s0 = inlined_call_operand.vmem [shape: f32[2,432], index: 0, kind: input, shape index: {}]   ;;  %s6847_s1 = inlined_call_operand.hbm [shape: f32[2,4], index: 1, kind: input, shape index: {}]   ;;  %s6848_s2 = inlined_call_operand.hbm [shape: f32[432,800], index: 2, kind: input, shape index: {}]   ;;  %s6849_s3 = inlined_call_operand.hbm [shape: f32[800,8], index: 3, kind: input, shape index: {}]   ;;  %s6850_s4 = inlined_call_operand.hbm [shape: f32[8,800], index: 4, kind: input, shape index: {}]   ;;  %s6851_s5 = inlined_call_operand.hbm [shape: f32[1,8], index: 5, kind: input, shape index: {}]   ;;  %s6852_s6 = inlined_call_operand.hbm [shape: f32[1,8], index: 6, kind: input, shape index: {}]   ;;  %s6853_s7 = inlined_call_operand.hbm [shape: f32[800,512], index: 7, kind: input, shape index: {}]   ;;  %s6854_s8 = inlined_call_operand.hbm [shape: f32[512,8], index: 8, kind: input, shape index: {}]   ;;  %s6855_s9 = inlined_call_operand.hbm [shape: f32[8,512], index: 9, kind: input, shape index: {}]   ;;  %s6856_s10 = inlined_call_operand.hbm [shape: f32[1,8], index: 10, kind: input, shape index: {}]   ;;  %s6857_s11 = inlined_call_operand.hbm [shape: f32[1,8], index: 11, kind: input, shape index: {}]   ;;  %s6858_s12 = inlined_call_operand.hbm [shape: f32[512,32], index: 12, kind: input, shape index: {}]   ;;  %s6859_s13 = inlined_call_operand.hbm [shape: f32[4,32], index: 13, kind: input, shape index: {}]   ;;  %s6860_s14 = inlined_call_operand.hbm [shape: f32[1,32], index: 14, kind: input, shape index: {}]   ;;  %s6861_s15 = inlined_call_operand.hbm [shape: f32[32,32], index: 15, kind: input, shape index: {}]   ;;  %s6862_s16 = inlined_call_operand.hbm [shape: f32[1,32], index: 16, kind: input, shape index: {}]   ;;  %s6863_s17 = inlined_call_operand.hbm [shape: f32[32,1], index: 17, kind: input, shape index: {}]   ;;  %s6864_s18 = inlined_call_operand.<no memory space> [shape: f32[1,1], index: 18, kind: input, shape index: {}]   ;;  %s6865_s19 = inlined_call_operand.vmem [shape: f32[2,1], index: 19, kind: output, shape index: {}]  }
   0x1   :  { %6933 = sst [smem:[#allocation86_spill]] %s6846_s0  ;;  %v24_v0 = vstv %s6864_s18 }
   0x2   :  { %6934 = sst [smem:[#allocation87_spill]] %s6847_s1  ;;  %25 = vst [vmem:[#allocation2] sm:$0x1] %v24_v0 }
   0x3   :  { %6935 = sst [smem:[#allocation88_spill]] %s6848_s2 }
   0x4   :  { %6936 = sst [smem:[#allocation89_spill]] %s6849_s3 }
   0x5   :  { %26 = vsyncpa [#allocation4], 0 }
   0x6   :  { %27 = vsyncpa [#allocation6], 0 }
   0x7   :  { %28 = vsyncpa [#allocation9], 0 }
   0x8   :  { %29 = vsyncpa [#allocation12], 0 }
   0x9   :  { %30 = vsyncpa [#allocation15], 0 }
   0xa   :  { %31 = vsyncpa [#allocation18], 0 }
   0xb   :  { %32 = vsyncpa [#allocation21], 0 }
   0xc   :  { %33 = vsyncpa [#allocation24], 0 }
   0xd   :  { %34 = vsyncpa [#allocation27], 0  ;;  %s5715_s20 = smov [#allocation5]  }
   0xe   :  { %s52_s21 = sshll.u32 %s5715_s20, 4  ;;  %s53_s21 = int_to_ptr.vmem [resolvable:$true] %s52_s21 }
   0xf   :  { %s5365_s1 = scalar_lea.vmem %s53_s21, 48384  ;;  %p5370_p1 = scmp.lt.s32.totalorder %s53_s21, %s53_s21 }
  0x10   :  { %p5366_p0 = scmp.ne.s32.totalorder %s53_s21, %s5365_s1  ;;  %p5371_p2 = scmp.lt.s32.totalorder %s5365_s1, %s5365_s1 }
  0x12   :  { %p5372_p3 = por %p5371_p2, %p5370_p1 }
  0x14   :  { %p5373_p4 = pnand %p5372_p3, %p5366_p0 }
  0x16   :  { %5376 = shalt.err (!%p5373_p4)
}
  0x17   :  { %s5716_s18 = smov 896   ;;  %s5717_s22 = smov 56  }
  0x18   :  { %s6937_s24 = sld [smem:[#allocation88_spill]]  ;;  %s5718_s25 = smov [#allocation8]  }
  0x19   :  { %s77_s3 = sshll.u32 %s5718_s25, 4  ;;  %s5719_s26 = smov [#allocation11]   ;;  %s78_s3 = int_to_ptr.vmem [resolvable:$true] %s77_s3 }
  0x1a   :  { %s97_s27 = sshll.u32 %s5719_s26, 4  ;;  %s5385_s28 = scalar_lea.vmem %s78_s3, 896  ;;  %s98_s27 = int_to_ptr.vmem [resolvable:$true] %s97_s27 }
  0x1b   :  { %p5386_p5 = scmp.ne.s32.totalorder %s78_s3, %s5385_s28  ;;  %p5390_p6 = scmp.lt.s32.totalorder %s78_s3, %s78_s3 }
  0x1c   :  { %p5391_p7 = scmp.lt.s32.totalorder %s5385_s28, %s5385_s28 }
  0x1e   :  { %58 = dma.hbm_to_vmem [thread:$0]  %s6937_s24, 48384, %s53_s21, [#allocation6], %s5716_s18, %s5716_s18, %s5717_s22  }
  0x1f   :  { %p5392_p8 = por %p5391_p7, %p5390_p6 }
  0x21   :  { %p5393_p9 = pnand %p5392_p8, %p5386_p5 }
  0x23   :  { %5396 = shalt.err (!%p5393_p9)
}
  0x24   :  { %80 = dma.hbm_to_vmem [thread:$0]  %s6850_s4, 896, %s78_s3, [#allocation9]  }
  0x25   :  { %s5405_s30 = scalar_lea.vmem %s98_s27, 16  ;;  %s5409_s20 = scalar_lea.vmem %s98_s27, 32 }
  0x26   :  { %p5406_p10 = scmp.ne.s32.totalorder %s98_s27, %s5405_s30  ;;  %p5410_p11 = scmp.lt.s32.totalorder %s98_s27, %s98_s27 }
  0x27   :  { %p5411_p12 = scmp.lt.s32.totalorder %s5409_s20, %s5405_s30 }
  0x29   :  { %p5412_p13 = por %p5411_p12, %p5410_p11 }
  0x2b   :  { %p5413_p0 = pnand %p5412_p13, %p5406_p10 }
  0x2d   :  { %5416 = shalt.err (!%p5413_p0)
}
  0x2e   :  { %100 = dma.hbm_to_vmem [thread:$0]  %s6852_s6, 16, %s98_s27, [#allocation12]  }
  0x2f   :  { %s5720_s18 = smov [#allocation14]   ;;  %s5721_s2 = smov [#allocation17]  }
  0x30   :  { %s118_s22 = sshll.u32 %s5720_s18, 4  ;;  %s141_s23 = sshll.u32 %s5721_s2, 4  ;;  %s119_s22 = int_to_ptr.vmem [resolvable:$true] %s118_s22  ;;  %s142_s23 = int_to_ptr.vmem [resolvable:$true] %s141_s23 }
  0x31   :  { %s5425_s24 = scalar_lea.vmem %s119_s22, 8192  ;;  %p5430_p2 = scmp.lt.s32.totalorder %s119_s22, %s119_s22 }
  0x32   :  { %p5426_p1 = scmp.ne.s32.totalorder %s119_s22, %s5425_s24  ;;  %p5431_p3 = scmp.lt.s32.totalorder %s5425_s24, %s5425_s24 }
  0x34   :  { %p5432_p4 = por %p5431_p3, %p5430_p2 }
  0x36   :  { %p5433_p5 = pnand %p5432_p4, %p5426_p1 }
  0x38   :  { %5436 = shalt.err (!%p5433_p5)
}
  0x39   :  { %s5722_s4 = smov 128   ;;  %s5723_s25 = smov 8  }
  0x3a   :  { %124 = dma.hbm_to_vmem [thread:$0]  %s6854_s8, 8192, %s119_s22, [#allocation15], %s5722_s4, %s5722_s4, %s5723_s25  }
  0x3b   :  { %s5445_s6 = scalar_lea.vmem %s142_s23, 16  ;;  %s5449_s27 = scalar_lea.vmem %s142_s23, 32 }
  0x3c   :  { %p5446_p6 = scmp.ne.s32.totalorder %s142_s23, %s5445_s6  ;;  %p5450_p7 = scmp.lt.s32.totalorder %s142_s23, %s142_s23 }
  0x3d   :  { %p5451_p8 = scmp.lt.s32.totalorder %s5449_s27, %s5445_s6 }
  0x3f   :  { %p5452_p9 = por %p5451_p8, %p5450_p7 }
  0x41   :  { %p5453_p10 = pnand %p5452_p9, %p5446_p6 }
  0x43   :  { %5456 = shalt.err (!%p5453_p10)
}
  0x44   :  { %144 = dma.hbm_to_vmem [thread:$0]  %s6856_s10, 16, %s142_s23, [#allocation18]  }
  0x45   :  { %s5724_s0 = smov [#allocation20]   ;;  %s5725_s20 = smov [#allocation23]  }
  0x46   :  { %s160_s30 = sshll.u32 %s5724_s0, 4  ;;  %s183_s21 = sshll.u32 %s5725_s20, 4  ;;  %s161_s30 = int_to_ptr.vmem [resolvable:$true] %s160_s30  ;;  %s184_s21 = int_to_ptr.vmem [resolvable:$true] %s183_s21 }
  0x47   :  { %s5465_s1 = scalar_lea.vmem %s161_s30, 8192  ;;  %p5470_p12 = scmp.lt.s32.totalorder %s161_s30, %s161_s30 }
  0x48   :  { %p5466_p11 = scmp.ne.s32.totalorder %s161_s30, %s5465_s1  ;;  %p5471_p13 = scmp.lt.s32.totalorder %s5465_s1, %s5465_s1 }
  0x4a   :  { %p5472_p0 = por %p5471_p13, %p5470_p12 }
  0x4c   :  { %p5473_p1 = pnand %p5472_p0, %p5466_p11 }
  0x4e   :  { %5476 = shalt.err (!%p5473_p1)
}
  0x4f   :  { %166 = dma.hbm_to_vmem [thread:$0]  %s6858_s12, 8192, %s161_s30, [#allocation21], %s5722_s4, %s5722_s4, %s5723_s25  }
  0x50   :  { %s5485_s10 = scalar_lea.vmem %s184_s21, 16  ;;  %s5489_s22 = scalar_lea.vmem %s184_s21, 32 }
  0x51   :  { %p5486_p2 = scmp.ne.s32.totalorder %s184_s21, %s5485_s10  ;;  %p5490_p3 = scmp.lt.s32.totalorder %s184_s21, %s184_s21 }
  0x52   :  { %p5491_p4 = scmp.lt.s32.totalorder %s5489_s22, %s5485_s10 }
  0x54   :  { %p5492_p5 = por %p5491_p4, %p5490_p3 }
  0x56   :  { %p5493_p6 = pnand %p5492_p5, %p5486_p2 }
  0x58   :  { %5496 = shalt.err (!%p5493_p6)
}
  0x59   :  { %186 = dma.hbm_to_vmem [thread:$0]  %s6860_s14, 16, %s184_s21, [#allocation24]  }
  0x5a   :  { %s5726_s24 = smov [#allocation26]   ;;  %s5727_s26 = smov [#allocation3]  }
  0x5b   :  { %s205_s3 = sshll.u32 %s5726_s24, 4  ;;  %s43_s6 = sshll.u32 %s5727_s26, 4  ;;  %s206_s3 = int_to_ptr.vmem [resolvable:$true] %s205_s3  ;;  %s44_s6 = int_to_ptr.vmem [resolvable:$true] %s43_s6 }
  0x5c   :  { %s5505_s27 = scalar_lea.vmem %s206_s3, 16  ;;  %s5509_s12 = scalar_lea.vmem %s206_s3, 32 }
  0x5d   :  { %p5506_p7 = scmp.ne.s32.totalorder %s206_s3, %s5505_s27  ;;  %p5510_p8 = scmp.lt.s32.totalorder %s206_s3, %s206_s3 }
  0x5e   :  { %p5511_p9 = scmp.lt.s32.totalorder %s5509_s12, %s5505_s27 }
  0x60   :  { %p5512_p10 = por %p5511_p9, %p5510_p8 }
  0x62   :  { %p5513_p11 = pnand %p5512_p10, %p5506_p7 }
  0x64   :  { %5516 = shalt.err (!%p5513_p11)
}
  0x65   :  { %208 = dma.hbm_to_vmem [thread:$0]  %s6862_s16, 16, %s206_s3, [#allocation27]  }
  0x66   :  { %s5525_s0 = scalar_lea.vmem %s44_s6, 32  ;;  %p5530_p13 = scmp.lt.s32.totalorder %s44_s6, %s44_s6 }
  0x67   :  { %p5526_p12 = scmp.ne.s32.totalorder %s44_s6, %s5525_s0  ;;  %p5531_p0 = scmp.lt.s32.totalorder %s5525_s0, %s5525_s0 }
  0x69   :  { %p5532_p1 = por %p5531_p0, %p5530_p13 }
  0x6b   :  { %p5533_p2 = pnand %p5532_p1, %p5526_p12 }
  0x6d   :  { %5536 = shalt.err (!%p5533_p2)
}
  0x6e   :  { %s6938_s20 = sld [smem:[#allocation87_spill]]  ;;  %s5728_s21 = smov [#allocation7]  }
  0x6f   :  { %s64_s1 = sshll.u32 %s5728_s21, 4  ;;  %s5729_s8 = smov [#allocation10]   ;;  %s65_s1 = int_to_ptr.vmem [resolvable:$true] %s64_s1 }
  0x70   :  { %s87_s18 = sshll.u32 %s5729_s8, 4  ;;  %s5545_s10 = scalar_lea.vmem %s65_s1, 12800  ;;  %s88_s18 = int_to_ptr.vmem [resolvable:$true] %s87_s18 }
  0x71   :  { %p5546_p3 = scmp.ne.s32.totalorder %s65_s1, %s5545_s10  ;;  %p5550_p4 = scmp.lt.s32.totalorder %s65_s1, %s65_s1 }
  0x72   :  { %p5551_p5 = scmp.lt.s32.totalorder %s5545_s10, %s5545_s10 }
  0x74   :  { %46 = dma.hbm_to_vmem [thread:$0]  %s6938_s20, 32, %s44_s6, [#allocation4]  }
  0x75   :  { %p5552_p6 = por %p5551_p5, %p5550_p4 }
  0x77   :  { %p5553_p7 = pnand %p5552_p6, %p5546_p3 }
  0x79   :  { %5556 = shalt.err (!%p5553_p7)
}
  0x7a   :  { %s6939_s2 = sld [smem:[#allocation89_spill]]  ;;  %s5565_s23 = scalar_lea.vmem %s88_s18, 16 }
  0x7b   :  { %p5566_p8 = scmp.ne.s32.totalorder %s88_s18, %s5565_s23  ;;  %s5569_s24 = scalar_lea.vmem %s88_s18, 32 }
  0x7c   :  { %p5570_p9 = scmp.lt.s32.totalorder %s88_s18, %s88_s18  ;;  %p5571_p10 = scmp.lt.s32.totalorder %s5569_s24, %s5565_s23 }
  0x7e   :  { %p5572_p11 = por %p5571_p10, %p5570_p9 }
  0x80   :  { %70 = dma.hbm_to_vmem [thread:$0]  %s6939_s2, 12800, %s65_s1, [#allocation6], %s5722_s4, %s5722_s4, %s5723_s25  }
  0x81   :  { %p5573_p12 = pnand %p5572_p11, %p5566_p8 }
  0x83   :  { %5576 = shalt.err (!%p5573_p12)
}
  0x84   :  { %90 = dma.hbm_to_vmem [thread:$0]  %s6851_s5, 16, %s88_s18, [#allocation9]  }
  0x85   :  { %s5730_s6 = smov [#allocation13]  }
  0x86   :  { %s106_s27 = sshll.u32 %s5730_s6, 4  ;;  %s107_s27 = int_to_ptr.vmem [resolvable:$true] %s106_s27 }
  0x87   :  { %s5585_s12 = scalar_lea.vmem %s107_s27, 51200  ;;  %p5590_p0 = scmp.lt.s32.totalorder %s107_s27, %s107_s27 }
  0x88   :  { %p5586_p13 = scmp.ne.s32.totalorder %s107_s27, %s5585_s12  ;;  %p5591_p1 = scmp.lt.s32.totalorder %s5585_s12, %s5585_s12 }
  0x8a   :  { %p5592_p2 = por %p5591_p1, %p5590_p0 }
  0x8c   :  { %p5593_p3 = pnand %p5592_p2, %p5586_p13 }
  0x8e   :  { %5596 = shalt.err (!%p5593_p3)
}
  0x8f   :  { %s5731_s28 = smov 512   ;;  %s5732_s29 = smov 32  }
  0x90   :  { %112 = dma.hbm_to_vmem [thread:$0]  %s6853_s7, 51200, %s107_s27, [#allocation12], %s5731_s28, %s5731_s28, %s5732_s29  }
  0x91   :  { %s5733_s30 = smov [#allocation16]   ;;  %s5734_s21 = smov [#allocation19]  }
  0x92   :  { %s131_s20 = sshll.u32 %s5733_s30, 4  ;;  %s151_s5 = sshll.u32 %s5734_s21, 4  ;;  %s132_s20 = int_to_ptr.vmem [resolvable:$true] %s131_s20  ;;  %s152_s5 = int_to_ptr.vmem [resolvable:$true] %s151_s5 }
  0x93   :  { %s5605_s1 = scalar_lea.vmem %s132_s20, 512  ;;  %p5610_p5 = scmp.lt.s32.totalorder %s132_s20, %s132_s20 }
  0x94   :  { %p5606_p4 = scmp.ne.s32.totalorder %s132_s20, %s5605_s1  ;;  %p5611_p6 = scmp.lt.s32.totalorder %s5605_s1, %s5605_s1 }
  0x96   :  { %p5612_p7 = por %p5611_p6, %p5610_p5 }
  0x98   :  { %p5613_p8 = pnand %p5612_p7, %p5606_p4 }
  0x9a   :  { %5616 = shalt.err (!%p5613_p8)
}
  0x9b   :  { %134 = dma.hbm_to_vmem [thread:$0]  %s6855_s9, 512, %s132_s20, [#allocation15]  }
  0x9c   :  { %s5625_s10 = scalar_lea.vmem %s152_s5, 16  ;;  %s5629_s7 = scalar_lea.vmem %s152_s5, 32 }
  0x9d   :  { %p5626_p9 = scmp.ne.s32.totalorder %s152_s5, %s5625_s10  ;;  %p5630_p10 = scmp.lt.s32.totalorder %s152_s5, %s152_s5 }
  0x9e   :  { %p5631_p11 = scmp.lt.s32.totalorder %s5629_s7, %s5625_s10 }
  0xa0   :  { %p5632_p12 = por %p5631_p11, %p5630_p10 }
  0xa2   :  { %p5633_p13 = pnand %p5632_p12, %p5626_p9 }
  0xa4   :  { %5636 = shalt.err (!%p5633_p13)
}
  0xa5   :  { %154 = dma.hbm_to_vmem [thread:$0]  %s6857_s11, 16, %s152_s5, [#allocation18]  }
  0xa6   :  { %s5735_s2 = smov [#allocation22]   ;;  %s5736_s24 = smov [#allocation25]  }
  0xa7   :  { %s173_s23 = sshll.u32 %s5735_s2, 4  ;;  %s192_s3 = sshll.u32 %s5736_s24, 4  ;;  %s174_s23 = int_to_ptr.vmem [resolvable:$true] %s173_s23  ;;  %s193_s3 = int_to_ptr.vmem [resolvable:$true] %s192_s3 }
  0xa8   :  { %s5645_s26 = scalar_lea.vmem %s174_s23, 64  ;;  %p5650_p1 = scmp.lt.s32.totalorder %s174_s23, %s174_s23 }
  0xa9   :  { %p5646_p0 = scmp.ne.s32.totalorder %s174_s23, %s5645_s26  ;;  %p5651_p2 = scmp.lt.s32.totalorder %s5645_s26, %s5645_s26 }
  0xab   :  { %p5652_p3 = por %p5651_p2, %p5650_p1 }
  0xad   :  { %p5653_p4 = pnand %p5652_p3, %p5646_p0 }
  0xaf   :  { %5656 = shalt.err (!%p5653_p4)
}
  0xb0   :  { %176 = dma.hbm_to_vmem [thread:$0]  %s6859_s13, 64, %s174_s23, [#allocation21]  }
  0xb1   :  { %s5665_s27 = scalar_lea.vmem %s193_s3, 512  ;;  %p5670_p6 = scmp.lt.s32.totalorder %s193_s3, %s193_s3 }
  0xb2   :  { %p5666_p5 = scmp.ne.s32.totalorder %s193_s3, %s5665_s27  ;;  %p5671_p7 = scmp.lt.s32.totalorder %s5665_s27, %s5665_s27 }
  0xb4   :  { %p5672_p8 = por %p5671_p7, %p5670_p6 }
  0xb6   :  { %p5673_p9 = pnand %p5672_p8, %p5666_p5 }
  0xb8   :  { %5676 = shalt.err (!%p5673_p9)
}
  0xb9   :  { %198 = dma.hbm_to_vmem [thread:$0]  %s6861_s15, 512, %s193_s3, [#allocation24], %s5722_s4, %s5722_s4, %s5723_s25  }
  0xba   :  { %s5737_s28 = smov [#allocation28]  }
  0xbb   :  { %s214_s29 = sshll.u32 %s5737_s28, 4  ;;  %s215_s29 = int_to_ptr.vmem [resolvable:$true] %s214_s29 }
  0xbc   :  { %s5685_s0 = scalar_lea.vmem %s215_s29, 512  ;;  %p5690_p11 = scmp.lt.s32.totalorder %s215_s29, %s215_s29 }
  0xbd   :  { %p5686_p10 = scmp.ne.s32.totalorder %s215_s29, %s5685_s0  ;;  %p5691_p12 = scmp.lt.s32.totalorder %s5685_s0, %s5685_s0 }
  0xbf   :  { %p5692_p13 = por %p5691_p12, %p5690_p11 }
  0xc1   :  { %p5693_p0 = pnand %p5692_p13, %p5686_p10 }
  0xc3   :  { %5696 = shalt.err (!%p5693_p0)
}
  0xc4   :  { %220 = dma.hbm_to_vmem [thread:$0]  %s6863_s17, 512, %s215_s29, [#allocation27], %s5722_s4, %s5722_s4, %s5723_s25  }
  0xc5   :  { %5697 = dma.done.wait [#allocation4], 32  }
  0xc6   :  { %5698 = vsyncadd [#allocation4], 4294967264 }
  0xc7   :  { %5699 = dma.done.wait [#allocation6], 61184  }
  0xc8   :  { %5700 = vsyncadd [#allocation6], 4294906112 }
  0xc9   :  { %5701 = dma.done.wait [#allocation9], 912  }
  0xca   :  { %5702 = vsyncadd [#allocation9], 4294966384 }
  0xcb   :  { %5703 = dma.done.wait [#allocation12], 51216  }
  0xcc   :  { %5704 = vsyncadd [#allocation12], 4294916080 }
  0xcd   :  { %5705 = dma.done.wait [#allocation15], 8704  }
  0xce   :  { %5706 = vsyncadd [#allocation15], 4294958592 }
  0xcf   :  { %5707 = dma.done.wait [#allocation18], 32  }
  0xd0   :  { %5708 = vsyncadd [#allocation18], 4294967264 }
  0xd1   :  { %5709 = dma.done.wait [#allocation21], 8256  }
  0xd2   :  { %5710 = vsyncadd [#allocation21], 4294959040 }
  0xd3   :  { %5711 = dma.done.wait [#allocation24], 528  }
  0xd4   :  { %5712 = vsyncadd [#allocation24], 4294966768 }
  0xd5   :  { %5713 = dma.done.wait [#allocation27], 528  }
  0xd6   :  { %5714 = vsyncadd [#allocation27], 4294966768  ;;  %v381_v1 = vld [vmem:[#allocation5 + $0x350] sm:$0xff]  ;;  %v380_v3 = vld [vmem:[#allocation5 + $0x348] sm:$0xff]  ;;  %v5738_v57 = vmov 1983009808   ;;  %v658_v59 = vlaneseq }
  0xd7   :  { %v605_v2 = vld [vmem:[#allocation5 + $0xa50] sm:$0xff]  ;;  %677 = vmatprep.subr.mxu0 %v381_v1  ;;  %v604_v4 = vld [vmem:[#allocation5 + $0xa48] sm:$0xff]  ;;  %v374_v5 = vld [vmem:[#allocation5 + $0x318] sm:$0xff]  ;;  %v656_v58 = vunpack.c.l.s4 %v5738_v57  ;;  %s6941_s4 = sld [smem:[#allocation86_spill]]  ;;  %vm674_vm0 = vcmask 392192   ;;  %vm5740_vm1 = vmmov 0  }
  0xd8   :  { %748 = vmatprep.subr.mxu1 %v605_v2  ;;  %v598_v6 = vld [vmem:[#allocation5 + $0xa18] sm:$0xff]  ;;  %678 = vmatpush1.msra.mxu0 %v380_v3  ;;  %v373_v7 = vld [vmem:[#allocation5 + $0x310] sm:$0xff]  ;;  %v367_v9 = vld [vmem:[#allocation5 + $0x2e0] sm:$0xff]  ;;  %vm1343_vm2 = vcmask 261120   ;;  %vm1627_vm3 = vcmask 58368   ;;  %vm1950_vm4 = vcmask 64512  }
  0xd9   :  { %749 = vmatpush1.msra.mxu1 %v604_v4  ;;  %v597_v8 = vld [vmem:[#allocation5 + $0xa10] sm:$0xff]  ;;  %679 = vmatprep.subr.mxu0 %v374_v5  ;;  %v591_v10 = vld [vmem:[#allocation5 + $0x9e0] sm:$0xff]  ;;  %v366_v11 = vld [vmem:[#allocation5 + $0x2d8] sm:$0xff]  ;;  %v657_v4 = vunpack.c.0.s8 %v656_v58  ;;  %v5910_v5 = vshrl.u32 %v658_v59, 7  ;;  %vm4352_vm5 = vcmask 1043456   ;;  %vm4348_vm6 = vcmask 31744  }
  0xda   :  { %750 = vmatprep.subr.mxu1 %v598_v6  ;;  %v590_v12 = vld [vmem:[#allocation5 + $0x9d8] sm:$0xff]  ;;  %680 = vmatpush1.msra.mxu0 %v373_v7  ;;  %v360_v13 = vld [vmem:[#allocation5 + $0x2a8] sm:$0xff]  ;;  %v359_v15 = vld [vmem:[#allocation5 + $0x2a0] sm:$0xff]  ;;  %vm4744_vm7 = vcmask 1024  }
  0xdb   :  { %751 = vmatpush1.msra.mxu1 %v597_v8  ;;  %v584_v14 = vld [vmem:[#allocation5 + $0x9a8] sm:$0xff]  ;;  %681 = vmatprep.subr.mxu0 %v367_v9  ;;  %v583_v16 = vld [vmem:[#allocation5 + $0x9a0] sm:$0xff]  ;;  %v353_v17 = vld [vmem:[#allocation5 + $0x270] sm:$0xff]  ;;  %6940 = vst [vmem:[#allocation38_spill] sm:$0xff] %v5910_v5 }
  0xdc   :  { %752 = vmatprep.subr.mxu1 %v591_v10  ;;  %682 = vmatpush1.msra.mxu0 %v366_v11  ;;  %v577_v18 = vld [vmem:[#allocation5 + $0x970] sm:$0xff]  ;;  %v352_v19 = vld [vmem:[#allocation5 + $0x268] sm:$0xff]  ;;  %v346_v21 = vld [vmem:[#allocation5 + $0x238] sm:$0xff] }
  0xdd   :  { %753 = vmatpush1.msra.mxu1 %v590_v12  ;;  %683 = vmatprep.subr.mxu0 %v360_v13  ;;  %v576_v20 = vld [vmem:[#allocation5 + $0x968] sm:$0xff]  ;;  %v570_v22 = vld [vmem:[#allocation5 + $0x938] sm:$0xff]  ;;  %v345_v23 = vld [vmem:[#allocation5 + $0x230] sm:$0xff] }
  0xde   :  { %754 = vmatprep.subr.mxu1 %v584_v14  ;;  %684 = vmatpush1.msra.mxu0 %v359_v15  ;;  %v569_v24 = vld [vmem:[#allocation5 + $0x930] sm:$0xff]  ;;  %v339_v25 = vld [vmem:[#allocation5 + $0x200] sm:$0xff]  ;;  %v338_v27 = vld [vmem:[#allocation5 + $0x1f8] sm:$0xff] }
  0xdf   :  { %755 = vmatpush1.msra.mxu1 %v583_v16  ;;  %685 = vmatprep.subr.mxu0 %v353_v17  ;;  %v563_v26 = vld [vmem:[#allocation5 + $0x900] sm:$0xff]  ;;  %v562_v28 = vld [vmem:[#allocation5 + $0x8f8] sm:$0xff]  ;;  %v332_v29 = vld [vmem:[#allocation5 + $0x1c8] sm:$0xff]  ;;  %v5920_v16 = vsub.s32 %v657_v4, %v5910_v5 }
  0xe0   :  { %756 = vmatprep.subr.mxu1 %v577_v18  ;;  %686 = vmatpush1.msra.mxu0 %v352_v19  ;;  %v556_v30 = vld [vmem:[#allocation5 + $0x8c8] sm:$0xff]  ;;  %v331_v31 = vld [vmem:[#allocation5 + $0x1c0] sm:$0xff]  ;;  %v325_v33 = vld [vmem:[#allocation5 + $0x190] sm:$0xff] }
  0xe1   :  { %757 = vmatpush1.msra.mxu1 %v576_v20  ;;  %687 = vmatprep.subr.mxu0 %v346_v21  ;;  %v555_v32 = vld [vmem:[#allocation5 + $0x8c0] sm:$0xff]  ;;  %v549_v34 = vld [vmem:[#allocation5 + $0x890] sm:$0xff]  ;;  %v324_v35 = vld [vmem:[#allocation5 + $0x188] sm:$0xff] }
  0xe2   :  { %758 = vmatprep.subr.mxu1 %v570_v22  ;;  %688 = vmatpush1.msra.mxu0 %v345_v23  ;;  %v548_v36 = vld [vmem:[#allocation5 + $0x888] sm:$0xff]  ;;  %v318_v37 = vld [vmem:[#allocation5 + $0x158] sm:$0xff]  ;;  %v317_v39 = vld [vmem:[#allocation5 + $0x150] sm:$0xff] }
  0xe3   :  { %759 = vmatpush1.msra.mxu1 %v569_v24  ;;  %689 = vmatprep.subr.mxu0 %v339_v25  ;;  %v542_v38 = vld [vmem:[#allocation5 + $0x858] sm:$0xff]  ;;  %v541_v40 = vld [vmem:[#allocation5 + $0x850] sm:$0xff]  ;;  %v311_v41 = vld [vmem:[#allocation5 + $0x120] sm:$0xff] }
  0xe4   :  { %760 = vmatprep.subr.mxu1 %v563_v26  ;;  %690 = vmatpush1.msra.mxu0 %v338_v27  ;;  %v535_v42 = vld [vmem:[#allocation5 + $0x820] sm:$0xff]  ;;  %v310_v43 = vld [vmem:[#allocation5 + $0x118] sm:$0xff]  ;;  %v304_v45 = vld [vmem:[#allocation5 + $0xe8] sm:$0xff] }
  0xe5   :  { %761 = vmatpush1.msra.mxu1 %v562_v28  ;;  %691 = vmatprep.subr.mxu0 %v332_v29  ;;  %v534_v44 = vld [vmem:[#allocation5 + $0x818] sm:$0xff]  ;;  %v528_v46 = vld [vmem:[#allocation5 + $0x7e8] sm:$0xff]  ;;  %v303_v47 = vld [vmem:[#allocation5 + $0xe0] sm:$0xff] }
  0xe6   :  { %762 = vmatprep.subr.mxu1 %v556_v30  ;;  %692 = vmatpush1.msra.mxu0 %v331_v31  ;;  %v527_v48 = vld [vmem:[#allocation5 + $0x7e0] sm:$0xff]  ;;  %v297_v49 = vld [vmem:[#allocation5 + $0xb0] sm:$0xff]  ;;  %v296_v51 = vld [vmem:[#allocation5 + $0xa8] sm:$0xff] }
  0xe7   :  { %763 = vmatpush1.msra.mxu1 %v555_v32  ;;  %693 = vmatprep.subr.mxu0 %v325_v33  ;;  %v521_v50 = vld [vmem:[#allocation5 + $0x7b0] sm:$0xff]  ;;  %v520_v52 = vld [vmem:[#allocation5 + $0x7a8] sm:$0xff]  ;;  %v290_v53 = vld [vmem:[#allocation5 + $0x78] sm:$0xff] }
  0xe8   :  { %764 = vmatprep.subr.mxu1 %v549_v34  ;;  %694 = vmatpush1.msra.mxu0 %v324_v35  ;;  %v514_v54 = vld [vmem:[#allocation5 + $0x778] sm:$0xff]  ;;  %v289_v55 = vld [vmem:[#allocation5 + $0x70] sm:$0xff]  ;;  %v283_v60 = vld [vmem:[#allocation5 + $0x40] sm:$0xff] }
  0xe9   :  { %765 = vmatpush1.msra.mxu1 %v548_v36  ;;  %695 = vmatprep.subr.mxu0 %v318_v37  ;;  %v513_v56 = vld [vmem:[#allocation5 + $0x770] sm:$0xff]  ;;  %v507_v61 = vld [vmem:[#allocation5 + $0x740] sm:$0xff]  ;;  %v282_v62 = vld [vmem:[#allocation5 + $0x38] sm:$0xff] }
  0xea   :  { %766 = vmatprep.subr.mxu1 %v542_v38  ;;  %696 = vmatpush1.msra.mxu0 %v317_v39  ;;  %v506_v63 = vld [vmem:[#allocation5 + $0x738] sm:$0xff]  ;;  %v276_v0 = vld [vmem:[#allocation5 + $0x8] sm:$0xff]  ;;  %v275_v2 = vld [vmem:[#allocation5] sm:$0xff] }
  0xeb   :  { %767 = vmatpush1.msra.mxu1 %v541_v40  ;;  %697 = vmatprep.subr.mxu0 %v311_v41  ;;  %v500_v1 = vld [vmem:[#allocation5 + $0x708] sm:$0xff]  ;;  %v499_v3 = vld [vmem:[#allocation5 + $0x700] sm:$0xff]  ;;  %v493_v6 = vld [vmem:[#allocation5 + $0x6d0] sm:$0xff] }
  0xec   :  { %768 = vmatprep.subr.mxu1 %v535_v42  ;;  %698 = vmatpush1.msra.mxu0 %v310_v43  ;;  %v647_v7 = vld [vmem:[#allocation5 + $0xba0] sm:$0xff]  ;;  %v492_v9 = vld [vmem:[#allocation5 + $0x6c8] sm:$0xff]  ;;  %v646_v10 = vld [vmem:[#allocation5 + $0xb98] sm:$0xff] }
  0xed   :  { %769 = vmatpush1.msra.mxu1 %v534_v44  ;;  %699 = vmatprep.subr.mxu0 %v304_v45  ;;  %v5915_v8 = vld [vmem:[%s6941_s4] sm:$0xff]  ;;  %v640_v12 = vld [vmem:[#allocation5 + $0xb68] sm:$0xff]  ;;  %v485_v13 = vld [vmem:[#allocation5 + $0x690] sm:$0xff] }
  0xee   :  { %770 = vmatprep.subr.mxu1 %v528_v46  ;;  %700 = vmatpush1.msra.mxu0 %v303_v47  ;;  %v486_v11 = vld [vmem:[#allocation5 + $0x698] sm:$0xff]  ;;  %v639_v14 = vld [vmem:[#allocation5 + $0xb60] sm:$0xff]  ;;  %v654_v15 = vcombine.high %v5915_v8, %v5915_v8  ;;  %v633_v18 = vld [vmem:[#allocation5 + $0xb30] sm:$0xff] }
  0xef   :  { %771 = vmatpush1.msra.mxu1 %v527_v48  ;;  %701 = vmatprep.subr.mxu0 %v297_v49  ;;  %v479_v17 = vld [vmem:[#allocation5 + $0x660] sm:$0xff]  ;;  %v478_v19 = vld [vmem:[#allocation5 + $0x658] sm:$0xff]  ;;  %v632_v20 = vld [vmem:[#allocation5 + $0xb28] sm:$0xff] }
  0xf0   :  { %772 = vmatprep.subr.mxu1 %v521_v50  ;;  %702 = vmatpush1.msra.mxu0 %v296_v51  ;;  %v472_v21 = vld [vmem:[#allocation5 + $0x628] sm:$0xff]  ;;  %v626_v22 = vld [vmem:[#allocation5 + $0xaf8] sm:$0xff]  ;;  %v471_v23 = vld [vmem:[#allocation5 + $0x620] sm:$0xff]  ;;  %v5923_v25 = vrot.slane %v654_v15, %v5920_v16 }
  0xf1   :  { %773 = vmatpush1.msra.mxu1 %v520_v52  ;;  %703 = vmatprep.subr.mxu0 %v290_v53  ;;  %v625_v24 = vld [vmem:[#allocation5 + $0xaf0] sm:$0xff]  ;;  %v619_v27 = vld [vmem:[#allocation5 + $0xac0] sm:$0xff]  ;;  %v464_v28 = vld [vmem:[#allocation5 + $0x5e8] sm:$0xff] }
  0xf2   :  { %774 = vmatprep.subr.mxu1 %v514_v54  ;;  %704 = vmatpush1.msra.mxu0 %v289_v55  ;;  %v465_v26 = vld [vmem:[#allocation5 + $0x5f0] sm:$0xff]  ;;  %v618_v29 = vld [vmem:[#allocation5 + $0xab8] sm:$0xff]  ;;  %v612_v31 = vld [vmem:[#allocation5 + $0xa88] sm:$0xff]  ;;  %v5927_v34 = vcombine.high %v5923_v25, %v5923_v25 }
  0xf3   :  { %775 = vmatpush1.msra.mxu1 %v513_v56  ;;  %705 = vmatprep.subr.mxu0 %v283_v60  ;;  %v458_v30 = vld [vmem:[#allocation5 + $0x5b8] sm:$0xff]  ;;  %v457_v32 = vld [vmem:[#allocation5 + $0x5b0] sm:$0xff]  ;;  %v611_v33 = vld [vmem:[#allocation5 + $0xa80] sm:$0xff] }
  0xf4   :  { %776 = vmatprep.subr.mxu1 %v507_v61  ;;  %706 = vmatpush1.msra.mxu0 %v282_v62  ;;  %v451_v35 = vld [vmem:[#allocation5 + $0x580] sm:$0xff]  ;;  %v450_v37 = vld [vmem:[#allocation5 + $0x578] sm:$0xff]  ;;  %v444_v38 = vld [vmem:[#allocation5 + $0x548] sm:$0xff] }
  0xf5   :  { %777 = vmatpush1.msra.mxu1 %v506_v63  ;;  %707 = vmatprep.subr.mxu0 %v276_v0  ;;  %v383_v36 = vld [vmem:[#allocation5 + $0x360] sm:$0xff]  ;;  %v382_v39 = vld [vmem:[#allocation5 + $0x358] sm:$0xff]  ;;  %v376_v41 = vld [vmem:[#allocation5 + $0x328] sm:$0xff] }
  0xf6   :  { %778 = vmatprep.subr.mxu1 %v500_v1  ;;  %708 = vmatpush1.msra.mxu0 %v275_v2  ;;  %v443_v40 = vld [vmem:[#allocation5 + $0x540] sm:$0xff]  ;;  %v437_v42 = vld [vmem:[#allocation5 + $0x510] sm:$0xff]  ;;  %v436_v44 = vld [vmem:[#allocation5 + $0x508] sm:$0xff]  ;;  %v5934_v1 = vrot.slane %v5915_v8, %v5920_v16 }
  0xf7   :  { %779 = vmatpush1.msra.mxu1 %v499_v3  ;;  %709 = vmatprep.subr.mxu0 %v493_v6  ;;  %v375_v43 = vld [vmem:[#allocation5 + $0x320] sm:$0xff]  ;;  %v369_v45 = vld [vmem:[#allocation5 + $0x2f0] sm:$0xff]  ;;  %v430_v46 = vld [vmem:[#allocation5 + $0x4d8] sm:$0xff] }
  0xf8   :  { %800 = vmatprep.subr.mxu1 %v647_v7  ;;  %710 = vmatpush2.msra.mxu0 %v492_v9  ;;  %v368_v47 = vld [vmem:[#allocation5 + $0x2e8] sm:$0xff]  ;;  %v429_v48 = vld [vmem:[#allocation5 + $0x4d0] sm:$0xff]  ;;  %v362_v49 = vld [vmem:[#allocation5 + $0x2b8] sm:$0xff]  ;;  %v5938_v8 = vcombine.high %v5934_v1, %v5934_v1 }
  0xf9   :  { %801 = vmatpush2.msra.mxu1 %v646_v10  ;;  %711 = vmatprep.subr.mxu0 %v486_v11  ;;  %v423_v50 = vld [vmem:[#allocation5 + $0x4a0] sm:$0xff]  ;;  %v361_v51 = vld [vmem:[#allocation5 + $0x2b0] sm:$0xff]  ;;  %v422_v52 = vld [vmem:[#allocation5 + $0x498] sm:$0xff] }
  0xfa   :  { %802 = vmatprep.subr.mxu1 %v640_v12  ;;  %712 = vmatpush2.msra.mxu0 %v485_v13  ;;  %v355_v53 = vld [vmem:[#allocation5 + $0x280] sm:$0xff]  ;;  %v416_v54 = vld [vmem:[#allocation5 + $0x468] sm:$0xff]  ;;  %v354_v55 = vld [vmem:[#allocation5 + $0x278] sm:$0xff] }
  0xfb   :  { %803 = vmatpush2.msra.mxu1 %v639_v14  ;;  %713 = vmatprep.subr.mxu0 %v479_v17  ;;  %v415_v56 = vld [vmem:[#allocation5 + $0x460] sm:$0xff]  ;;  %v348_v57 = vld [vmem:[#allocation5 + $0x248] sm:$0xff]  ;;  %v409_v58 = vld [vmem:[#allocation5 + $0x430] sm:$0xff] }
  0xfc   :  { %804 = vmatprep.subr.mxu1 %v633_v18  ;;  %714 = vmatpush2.msra.mxu0 %v478_v19  ;;  %v347_v59 = vld [vmem:[#allocation5 + $0x240] sm:$0xff]  ;;  %v408_v60 = vld [vmem:[#allocation5 + $0x428] sm:$0xff]  ;;  %v341_v61 = vld [vmem:[#allocation5 + $0x210] sm:$0xff] }
  0xfd   :  { %805 = vmatpush2.msra.mxu1 %v632_v20  ;;  %715 = vmatprep.subr.mxu0 %v472_v21  ;;  %v402_v62 = vld [vmem:[#allocation5 + $0x3f8] sm:$0xff]  ;;  %v340_v63 = vld [vmem:[#allocation5 + $0x208] sm:$0xff]  ;;  %v401_v0 = vld [vmem:[#allocation5 + $0x3f0] sm:$0xff] }
  0xfe   :  { %806 = vmatprep.subr.mxu1 %v626_v22  ;;  %716 = vmatpush2.msra.mxu0 %v471_v23  ;;  %v334_v2 = vld [vmem:[#allocation5 + $0x1d8] sm:$0xff]  ;;  %v395_v3 = vld [vmem:[#allocation5 + $0x3c0] sm:$0xff]  ;;  %v333_v4 = vld [vmem:[#allocation5 + $0x1d0] sm:$0xff] }
  0xff   :  { %807 = vmatpush2.msra.mxu1 %v625_v24  ;;  %717 = vmatprep.subr.mxu0 %v465_v26  ;;  %v394_v6 = vld [vmem:[#allocation5 + $0x3b8] sm:$0xff]  ;;  %v327_v7 = vld [vmem:[#allocation5 + $0x1a0] sm:$0xff]  ;;  %v388_v9 = vld [vmem:[#allocation5 + $0x388] sm:$0xff] }
 0x100   :  { %808 = vmatprep.subr.mxu1 %v619_v27  ;;  %718 = vmatpush2.msra.mxu0 %v464_v28  ;;  %v326_v10 = vld [vmem:[#allocation5 + $0x198] sm:$0xff]  ;;  %v387_v11 = vld [vmem:[#allocation5 + $0x380] sm:$0xff]  ;;  %v320_v12 = vld [vmem:[#allocation5 + $0x168] sm:$0xff] }
 0x101   :  { %809 = vmatpush2.msra.mxu1 %v618_v29  ;;  %719 = vmatprep.subr.mxu0 %v458_v30  ;;  %v319_v13 = vld [vmem:[#allocation5 + $0x160] sm:$0xff]  ;;  %v313_v14 = vld [vmem:[#allocation5 + $0x130] sm:$0xff]  ;;  %v312_v16 = vld [vmem:[#allocation5 + $0x128] sm:$0xff] }
 0x102   :  { %810 = vmatprep.subr.mxu1 %v612_v31  ;;  %720 = vmatpush2.msra.mxu0 %v457_v32  ;;  %v607_v15 = vld [vmem:[#allocation5 + $0xa60] sm:$0xff]  ;;  %v606_v17 = vld [vmem:[#allocation5 + $0xa58] sm:$0xff]  ;;  %v600_v19 = vld [vmem:[#allocation5 + $0xa28] sm:$0xff] }
 0x103   :  { %811 = vmatpush2.msra.mxu1 %v611_v33  ;;  %721 = vmatprep.subr.mxu0 %v451_v35  ;;  %v306_v18 = vld [vmem:[#allocation5 + $0xf8] sm:$0xff]  ;;  %v305_v20 = vld [vmem:[#allocation5 + $0xf0] sm:$0xff]  ;;  %v599_v21 = vld [vmem:[#allocation5 + $0xa20] sm:$0xff] }
 0x104   :  { %4759 = vmatprep.mubr.msk.f32.mxu1 %vm674_vm0, %v5927_v34  ;;  %819 = vmatprep.subr.mxu1 %v383_v36  ;;  %v299_v22 = vld [vmem:[#allocation5 + $0xc0] sm:$0xff]  ;;  %v593_v23 = vld [vmem:[#allocation5 + $0x9f0] sm:$0xff]  ;;  %v298_v24 = vld [vmem:[#allocation5 + $0xb8] sm:$0xff] }
 0x105   :  { %722 = vmatpush2.msra.mxu0 %v450_v37  ;;  %813 = vmatmul.mubr.f32.vlgmr.msra.gmra.mxu1 %v5923_v25  ;;  %v592_v26 = vld [vmem:[#allocation5 + $0x9e8] sm:$0xff]  ;;  %v586_v28 = vld [vmem:[#allocation5 + $0x9b8] sm:$0xff]  ;;  %v291_v29 = vld [vmem:[#allocation5 + $0x80] sm:$0xff] }
 0x106   :  { %723 = vmatprep.subr.mxu0 %v444_v38  ;;  %820 = vmatpush1.msra.mxu1 %v382_v39  ;;  %v292_v27 = vld [vmem:[#allocation5 + $0x88] sm:$0xff]  ;;  %v585_v30 = vld [vmem:[#allocation5 + $0x9b0] sm:$0xff]  ;;  %v579_v32 = vld [vmem:[#allocation5 + $0x980] sm:$0xff] }
 0x107   :  { %724 = vmatpush2.msra.mxu0 %v443_v40  ;;  %821 = vmatprep.subr.mxu1 %v376_v41  ;;  %v285_v31 = vld [vmem:[#allocation5 + $0x50] sm:$0xff]  ;;  %v284_v33 = vld [vmem:[#allocation5 + $0x48] sm:$0xff]  ;;  %v578_v35 = vld [vmem:[#allocation5 + $0x978] sm:$0xff] }
 0x108   :  { %725 = vmatprep.subr.mxu0 %v437_v42  ;;  %822 = vmatpush1.msra.mxu1 %v375_v43  ;;  %v278_v36 = vld [vmem:[#allocation5 + $0x18] sm:$0xff]  ;;  %v572_v37 = vld [vmem:[#allocation5 + $0x948] sm:$0xff]  ;;  %v277_v38 = vld [vmem:[#allocation5 + $0x10] sm:$0xff] }
 0x109   :  { %726 = vmatpush2.msra.mxu0 %v436_v44  ;;  %823 = vmatprep.subr.mxu1 %v369_v45  ;;  %v571_v39 = vld [vmem:[#allocation5 + $0x940] sm:$0xff]  ;;  %v565_v41 = vld [vmem:[#allocation5 + $0x910] sm:$0xff]  ;;  %v494_v42 = vld [vmem:[#allocation5 + $0x6d8] sm:$0xff] }
 0x10a   :  { %727 = vmatprep.subr.mxu0 %v430_v46  ;;  %824 = vmatpush1.msra.mxu1 %v368_v47  ;;  %v495_v40 = vld [vmem:[#allocation5 + $0x6e0] sm:$0xff]  ;;  %v564_v43 = vld [vmem:[#allocation5 + $0x908] sm:$0xff]  ;;  %v558_v45 = vld [vmem:[#allocation5 + $0x8d8] sm:$0xff] }
 0x10b   :  { %728 = vmatpush2.msra.mxu0 %v429_v48  ;;  %825 = vmatprep.subr.mxu1 %v362_v49  ;;  %v488_v44 = vld [vmem:[#allocation5 + $0x6a8] sm:$0xff]  ;;  %v487_v46 = vld [vmem:[#allocation5 + $0x6a0] sm:$0xff]  ;;  %v557_v47 = vld [vmem:[#allocation5 + $0x8d0] sm:$0xff] }
 0x10c   :  { %729 = vmatprep.subr.mxu0 %v423_v50  ;;  %826 = vmatpush1.msra.mxu1 %v361_v51  ;;  %v481_v48 = vld [vmem:[#allocation5 + $0x670] sm:$0xff]  ;;  %v551_v49 = vld [vmem:[#allocation5 + $0x8a0] sm:$0xff]  ;;  %v480_v50 = vld [vmem:[#allocation5 + $0x668] sm:$0xff] }
 0x10d   :  { %730 = vmatpush2.msra.mxu0 %v422_v52  ;;  %827 = vmatprep.subr.mxu1 %v355_v53  ;;  %v550_v51 = vld [vmem:[#allocation5 + $0x898] sm:$0xff]  ;;  %v544_v53 = vld [vmem:[#allocation5 + $0x868] sm:$0xff]  ;;  %v6166_v5 = vld [vmem:[#allocation7 + $0x180] sm:$0xff] }
 0x10e   :  { %731 = vmatprep.subr.mxu0 %v416_v54  ;;  %828 = vmatpush1.msra.mxu1 %v354_v55  ;;  %v474_v52 = vld [vmem:[#allocation5 + $0x638] sm:$0xff]  ;;  %v473_v54 = vld [vmem:[#allocation5 + $0x630] sm:$0xff]  ;;  %v543_v55 = vld [vmem:[#allocation5 + $0x860] sm:$0xff]  ;;  %6967 = vst [vmem:[#allocation64_spill] sm:$0xff] %v6166_v5 }
 0x10f   :  { %732 = vmatpush2.msra.mxu0 %v415_v56  ;;  %829 = vmatprep.subr.mxu1 %v348_v57  ;;  %v467_v56 = vld [vmem:[#allocation5 + $0x600] sm:$0xff]  ;;  %v537_v57 = vld [vmem:[#allocation5 + $0x830] sm:$0xff] }
 0x110   :  { %733 = vmatprep.subr.mxu0 %v409_v58  ;;  %830 = vmatpush1.msra.mxu1 %v347_v59  ;;  %v466_v58 = vld [vmem:[#allocation5 + $0x5f8] sm:$0xff]  ;;  %v536_v59 = vld [vmem:[#allocation5 + $0x828] sm:$0xff] }
 0x111   :  { %734 = vmatpush2.msra.mxu0 %v408_v60  ;;  %831 = vmatprep.subr.mxu1 %v341_v61  ;;  %v460_v60 = vld [vmem:[#allocation5 + $0x5c8] sm:$0xff]  ;;  %v530_v61 = vld [vmem:[#allocation5 + $0x7f8] sm:$0xff] }
 0x112   :  { %735 = vmatprep.subr.mxu0 %v402_v62  ;;  %832 = vmatpush1.msra.mxu1 %v340_v63  ;;  %v459_v62 = vld [vmem:[#allocation5 + $0x5c0] sm:$0xff]  ;;  %v529_v63 = vld [vmem:[#allocation5 + $0x7f0] sm:$0xff] }
 0x113   :  { %736 = vmatpush2.msra.mxu0 %v401_v0  ;;  %833 = vmatprep.subr.mxu1 %v334_v2  ;;  %v453_v0 = vld [vmem:[#allocation5 + $0x590] sm:$0xff]  ;;  %v523_v2 = vld [vmem:[#allocation5 + $0x7c0] sm:$0xff] }
 0x114   :  { %737 = vmatprep.subr.mxu0 %v395_v3  ;;  %834 = vmatpush1.msra.mxu1 %v333_v4  ;;  %v452_v3 = vld [vmem:[#allocation5 + $0x588] sm:$0xff]  ;;  %v522_v4 = vld [vmem:[#allocation5 + $0x7b8] sm:$0xff] }
 0x115   :  { %738 = vmatpush2.msra.mxu0 %v394_v6  ;;  %835 = vmatprep.subr.mxu1 %v327_v7  ;;  %v446_v6 = vld [vmem:[#allocation5 + $0x558] sm:$0xff]  ;;  %v516_v7 = vld [vmem:[#allocation5 + $0x788] sm:$0xff] }
 0x116   :  { %739 = vmatprep.subr.mxu0 %v388_v9  ;;  %836 = vmatpush1.msra.mxu1 %v326_v10  ;;  %v445_v9 = vld [vmem:[#allocation5 + $0x550] sm:$0xff]  ;;  %v515_v10 = vld [vmem:[#allocation5 + $0x780] sm:$0xff] }
 0x117   :  { %740 = vmatpush2.msra.mxu0 %v387_v11  ;;  %837 = vmatprep.subr.mxu1 %v320_v12  ;;  %v439_v11 = vld [vmem:[#allocation5 + $0x520] sm:$0xff]  ;;  %v509_v12 = vld [vmem:[#allocation5 + $0x750] sm:$0xff] }
 0x118   :  { %741 = vmatprep.mubr.f32.mxu0 %v5938_v8  ;;  %838 = vmatpush1.msra.mxu1 %v319_v13  ;;  %v438_v13 = vld [vmem:[#allocation5 + $0x518] sm:$0xff] }
 0x119   :  { %742 = vmatmul.mubr.f32.vlgmr.msra.gmra.mxu0 %v5934_v1  ;;  %839 = vmatprep.subr.mxu1 %v313_v14  ;;  %v508_v14 = vld [vmem:[#allocation5 + $0x748] sm:$0xff] }
 0x11a   :  { %890 = vmatprep.subr.mxu0 %v607_v15  ;;  %840 = vmatpush1.msra.mxu1 %v312_v16  ;;  %v432_v15 = vld [vmem:[#allocation5 + $0x4e8] sm:$0xff]  ;;  %v502_v16 = vld [vmem:[#allocation5 + $0x718] sm:$0xff] }
 0x11b   :  { %891 = vmatpush1.msra.mxu0 %v606_v17  ;;  %841 = vmatprep.subr.mxu1 %v306_v18  ;;  %v431_v17 = vld [vmem:[#allocation5 + $0x4e0] sm:$0xff]  ;;  %v501_v18 = vld [vmem:[#allocation5 + $0x710] sm:$0xff] }
 0x11c   :  { %892 = vmatprep.subr.mxu0 %v600_v19  ;;  %842 = vmatpush1.msra.mxu1 %v305_v20  ;;  %v425_v19 = vld [vmem:[#allocation5 + $0x4b0] sm:$0xff] }
 0x11d   :  { %893 = vmatpush1.msra.mxu0 %v599_v21  ;;  %843 = vmatprep.subr.mxu1 %v299_v22  ;;  %v649_v20 = vld [vmem:[#allocation5 + $0xbb0] sm:$0xff]  ;;  %v424_v21 = vld [vmem:[#allocation5 + $0x4a8] sm:$0xff] }
 0x11e   :  { %894 = vmatprep.subr.mxu0 %v593_v23  ;;  %844 = vmatpush1.msra.mxu1 %v298_v24  ;;  %v648_v22 = vld [vmem:[#allocation5 + $0xba8] sm:$0xff]  ;;  %v418_v23 = vld [vmem:[#allocation5 + $0x478] sm:$0xff] }
 0x11f   :  { %895 = vmatpush1.msra.mxu0 %v592_v26  ;;  %845 = vmatprep.subr.mxu1 %v292_v27  ;;  %v642_v24 = vld [vmem:[#allocation5 + $0xb78] sm:$0xff]  ;;  %v417_v26 = vld [vmem:[#allocation5 + $0x470] sm:$0xff] }
 0x120   :  { %896 = vmatprep.subr.mxu0 %v586_v28  ;;  %846 = vmatpush1.msra.mxu1 %v291_v29  ;;  %v641_v27 = vld [vmem:[#allocation5 + $0xb70] sm:$0xff]  ;;  %v411_v28 = vld [vmem:[#allocation5 + $0x440] sm:$0xff] }
 0x121   :  { %897 = vmatpush1.msra.mxu0 %v585_v30  ;;  %847 = vmatprep.subr.mxu1 %v285_v31  ;;  %v635_v29 = vld [vmem:[#allocation5 + $0xb40] sm:$0xff]  ;;  %v410_v30 = vld [vmem:[#allocation5 + $0x438] sm:$0xff] }
 0x122   :  { %898 = vmatprep.subr.mxu0 %v579_v32  ;;  %848 = vmatpush1.msra.mxu1 %v284_v33  ;;  %v634_v31 = vld [vmem:[#allocation5 + $0xb38] sm:$0xff]  ;;  %v404_v32 = vld [vmem:[#allocation5 + $0x408] sm:$0xff] }
 0x123   :  { %899 = vmatpush1.msra.mxu0 %v578_v35  ;;  %849 = vmatprep.subr.mxu1 %v278_v36  ;;  %v628_v33 = vld [vmem:[#allocation5 + $0xb08] sm:$0xff]  ;;  %v403_v35 = vld [vmem:[#allocation5 + $0x400] sm:$0xff] }
 0x124   :  { %900 = vmatprep.subr.mxu0 %v572_v37  ;;  %850 = vmatpush1.msra.mxu1 %v277_v38  ;;  %v627_v36 = vld [vmem:[#allocation5 + $0xb00] sm:$0xff]  ;;  %v397_v37 = vld [vmem:[#allocation5 + $0x3d0] sm:$0xff] }
 0x125   :  { %901 = vmatpush1.msra.mxu0 %v571_v39  ;;  %851 = vmatprep.subr.mxu1 %v495_v40  ;;  %v621_v38 = vld [vmem:[#allocation5 + $0xad0] sm:$0xff]  ;;  %v396_v39 = vld [vmem:[#allocation5 + $0x3c8] sm:$0xff] }
 0x126   :  { %902 = vmatprep.subr.mxu0 %v565_v41  ;;  %852 = vmatpush2.msra.mxu1 %v494_v42  ;;  %v620_v40 = vld [vmem:[#allocation5 + $0xac8] sm:$0xff]  ;;  %v390_v41 = vld [vmem:[#allocation5 + $0x398] sm:$0xff] }
 0x127   :  { %903 = vmatpush1.msra.mxu0 %v564_v43  ;;  %853 = vmatprep.subr.mxu1 %v488_v44  ;;  %v614_v42 = vld [vmem:[#allocation5 + $0xa98] sm:$0xff]  ;;  %v389_v43 = vld [vmem:[#allocation5 + $0x390] sm:$0xff] }
 0x128   :  { %904 = vmatprep.subr.mxu0 %v558_v45  ;;  %854 = vmatpush2.msra.mxu1 %v487_v46  ;;  %v613_v44 = vld [vmem:[#allocation5 + $0xa90] sm:$0xff] }
 0x129   :  { %905 = vmatpush1.msra.mxu0 %v557_v47  ;;  %855 = vmatprep.subr.mxu1 %v481_v48  ;;  %v385_v45 = vld [vmem:[#allocation5 + $0x370] sm:$0xff]  ;;  %v384_v47 = vld [vmem:[#allocation5 + $0x368] sm:$0xff] }
 0x12a   :  { %906 = vmatprep.subr.mxu0 %v551_v49  ;;  %856 = vmatpush2.msra.mxu1 %v480_v50  ;;  %v609_v46 = vld [vmem:[#allocation5 + $0xa70] sm:$0xff]  ;;  %v608_v48 = vld [vmem:[#allocation5 + $0xa68] sm:$0xff]  ;;  %v378_v49 = vld [vmem:[#allocation5 + $0x338] sm:$0xff] }
 0x12b   :  { %907 = vmatpush1.msra.mxu0 %v550_v51  ;;  %857 = vmatprep.subr.mxu1 %v474_v52  ;;  %v602_v50 = vld [vmem:[#allocation5 + $0xa38] sm:$0xff]  ;;  %v377_v51 = vld [vmem:[#allocation5 + $0x330] sm:$0xff] }
 0x12c   :  { %908 = vmatprep.subr.mxu0 %v544_v53  ;;  %858 = vmatpush2.msra.mxu1 %v473_v54  ;;  %v601_v52 = vld [vmem:[#allocation5 + $0xa30] sm:$0xff]  ;;  %v371_v53 = vld [vmem:[#allocation5 + $0x300] sm:$0xff] }
 0x12d   :  { %909 = vmatpush1.msra.mxu0 %v543_v55  ;;  %859 = vmatprep.subr.mxu1 %v467_v56  ;;  %v595_v54 = vld [vmem:[#allocation5 + $0xa00] sm:$0xff]  ;;  %v370_v55 = vld [vmem:[#allocation5 + $0x2f8] sm:$0xff] }
 0x12e   :  { %910 = vmatprep.subr.mxu0 %v537_v57  ;;  %860 = vmatpush2.msra.mxu1 %v466_v58  ;;  %v594_v56 = vld [vmem:[#allocation5 + $0x9f8] sm:$0xff]  ;;  %v364_v57 = vld [vmem:[#allocation5 + $0x2c8] sm:$0xff] }
 0x12f   :  { %911 = vmatpush1.msra.mxu0 %v536_v59  ;;  %861 = vmatprep.subr.mxu1 %v460_v60  ;;  %v588_v58 = vld [vmem:[#allocation5 + $0x9c8] sm:$0xff]  ;;  %v363_v59 = vld [vmem:[#allocation5 + $0x2c0] sm:$0xff] }
 0x130   :  { %912 = vmatprep.subr.mxu0 %v530_v61  ;;  %862 = vmatpush2.msra.mxu1 %v459_v62  ;;  %v587_v60 = vld [vmem:[#allocation5 + $0x9c0] sm:$0xff]  ;;  %v357_v61 = vld [vmem:[#allocation5 + $0x290] sm:$0xff] }
 0x131   :  { %913 = vmatpush1.msra.mxu0 %v529_v63  ;;  %863 = vmatprep.subr.mxu1 %v453_v0  ;;  %v581_v62 = vld [vmem:[#allocation5 + $0x990] sm:$0xff]  ;;  %v356_v63 = vld [vmem:[#allocation5 + $0x288] sm:$0xff] }
 0x132   :  { %914 = vmatprep.subr.mxu0 %v523_v2  ;;  %864 = vmatpush2.msra.mxu1 %v452_v3  ;;  %v580_v0 = vld [vmem:[#allocation5 + $0x988] sm:$0xff]  ;;  %v350_v2 = vld [vmem:[#allocation5 + $0x258] sm:$0xff] }
 0x133   :  { %915 = vmatpush1.msra.mxu0 %v522_v4  ;;  %865 = vmatprep.subr.mxu1 %v446_v6  ;;  %v574_v3 = vld [vmem:[#allocation5 + $0x958] sm:$0xff]  ;;  %v349_v4 = vld [vmem:[#allocation5 + $0x250] sm:$0xff] }
 0x134   :  { %916 = vmatprep.subr.mxu0 %v516_v7  ;;  %866 = vmatpush2.msra.mxu1 %v445_v9  ;;  %v573_v6 = vld [vmem:[#allocation5 + $0x950] sm:$0xff]  ;;  %v343_v7 = vld [vmem:[#allocation5 + $0x220] sm:$0xff] }
 0x135   :  { %917 = vmatpush1.msra.mxu0 %v515_v10  ;;  %867 = vmatprep.subr.mxu1 %v439_v11  ;;  %v567_v9 = vld [vmem:[#allocation5 + $0x920] sm:$0xff]  ;;  %v342_v10 = vld [vmem:[#allocation5 + $0x218] sm:$0xff] }
 0x136   :  { %918 = vmatprep.subr.mxu0 %v509_v12  ;;  %868 = vmatpush2.msra.mxu1 %v438_v13  ;;  %v566_v11 = vld [vmem:[#allocation5 + $0x918] sm:$0xff]  ;;  %v336_v12 = vld [vmem:[#allocation5 + $0x1e8] sm:$0xff] }
 0x137   :  { %919 = vmatpush1.msra.mxu0 %v508_v14  ;;  %869 = vmatprep.subr.mxu1 %v432_v15  ;;  %v560_v13 = vld [vmem:[#allocation5 + $0x8e8] sm:$0xff]  ;;  %v335_v14 = vld [vmem:[#allocation5 + $0x1e0] sm:$0xff] }
 0x138   :  { %920 = vmatprep.subr.mxu0 %v502_v16  ;;  %870 = vmatpush2.msra.mxu1 %v431_v17  ;;  %v559_v15 = vld [vmem:[#allocation5 + $0x8e0] sm:$0xff]  ;;  %v329_v16 = vld [vmem:[#allocation5 + $0x1b0] sm:$0xff] }
 0x139   :  { %921 = vmatpush1.msra.mxu0 %v501_v18  ;;  %871 = vmatprep.subr.mxu1 %v425_v19  ;;  %v553_v17 = vld [vmem:[#allocation5 + $0x8b0] sm:$0xff]  ;;  %v328_v18 = vld [vmem:[#allocation5 + $0x1a8] sm:$0xff] }
 0x13a   :  { %942 = vmatprep.subr.mxu0 %v649_v20  ;;  %872 = vmatpush2.msra.mxu1 %v424_v21  ;;  %v552_v19 = vld [vmem:[#allocation5 + $0x8a8] sm:$0xff]  ;;  %v322_v20 = vld [vmem:[#allocation5 + $0x178] sm:$0xff] }
 0x13b   :  { %943 = vmatpush2.msra.mxu0 %v648_v22  ;;  %873 = vmatprep.subr.mxu1 %v418_v23  ;;  %v546_v21 = vld [vmem:[#allocation5 + $0x878] sm:$0xff]  ;;  %v321_v22 = vld [vmem:[#allocation5 + $0x170] sm:$0xff] }
 0x13c   :  { %944 = vmatprep.subr.mxu0 %v642_v24  ;;  %874 = vmatpush2.msra.mxu1 %v417_v26  ;;  %v545_v23 = vld [vmem:[#allocation5 + $0x870] sm:$0xff]  ;;  %v315_v24 = vld [vmem:[#allocation5 + $0x140] sm:$0xff] }
 0x13d   :  { %945 = vmatpush2.msra.mxu0 %v641_v27  ;;  %875 = vmatprep.subr.mxu1 %v411_v28  ;;  %v539_v26 = vld [vmem:[#allocation5 + $0x840] sm:$0xff]  ;;  %v314_v27 = vld [vmem:[#allocation5 + $0x138] sm:$0xff] }
 0x13e   :  { %946 = vmatprep.subr.mxu0 %v635_v29  ;;  %876 = vmatpush2.msra.mxu1 %v410_v30  ;;  %v538_v28 = vld [vmem:[#allocation5 + $0x838] sm:$0xff]  ;;  %v308_v29 = vld [vmem:[#allocation5 + $0x108] sm:$0xff] }
 0x13f   :  { %947 = vmatpush2.msra.mxu0 %v634_v31  ;;  %877 = vmatprep.subr.mxu1 %v404_v32  ;;  %v532_v30 = vld [vmem:[#allocation5 + $0x808] sm:$0xff]  ;;  %v307_v31 = vld [vmem:[#allocation5 + $0x100] sm:$0xff] }
 0x140   :  { %948 = vmatprep.subr.mxu0 %v628_v33  ;;  %878 = vmatpush2.msra.mxu1 %v403_v35  ;;  %v531_v32 = vld [vmem:[#allocation5 + $0x800] sm:$0xff]  ;;  %v301_v33 = vld [vmem:[#allocation5 + $0xd0] sm:$0xff] }
 0x141   :  { %949 = vmatpush2.msra.mxu0 %v627_v36  ;;  %879 = vmatprep.subr.mxu1 %v397_v37  ;;  %v525_v35 = vld [vmem:[#allocation5 + $0x7d0] sm:$0xff]  ;;  %v300_v36 = vld [vmem:[#allocation5 + $0xc8] sm:$0xff] }
 0x142   :  { %950 = vmatprep.subr.mxu0 %v621_v38  ;;  %880 = vmatpush2.msra.mxu1 %v396_v39  ;;  %v524_v37 = vld [vmem:[#allocation5 + $0x7c8] sm:$0xff]  ;;  %v294_v38 = vld [vmem:[#allocation5 + $0x98] sm:$0xff] }
 0x143   :  { %951 = vmatpush2.msra.mxu0 %v620_v40  ;;  %881 = vmatprep.subr.mxu1 %v390_v41  ;;  %v518_v39 = vld [vmem:[#allocation5 + $0x798] sm:$0xff]  ;;  %v293_v40 = vld [vmem:[#allocation5 + $0x90] sm:$0xff] }
 0x144   :  { %952 = vmatprep.subr.mxu0 %v614_v42  ;;  %882 = vmatpush2.msra.mxu1 %v389_v43  ;;  %v517_v41 = vld [vmem:[#allocation5 + $0x790] sm:$0xff]  ;;  %v287_v42 = vld [vmem:[#allocation5 + $0x60] sm:$0xff] }
 0x145   :  { %883 = vmatprep.mubr.f32.mxu1 %v5938_v8  ;;  %953 = vmatpush2.msra.mxu0 %v613_v44  ;;  %v511_v43 = vld [vmem:[#allocation5 + $0x760] sm:$0xff]  ;;  %v286_v44 = vld [vmem:[#allocation5 + $0x58] sm:$0xff] }
 0x146   :  { %4760 = vmatprep.mubr.msk.f32.mxu0 %vm674_vm0, %v5927_v34  ;;  %884 = vmatmul.mubr.f32.vlgmr.msra.gmra.mxu1 %v5934_v1 }
 0x147   :  { %955 = vmatmul.mubr.f32.vlgmr.msra.gmra.mxu0 %v5923_v25  ;;  %961 = vmatprep.subr.mxu0 %v385_v45  ;;  %v510_v45 = vld [vmem:[#allocation5 + $0x758] sm:$0xff] }
 0x148   :  { %1032 = vmatprep.subr.mxu1 %v609_v46  ;;  %962 = vmatpush1.msra.mxu0 %v384_v47  ;;  %v280_v46 = vld [vmem:[#allocation5 + $0x28] sm:$0xff] }
 0x149   :  { %1033 = vmatpush1.msra.mxu1 %v608_v48  ;;  %963 = vmatprep.subr.mxu0 %v378_v49  ;;  %v504_v47 = vld [vmem:[#allocation5 + $0x728] sm:$0xff]  ;;  %v279_v48 = vld [vmem:[#allocation5 + $0x20] sm:$0xff] }
 0x14a   :  { %1034 = vmatprep.subr.mxu1 %v602_v50  ;;  %964 = vmatpush1.msra.mxu0 %v377_v51  ;;  %v503_v49 = vld [vmem:[#allocation5 + $0x720] sm:$0xff]  ;;  %v497_v50 = vld [vmem:[#allocation5 + $0x6f0] sm:$0xff] }
 0x14b   :  { %1035 = vmatpush1.msra.mxu1 %v601_v52  ;;  %965 = vmatprep.subr.mxu0 %v371_v53  ;;  %v651_v51 = vld [vmem:[#allocation5 + $0xbc0] sm:$0xff]  ;;  %v496_v52 = vld [vmem:[#allocation5 + $0x6e8] sm:$0xff]  ;;  %v650_v53 = vld [vmem:[#allocation5 + $0xbb8] sm:$0xff] }
 0x14c   :  { %1036 = vmatprep.subr.mxu1 %v595_v54  ;;  %966 = vmatpush1.msra.mxu0 %v370_v55  ;;  %v490_v54 = vld [vmem:[#allocation5 + $0x6b8] sm:$0xff]  ;;  %v644_v55 = vld [vmem:[#allocation5 + $0xb88] sm:$0xff] }
 0x14d   :  { %1037 = vmatpush1.msra.mxu1 %v594_v56  ;;  %967 = vmatprep.subr.mxu0 %v364_v57  ;;  %v489_v56 = vld [vmem:[#allocation5 + $0x6b0] sm:$0xff]  ;;  %v643_v57 = vld [vmem:[#allocation5 + $0xb80] sm:$0xff] }
 0x14e   :  { %1038 = vmatprep.subr.mxu1 %v588_v58  ;;  %968 = vmatpush1.msra.mxu0 %v363_v59  ;;  %v483_v58 = vld [vmem:[#allocation5 + $0x680] sm:$0xff]  ;;  %v637_v59 = vld [vmem:[#allocation5 + $0xb50] sm:$0xff] }
 0x14f   :  { %1039 = vmatpush1.msra.mxu1 %v587_v60  ;;  %969 = vmatprep.subr.mxu0 %v357_v61  ;;  %v482_v60 = vld [vmem:[#allocation5 + $0x678] sm:$0xff]  ;;  %v636_v61 = vld [vmem:[#allocation5 + $0xb48] sm:$0xff] }
 0x150   :  { %1040 = vmatprep.subr.mxu1 %v581_v62  ;;  %970 = vmatpush1.msra.mxu0 %v356_v63  ;;  %v476_v62 = vld [vmem:[#allocation5 + $0x648] sm:$0xff]  ;;  %v630_v63 = vld [vmem:[#allocation5 + $0xb18] sm:$0xff] }
 0x151   :  { %1041 = vmatpush1.msra.mxu1 %v580_v0  ;;  %971 = vmatprep.subr.mxu0 %v350_v2  ;;  %v475_v0 = vld [vmem:[#allocation5 + $0x640] sm:$0xff]  ;;  %v629_v2 = vld [vmem:[#allocation5 + $0xb10] sm:$0xff] }
 0x152   :  { %1042 = vmatprep.subr.mxu1 %v574_v3  ;;  %972 = vmatpush1.msra.mxu0 %v349_v4  ;;  %v469_v3 = vld [vmem:[#allocation5 + $0x610] sm:$0xff]  ;;  %v623_v4 = vld [vmem:[#allocation5 + $0xae0] sm:$0xff] }
 0x153   :  { %1043 = vmatpush1.msra.mxu1 %v573_v6  ;;  %973 = vmatprep.subr.mxu0 %v343_v7  ;;  %v468_v6 = vld [vmem:[#allocation5 + $0x608] sm:$0xff]  ;;  %v622_v7 = vld [vmem:[#allocation5 + $0xad8] sm:$0xff] }
 0x154   :  { %1044 = vmatprep.subr.mxu1 %v567_v9  ;;  %974 = vmatpush1.msra.mxu0 %v342_v10  ;;  %v462_v9 = vld [vmem:[#allocation5 + $0x5d8] sm:$0xff]  ;;  %v616_v10 = vld [vmem:[#allocation5 + $0xaa8] sm:$0xff] }
 0x155   :  { %1045 = vmatpush1.msra.mxu1 %v566_v11  ;;  %975 = vmatprep.subr.mxu0 %v336_v12  ;;  %v461_v11 = vld [vmem:[#allocation5 + $0x5d0] sm:$0xff]  ;;  %v455_v12 = vld [vmem:[#allocation5 + $0x5a0] sm:$0xff] }
 0x156   :  { %1046 = vmatprep.subr.mxu1 %v560_v13  ;;  %976 = vmatpush1.msra.mxu0 %v335_v14  ;;  %v615_v13 = vld [vmem:[#allocation5 + $0xaa0] sm:$0xff]  ;;  %v454_v14 = vld [vmem:[#allocation5 + $0x598] sm:$0xff] }
 0x157   :  { %1047 = vmatpush1.msra.mxu1 %v559_v15  ;;  %977 = vmatprep.subr.mxu0 %v329_v16  ;;  %v448_v15 = vld [vmem:[#allocation5 + $0x568] sm:$0xff]  ;;  %v447_v16 = vld [vmem:[#allocation5 + $0x560] sm:$0xff] }
 0x158   :  { %1048 = vmatprep.subr.mxu1 %v553_v17  ;;  %978 = vmatpush1.msra.mxu0 %v328_v18  ;;  %v498_v17 = vld [vmem:[#allocation5 + $0x6f8] sm:$0xff]  ;;  %v441_v18 = vld [vmem:[#allocation5 + $0x530] sm:$0xff] }
 0x159   :  { %1049 = vmatpush1.msra.mxu1 %v552_v19  ;;  %979 = vmatprep.subr.mxu0 %v322_v20  ;;  %v386_v19 = vld [vmem:[#allocation5 + $0x378] sm:$0xff]  ;;  %v440_v20 = vld [vmem:[#allocation5 + $0x528] sm:$0xff] }
 0x15a   :  { %1050 = vmatprep.subr.mxu1 %v546_v21  ;;  %980 = vmatpush1.msra.mxu0 %v321_v22  ;;  %v491_v21 = vld [vmem:[#allocation5 + $0x6c0] sm:$0xff]  ;;  %v434_v22 = vld [vmem:[#allocation5 + $0x4f8] sm:$0xff] }
 0x15b   :  { %1051 = vmatpush1.msra.mxu1 %v545_v23  ;;  %981 = vmatprep.subr.mxu0 %v315_v24  ;;  %v379_v23 = vld [vmem:[#allocation5 + $0x340] sm:$0xff]  ;;  %v433_v24 = vld [vmem:[#allocation5 + $0x4f0] sm:$0xff] }
 0x15c   :  { %1052 = vmatprep.subr.mxu1 %v539_v26  ;;  %982 = vmatpush1.msra.mxu0 %v314_v27  ;;  %v484_v26 = vld [vmem:[#allocation5 + $0x688] sm:$0xff]  ;;  %v427_v27 = vld [vmem:[#allocation5 + $0x4c0] sm:$0xff] }
 0x15d   :  { %1053 = vmatpush1.msra.mxu1 %v538_v28  ;;  %983 = vmatprep.subr.mxu0 %v308_v29  ;;  %v372_v28 = vld [vmem:[#allocation5 + $0x308] sm:$0xff]  ;;  %v426_v29 = vld [vmem:[#allocation5 + $0x4b8] sm:$0xff] }
 0x15e   :  { %1054 = vmatprep.subr.mxu1 %v532_v30  ;;  %984 = vmatpush1.msra.mxu0 %v307_v31  ;;  %v477_v30 = vld [vmem:[#allocation5 + $0x650] sm:$0xff]  ;;  %v420_v31 = vld [vmem:[#allocation5 + $0x488] sm:$0xff] }
 0x15f   :  { %1055 = vmatpush1.msra.mxu1 %v531_v32  ;;  %985 = vmatprep.subr.mxu0 %v301_v33  ;;  %v365_v32 = vld [vmem:[#allocation5 + $0x2d0] sm:$0xff]  ;;  %v419_v33 = vld [vmem:[#allocation5 + $0x480] sm:$0xff] }
 0x160   :  { %1056 = vmatprep.subr.mxu1 %v525_v35  ;;  %986 = vmatpush1.msra.mxu0 %v300_v36  ;;  %v470_v35 = vld [vmem:[#allocation5 + $0x618] sm:$0xff]  ;;  %v413_v36 = vld [vmem:[#allocation5 + $0x450] sm:$0xff] }
 0x161   :  { %1057 = vmatpush1.msra.mxu1 %v524_v37  ;;  %987 = vmatprep.subr.mxu0 %v294_v38  ;;  %v358_v37 = vld [vmem:[#allocation5 + $0x298] sm:$0xff]  ;;  %v412_v38 = vld [vmem:[#allocation5 + $0x448] sm:$0xff] }
 0x162   :  { %1058 = vmatprep.subr.mxu1 %v518_v39  ;;  %988 = vmatpush1.msra.mxu0 %v293_v40  ;;  %v463_v39 = vld [vmem:[#allocation5 + $0x5e0] sm:$0xff]  ;;  %v406_v40 = vld [vmem:[#allocation5 + $0x418] sm:$0xff] }
 0x163   :  { %1059 = vmatpush1.msra.mxu1 %v517_v41  ;;  %989 = vmatprep.subr.mxu0 %v287_v42  ;;  %v351_v41 = vld [vmem:[#allocation5 + $0x260] sm:$0xff]  ;;  %v405_v42 = vld [vmem:[#allocation5 + $0x410] sm:$0xff] }
 0x164   :  { %1060 = vmatprep.subr.mxu1 %v511_v43  ;;  %990 = vmatpush1.msra.mxu0 %v286_v44  ;;  %v456_v43 = vld [vmem:[#allocation5 + $0x5a8] sm:$0xff]  ;;  %v399_v44 = vld [vmem:[#allocation5 + $0x3e0] sm:$0xff] }
 0x165   :  { %1061 = vmatpush1.msra.mxu1 %v510_v45  ;;  %991 = vmatprep.subr.mxu0 %v280_v46  ;;  %v344_v45 = vld [vmem:[#allocation5 + $0x228] sm:$0xff]  ;;  %v398_v46 = vld [vmem:[#allocation5 + $0x3d8] sm:$0xff] }
 0x166   :  { %1062 = vmatprep.subr.mxu1 %v504_v47  ;;  %992 = vmatpush1.msra.mxu0 %v279_v48  ;;  %v449_v47 = vld [vmem:[#allocation5 + $0x570] sm:$0xff]  ;;  %v392_v48 = vld [vmem:[#allocation5 + $0x3a8] sm:$0xff] }
 0x167   :  { %1063 = vmatpush1.msra.mxu1 %v503_v49  ;;  %993 = vmatprep.subr.mxu0 %v497_v50  ;;  %v337_v49 = vld [vmem:[#allocation5 + $0x1f0] sm:$0xff]  ;;  %v391_v50 = vld [vmem:[#allocation5 + $0x3a0] sm:$0xff] }
 0x168   :  { %1084 = vmatprep.subr.mxu1 %v651_v51  ;;  %994 = vmatpush2.msra.mxu0 %v496_v52  ;;  %v442_v51 = vld [vmem:[#allocation5 + $0x538] sm:$0xff] }
 0x169   :  { %1085 = vmatpush2.msra.mxu1 %v650_v53  ;;  %995 = vmatprep.subr.mxu0 %v490_v54  ;;  %v610_v52 = vld [vmem:[#allocation5 + $0xa78] sm:$0xff]  ;;  %v435_v54 = vld [vmem:[#allocation5 + $0x500] sm:$0xff] }
 0x16a   :  { %1086 = vmatprep.subr.mxu1 %v644_v55  ;;  %996 = vmatpush2.msra.mxu0 %v489_v56  ;;  %v330_v53 = vld [vmem:[#allocation5 + $0x1b8] sm:$0xff]  ;;  %v6866_v55 = vmov 0.0   ;;  %v603_v56 = vld [vmem:[#allocation5 + $0xa40] sm:$0xff] }
 0x16b   :  { %1087 = vmatpush2.msra.mxu1 %v643_v57  ;;  %997 = vmatprep.subr.mxu0 %v483_v58  ;;  %v323_v57 = vld [vmem:[#allocation5 + $0x180] sm:$0xff]  ;;  %v428_v58 = vld [vmem:[#allocation5 + $0x4c8] sm:$0xff] }
 0x16c   :  { %1088 = vmatprep.subr.mxu1 %v637_v59  ;;  %998 = vmatpush2.msra.mxu0 %v482_v60  ;;  %v596_v59 = vld [vmem:[#allocation5 + $0xa08] sm:$0xff] }
 0x16d   :  { %1089 = vmatpush2.msra.mxu1 %v636_v61  ;;  %999 = vmatprep.subr.mxu0 %v476_v62  ;;  %v316_v60 = vld [vmem:[#allocation5 + $0x148] sm:$0xff]  ;;  %v421_v61 = vld [vmem:[#allocation5 + $0x490] sm:$0xff] }
 0x16e   :  { %1090 = vmatprep.subr.mxu1 %v630_v63  ;;  %1000 = vmatpush2.msra.mxu0 %v475_v0  ;;  %v589_v62 = vld [vmem:[#allocation5 + $0x9d0] sm:$0xff]  ;;  %v414_v0 = vld [vmem:[#allocation5 + $0x458] sm:$0xff] }
 0x16f   :  { %1091 = vmatpush2.msra.mxu1 %v629_v2  ;;  %1001 = vmatprep.subr.mxu0 %v469_v3  ;;  %v309_v63 = vld [vmem:[#allocation5 + $0x110] sm:$0xff]  ;;  %v582_v2 = vld [vmem:[#allocation5 + $0x998] sm:$0xff] }
 0x170   :  { %1092 = vmatprep.subr.mxu1 %v623_v4  ;;  %1002 = vmatpush2.msra.mxu0 %v468_v6  ;;  %v302_v3 = vld [vmem:[#allocation5 + $0xd8] sm:$0xff]  ;;  %v407_v4 = vld [vmem:[#allocation5 + $0x420] sm:$0xff] }
 0x171   :  { %1093 = vmatpush2.msra.mxu1 %v622_v7  ;;  %1003 = vmatprep.subr.mxu0 %v462_v9  ;;  %v575_v6 = vld [vmem:[#allocation5 + $0x960] sm:$0xff]  ;;  %v400_v9 = vld [vmem:[#allocation5 + $0x3e8] sm:$0xff] }
 0x172   :  { %1094 = vmatprep.subr.mxu1 %v616_v10  ;;  %1004 = vmatpush2.msra.mxu0 %v461_v11  ;;  %v295_v7 = vld [vmem:[#allocation5 + $0xa0] sm:$0xff]  ;;  %v568_v10 = vld [vmem:[#allocation5 + $0x928] sm:$0xff] }
 0x173   :  { %1025 = vmatprep.mubr.f32.mxu0 %v5938_v8  ;;  %1005 = vmatprep.subr.mxu0 %v455_v12  ;;  %v288_v11 = vld [vmem:[#allocation5 + $0x68] sm:$0xff]  ;;  %v393_v12 = vld [vmem:[#allocation5 + $0x3b0] sm:$0xff] }
 0x174   :  { %1095 = vmatpush2.msra.mxu1 %v615_v13  ;;  %1006 = vmatpush2.msra.mxu0 %v454_v14  ;;  %v561_v13 = vld [vmem:[#allocation5 + $0x8f0] sm:$0xff] }
 0x175   :  { %4761 = vmatprep.mubr.msk.f32.mxu1 %vm674_vm0, %v5927_v34  ;;  %1007 = vmatprep.subr.mxu0 %v448_v15  ;;  %v281_v14 = vld [vmem:[#allocation5 + $0x30] sm:$0xff]  ;;  %v554_v15 = vld [vmem:[#allocation5 + $0x8b8] sm:$0xff] }
 0x176   :  { %1097 = vmatmul.mubr.f32.vlgmr.msra.gmra.mxu1 %v5923_v25  ;;  %1008 = vmatpush2.msra.mxu0 %v447_v16  ;;  %v547_v16 = vld [vmem:[#allocation5 + $0x880] sm:$0xff] }
 0x177   :  { %4786 = vmatprep.subr.mxu1 %v498_v17  ;;  %1009 = vmatprep.subr.mxu0 %v441_v18  ;;  %v5962_v17 = vld [vmem:[#allocation7 + $0xf8] sm:$0xff] }
 0x178   :  { %4787 = vmatpush3.msra.mxu1 %v386_v19  ;;  %1010 = vmatpush2.msra.mxu0 %v440_v20  ;;  %v5965_v18 = vld [vmem:[#allocation7 + $0x78] sm:$0xff]  ;;  %v5970_v20 = vld [vmem:[#allocation7 + $0xf0] sm:$0xff] }
 0x179   :  { %4788 = vmatprep.subr.mxu1 %v491_v21  ;;  %1011 = vmatprep.subr.mxu0 %v434_v22  ;;  %v540_v19 = vld [vmem:[#allocation5 + $0x848] sm:$0xff]  ;;  %v5973_v21 = vld [vmem:[#allocation7 + $0x70] sm:$0xff]  ;;  %v5980_v22 = vld [vmem:[#allocation7 + $0x68] sm:$0xff] }
 0x17a   :  { %4789 = vmatpush3.msra.mxu1 %v379_v23  ;;  %1012 = vmatpush2.msra.mxu0 %v433_v24  ;;  %v5984_v23 = vld [vmem:[#allocation7 + $0xe0] sm:$0xff] }
 0x17b   :  { %4790 = vmatprep.subr.mxu1 %v484_v26  ;;  %1013 = vmatprep.subr.mxu0 %v427_v27  ;;  %v5987_v24 = vld [vmem:[#allocation7 + $0x60] sm:$0xff]  ;;  %v519_v26 = vld [vmem:[#allocation5 + $0x7a0] sm:$0xff]  ;;  %v5991_v27 = vld [vmem:[#allocation7 + $0xd8] sm:$0xff] }
 0x17c   :  { %4791 = vmatpush3.msra.mxu1 %v372_v28  ;;  %1014 = vmatpush2.msra.mxu0 %v426_v29  ;;  %v5994_v28 = vld [vmem:[#allocation7 + $0x58] sm:$0xff] }
 0x17d   :  { %4792 = vmatprep.subr.mxu1 %v477_v30  ;;  %1015 = vmatprep.subr.mxu0 %v420_v31  ;;  %v512_v29 = vld [vmem:[#allocation5 + $0x768] sm:$0xff]  ;;  %v5998_v30 = vld [vmem:[#allocation7 + $0xd0] sm:$0xff] }
 0x17e   :  { %4793 = vmatpush3.msra.mxu1 %v365_v32  ;;  %1016 = vmatpush2.msra.mxu0 %v419_v33  ;;  %v6001_v31 = vld [vmem:[#allocation7 + $0x50] sm:$0xff]  ;;  %v505_v32 = vld [vmem:[#allocation5 + $0x730] sm:$0xff]  ;;  %v6005_v33 = vld [vmem:[#allocation7 + $0xc8] sm:$0xff] }
 0x17f   :  { %4794 = vmatprep.subr.mxu1 %v470_v35  ;;  %1017 = vmatprep.subr.mxu0 %v413_v36  ;;  %v6008_v35 = vld [vmem:[#allocation7 + $0x48] sm:$0xff]  ;;  %v652_v36 = vld [vmem:[#allocation5 + $0xbc8] sm:$0xff] }
 0x180   :  { %4795 = vmatpush3.msra.mxu1 %v358_v37  ;;  %1018 = vmatpush2.msra.mxu0 %v412_v38  ;;  %v6012_v37 = vld [vmem:[#allocation7 + $0xc0] sm:$0xff] }
 0x181   :  { %4796 = vmatprep.subr.mxu1 %v463_v39  ;;  %1019 = vmatprep.subr.mxu0 %v406_v40  ;;  %v6015_v38 = vld [vmem:[#allocation7 + $0x40] sm:$0xff]  ;;  %v6019_v40 = vld [vmem:[#allocation7 + $0xb8] sm:$0xff] }
 0x182   :  { %4797 = vmatpush3.msra.mxu1 %v351_v41  ;;  %1020 = vmatpush2.msra.mxu0 %v405_v42  ;;  %v645_v39 = vld [vmem:[#allocation5 + $0xb90] sm:$0xff]  ;;  %v6022_v41 = vld [vmem:[#allocation7 + $0x38] sm:$0xff]  ;;  %v638_v42 = vld [vmem:[#allocation5 + $0xb58] sm:$0xff] }
 0x183   :  { %4798 = vmatprep.subr.mxu1 %v456_v43  ;;  %1021 = vmatprep.subr.mxu0 %v399_v44  ;;  %v6026_v43 = vld [vmem:[#allocation7 + $0xb0] sm:$0xff] }
 0x184   :  { %4799 = vmatpush3.msra.mxu1 %v344_v45  ;;  %1022 = vmatpush2.msra.mxu0 %v398_v46  ;;  %v6029_v44 = vld [vmem:[#allocation7 + $0x30] sm:$0xff]  ;;  %v6033_v46 = vld [vmem:[#allocation7 + $0xa8] sm:$0xff] }
 0x185   :  { %4800 = vmatprep.subr.mxu1 %v449_v47  ;;  %1023 = vmatprep.subr.mxu0 %v392_v48  ;;  %v631_v45 = vld [vmem:[#allocation5 + $0xb20] sm:$0xff]  ;;  %v6036_v47 = vld [vmem:[#allocation7 + $0x28] sm:$0xff]  ;;  %v624_v48 = vld [vmem:[#allocation5 + $0xae8] sm:$0xff] }
 0x186   :  { %4801 = vmatpush3.msra.mxu1 %v337_v49  ;;  %1024 = vmatpush2.msra.mxu0 %v391_v50  ;;  %v6040_v49 = vld [vmem:[#allocation7 + $0xa0] sm:$0xff] }
 0x187   :  { %4802 = vmatprep.subr.mxu1 %v442_v51  ;;  %1026 = vmatmul.mubr.f32.vlgmr.msra.gmra.mxu0 %v5934_v1  ;;  %v6043_v50 = vld [vmem:[#allocation7 + $0x20] sm:$0xff] }
 0x188   :  { %1173 = vmatprep.subr.mxu0 %v6866_v55  ;;  %4803 = vmatpush3.msra.mxu1 %v330_v53  ;;  %v617_v51 = vld [vmem:[#allocation5 + $0xab0] sm:$0xff]  ;;  %v6050_v53 = vld [vmem:[#allocation7 + $0x18] sm:$0xff] }
 0x189   :  { %1174 = vmatpush1.msra.mxu0 %v610_v52  ;;  %4804 = vmatprep.subr.mxu1 %v435_v54  ;;  %v6047_v52 = vld [vmem:[#allocation7 + $0x98] sm:$0xff]  ;;  %v6054_v54 = vld [vmem:[#allocation7 + $0x90] sm:$0xff] }
 0x18a   :  { %1175 = vmatprep.subr.mxu0 %v6866_v55  ;;  %4805 = vmatpush3.msra.mxu1 %v323_v57  ;;  %v6059_v57 = vld [vmem:[#allocation7 + $0x10] sm:$0xff] }
 0x18b   :  { %1176 = vmatpush1.msra.mxu0 %v603_v56  ;;  %4806 = vmatprep.subr.mxu1 %v428_v58  ;;  %v6056_v56 = vld [vmem:[#allocation7 + $0x1f8] sm:$0xff] }
 0x18c   :  { %1177 = vmatprep.subr.mxu0 %v6866_v55  ;;  %4807 = vmatpush3.msra.mxu1 %v316_v60  ;;  %v6061_v58 = vld [vmem:[#allocation7 + $0x178] sm:$0xff]  ;;  %v6067_v60 = vld [vmem:[#allocation7 + $0x1f0] sm:$0xff] }
 0x18d   :  { %1178 = vmatpush1.msra.mxu0 %v596_v59  ;;  %4808 = vmatprep.subr.mxu1 %v421_v61  ;;  %v6065_v59 = vld [vmem:[#allocation7 + $0x88] sm:$0xff] }
 0x18e   :  { %1179 = vmatprep.subr.mxu0 %v6866_v55  ;;  %4809 = vmatpush3.msra.mxu1 %v309_v63  ;;  %v6070_v61 = vld [vmem:[#allocation7 + $0x8] sm:$0xff]  ;;  %v6076_v63 = vld [vmem:[#allocation7 + $0x80] sm:$0xff] }
 0x18f   :  { %1180 = vmatpush1.msra.mxu0 %v589_v62  ;;  %4810 = vmatprep.subr.mxu1 %v414_v0  ;;  %v6073_v62 = vld [vmem:[#allocation7 + $0x170] sm:$0xff]  ;;  %v6082_v0 = vld [vmem:[#allocation7] sm:$0xff] }
 0x190   :  { %1181 = vmatprep.subr.mxu0 %v6866_v55  ;;  %4811 = vmatpush3.msra.mxu1 %v302_v3  ;;  %v6089_v3 = vld [vmem:[#allocation7 + $0x1e0] sm:$0xff] }
 0x191   :  { %1182 = vmatpush1.msra.mxu0 %v582_v2  ;;  %4812 = vmatprep.subr.mxu1 %v407_v4  ;;  %v6085_v2 = vld [vmem:[#allocation7 + $0x168] sm:$0xff]  ;;  %6943 = vst [vmem:[#allocation40_spill] sm:$0xff] %v6089_v3  ;;  %v6091_v4 = vld [vmem:[#allocation7 + $0x2f8] sm:$0xff] }
 0x192   :  { %1183 = vmatprep.subr.mxu0 %v6866_v55  ;;  %4813 = vmatpush3.msra.mxu1 %v295_v7  ;;  %6942 = vst [vmem:[#allocation39_spill] sm:$0xff] %v6085_v2  ;;  %v6099_v7 = vld [vmem:[#allocation7 + $0x1d8] sm:$0xff] }
 0x193   :  { %1184 = vmatpush1.msra.mxu0 %v575_v6  ;;  %4814 = vmatprep.subr.mxu1 %v400_v9  ;;  %v6095_v6 = vld [vmem:[#allocation7 + $0x160] sm:$0xff]  ;;  %6945 = vst [vmem:[#allocation42_spill] sm:$0xff] %v6099_v7  ;;  %v6102_v9 = vld [vmem:[#allocation7 + $0x158] sm:$0xff] }
 0x194   :  { %1185 = vmatprep.subr.mxu0 %v6866_v55  ;;  %4815 = vmatpush3.msra.mxu1 %v288_v11  ;;  %6944 = vst [vmem:[#allocation41_spill] sm:$0xff] %v6095_v6  ;;  %6946 = vst [vmem:[#allocation43_spill] sm:$0xff] %v6102_v9  ;;  %v6109_v11 = vld [vmem:[#allocation7 + $0x150] sm:$0xff] }
 0x195   :  { %1186 = vmatpush1.msra.mxu0 %v568_v10  ;;  %4816 = vmatprep.subr.mxu1 %v393_v12  ;;  %v6106_v10 = vld [vmem:[#allocation7 + $0x1d0] sm:$0xff]  ;;  %6948 = vst [vmem:[#allocation45_spill] sm:$0xff] %v6109_v11  ;;  %v6112_v12 = vld [vmem:[#allocation7 + $0x1c8] sm:$0xff] }
 0x196   :  { %1187 = vmatprep.subr.mxu0 %v6866_v55  ;;  %4817 = vmatpush3.msra.mxu1 %v281_v14  ;;  %6947 = vst [vmem:[#allocation44_spill] sm:$0xff] %v6106_v10  ;;  %6949 = vst [vmem:[#allocation46_spill] sm:$0xff] %v6112_v12  ;;  %v6118_v14 = vld [vmem:[#allocation7 + $0x1c0] sm:$0xff] }
 0x197   :  { %1188 = vmatpush1.msra.mxu0 %v561_v13  ;;  %1167 = vmatprep.mubr.f32.mxu1 %v5938_v8  ;;  %v533_v8 = vld [vmem:[#allocation5 + $0x810] sm:$0xff]  ;;  %v6115_v13 = vld [vmem:[#allocation7 + $0x148] sm:$0xff]  ;;  %6951 = vst [vmem:[#allocation48_spill] sm:$0xff] %v6118_v14 }
 0x198   :  { %1189 = vmatprep.subr.mxu0 %v6866_v55  ;;  %1168 = vmatmul.mubr.f32.vlgmr.msra.gmra.mxu1 %v5934_v1  ;;  %v5977_v1 = vld [vmem:[#allocation7 + $0xe8] sm:$0xff]  ;;  %6950 = vst [vmem:[#allocation47_spill] sm:$0xff] %v6115_v13 }
 0x199   :  { %1190 = vmatpush1.msra.mxu0 %v554_v15  ;;  %4762 = vmatprep.mubr.msk.f32.mxu0 %vm674_vm0, %v5927_v34  ;;  %v526_v34 = vld [vmem:[#allocation5 + $0x7d8] sm:$0xff]  ;;  %v6121_v15 = vld [vmem:[#allocation7 + $0x140] sm:$0xff] }
 0x19a   :  { %1191 = vmatprep.subr.mxu0 %v6866_v55  ;;  %4821 = vmatprep.subr.mxu1 %v5962_v17  ;;  %6952 = vst [vmem:[#allocation49_spill] sm:$0xff] %v6121_v15 }
 0x19b   :  { %1192 = vmatpush1.msra.mxu0 %v547_v16  ;;  %4822 = vmatpush3.msra.mxu1 %v5965_v18  ;;  %v6124_v16 = vld [vmem:[#allocation7 + $0x1b8] sm:$0xff] }
 0x19c   :  { %1193 = vmatprep.subr.mxu0 %v6866_v55  ;;  %4823 = vmatprep.subr.mxu1 %v5970_v20  ;;  %6953 = vst [vmem:[#allocation50_spill] sm:$0xff] %v6124_v16 }
 0x19d   :  { %1194 = vmatpush1.msra.mxu0 %v540_v19  ;;  %4824 = vmatpush3.msra.mxu1 %v5973_v21  ;;  %v6127_v19 = vld [vmem:[#allocation7 + $0x138] sm:$0xff] }
 0x19e   :  { %1195 = vmatprep.subr.mxu0 %v6866_v55  ;;  %4825 = vmatprep.subr.mxu1 %v5977_v1  ;;  %6954 = vst [vmem:[#allocation51_spill] sm:$0xff] %v6127_v19 }
 0x19f   :  { %1196 = vmatpush1.msra.mxu0 %v533_v8  ;;  %4826 = vmatpush3.msra.mxu1 %v5980_v22  ;;  %v6130_v8 = vld [vmem:[#allocation7 + $0x1b0] sm:$0xff] }
 0x1a0   :  { %1197 = vmatprep.subr.mxu0 %v6866_v55  ;;  %4827 = vmatprep.subr.mxu1 %v5984_v23  ;;  %6955 = vst [vmem:[#allocation52_spill] sm:$0xff] %v6130_v8 }
 0x1a1   :  { %1198 = vmatpush1.msra.mxu0 %v526_v34  ;;  %4828 = vmatpush3.msra.mxu1 %v5987_v24  ;;  %v6133_v34 = vld [vmem:[#allocation7 + $0x130] sm:$0xff] }
 0x1a2   :  { %1199 = vmatprep.subr.mxu0 %v6866_v55  ;;  %4829 = vmatprep.subr.mxu1 %v5991_v27  ;;  %6956 = vst [vmem:[#allocation53_spill] sm:$0xff] %v6133_v34 }
 0x1a3   :  { %1200 = vmatpush1.msra.mxu0 %v519_v26  ;;  %4830 = vmatpush3.msra.mxu1 %v5994_v28  ;;  %v6136_v26 = vld [vmem:[#allocation7 + $0x1a8] sm:$0xff] }
 0x1a4   :  { %1201 = vmatprep.subr.mxu0 %v6866_v55  ;;  %4831 = vmatprep.subr.mxu1 %v5998_v30  ;;  %6957 = vst [vmem:[#allocation54_spill] sm:$0xff] %v6136_v26 }
 0x1a5   :  { %1202 = vmatpush1.msra.mxu0 %v512_v29  ;;  %4832 = vmatpush3.msra.mxu1 %v6001_v31  ;;  %v6139_v29 = vld [vmem:[#allocation7 + $0x128] sm:$0xff] }
 0x1a6   :  { %1203 = vmatprep.subr.mxu0 %v6866_v55  ;;  %4833 = vmatprep.subr.mxu1 %v6005_v33  ;;  %6958 = vst [vmem:[#allocation55_spill] sm:$0xff] %v6139_v29 }
 0x1a7   :  { %1204 = vmatpush1.msra.mxu0 %v505_v32  ;;  %4834 = vmatpush3.msra.mxu1 %v6008_v35  ;;  %v6142_v32 = vld [vmem:[#allocation7 + $0x1a0] sm:$0xff] }
 0x1a8   :  { %1225 = vmatprep.subr.mxu0 %v6866_v55  ;;  %4835 = vmatprep.subr.mxu1 %v6012_v37  ;;  %6959 = vst [vmem:[#allocation56_spill] sm:$0xff] %v6142_v32 }
 0x1a9   :  { %1226 = vmatpush2.msra.mxu0 %v652_v36  ;;  %4836 = vmatpush3.msra.mxu1 %v6015_v38  ;;  %v6145_v36 = vld [vmem:[#allocation7 + $0x120] sm:$0xff] }
 0x1aa   :  { %1227 = vmatprep.subr.mxu0 %v6866_v55  ;;  %4837 = vmatprep.subr.mxu1 %v6019_v40  ;;  %6960 = vst [vmem:[#allocation57_spill] sm:$0xff] %v6145_v36 }
 0x1ab   :  { %1228 = vmatpush2.msra.mxu0 %v645_v39  ;;  %4838 = vmatpush3.msra.mxu1 %v6022_v41  ;;  %v6148_v39 = vld [vmem:[#allocation7 + $0x198] sm:$0xff] }
 0x1ac   :  { %1229 = vmatprep.subr.mxu0 %v6866_v55  ;;  %4839 = vmatprep.subr.mxu1 %v6026_v43  ;;  %6961 = vst [vmem:[#allocation58_spill] sm:$0xff] %v6148_v39 }
 0x1ad   :  { %1230 = vmatpush2.msra.mxu0 %v638_v42  ;;  %4840 = vmatpush3.msra.mxu1 %v6029_v44  ;;  %v6151_v42 = vld [vmem:[#allocation7 + $0x118] sm:$0xff] }
 0x1ae   :  { %1231 = vmatprep.subr.mxu0 %v6866_v55  ;;  %4841 = vmatprep.subr.mxu1 %v6033_v46  ;;  %6962 = vst [vmem:[#allocation59_spill] sm:$0xff] %v6151_v42 }
 0x1af   :  { %1232 = vmatpush2.msra.mxu0 %v631_v45  ;;  %4842 = vmatpush3.msra.mxu1 %v6036_v47  ;;  %v6154_v45 = vld [vmem:[#allocation7 + $0x190] sm:$0xff] }
 0x1b0   :  { %1233 = vmatprep.subr.mxu0 %v6866_v55  ;;  %4843 = vmatprep.subr.mxu1 %v6040_v49  ;;  %6963 = vst [vmem:[#allocation60_spill] sm:$0xff] %v6154_v45 }
 0x1b1   :  { %1234 = vmatpush2.msra.mxu0 %v624_v48  ;;  %4844 = vmatpush3.msra.mxu1 %v6043_v50  ;;  %v6157_v48 = vld [vmem:[#allocation7 + $0x110] sm:$0xff] }
 0x1b2   :  { %1235 = vmatprep.subr.mxu0 %v6866_v55  ;;  %4845 = vmatprep.subr.mxu1 %v6047_v52  ;;  %6964 = vst [vmem:[#allocation61_spill] sm:$0xff] %v6157_v48  ;;  %v6163_v55 = vld [vmem:[#allocation7 + $0x108] sm:$0xff] }
 0x1b3   :  { %1236 = vmatpush2.msra.mxu0 %v617_v51  ;;  %4846 = vmatpush3.msra.mxu1 %v6050_v53  ;;  %v6160_v51 = vld [vmem:[#allocation7 + $0x188] sm:$0xff]  ;;  %6966 = vst [vmem:[#allocation63_spill] sm:$0xff] %v6163_v55 }
 0x1b4   :  { %1238 = vmatmul.mubr.f32.vlgmr.msra.gmra.mxu0 %v5923_v25  ;;  %4847 = vmatprep.subr.mxu1 %v6054_v54  ;;  %v6079_v25 = vld [vmem:[#allocation7 + $0x1e8] sm:$0xff]  ;;  %6965 = vst [vmem:[#allocation62_spill] sm:$0xff] %v6160_v51 }
 0x1b5   :  { %4856 = vmatprep.subr.mxu0 %v6056_v56  ;;  %4848 = vmatpush3.msra.mxu1 %v6059_v57 }
 0x1b6   :  { %4857 = vmatpush3.msra.mxu0 %v6061_v58  ;;  %4849 = vmatprep.subr.mxu1 %v6065_v59 }
 0x1b7   :  { %4858 = vmatprep.subr.mxu0 %v6067_v60  ;;  %4850 = vmatpush3.msra.mxu1 %v6070_v61 }
 0x1b8   :  { %4859 = vmatpush3.msra.mxu0 %v6073_v62  ;;  %4851 = vmatprep.subr.mxu1 %v6076_v63 }
 0x1b9   :  { %4860 = vmatprep.subr.mxu0 %v6079_v25  ;;  %4852 = vmatpush3.msra.mxu1 %v6082_v0 }
 0x1ba   :  { %4861 = vmatpush3.msra.mxu0 %v6085_v2  ;;  %4891 = vmatprep.subr.mxu1 %v6091_v4 }
 0x1bb   :  { %4862 = vmatprep.subr.mxu0 %v6089_v3  ;;  %v6242_v3 = vld [vmem:[#allocation7 + $0x2a0] sm:$0xff] }
 0x1bc   :  { %4863 = vmatpush3.msra.mxu0 %v6095_v6  ;;  %v6239_v6 = vld [vmem:[#allocation7 + $0x228] sm:$0xff]  ;;  %6979 = vst [vmem:[#allocation75_spill] sm:$0xff] %v6242_v3 }
 0x1bd   :  { %4864 = vmatprep.subr.mxu0 %v6099_v7  ;;  %v6236_v7 = vld [vmem:[#allocation7 + $0x2a8] sm:$0xff]  ;;  %6978 = vst [vmem:[#allocation74_spill] sm:$0xff] %v6239_v6 }
 0x1be   :  { %4865 = vmatpush3.msra.mxu0 %v6102_v9  ;;  %v6233_v9 = vld [vmem:[#allocation7 + $0x230] sm:$0xff]  ;;  %6977 = vst [vmem:[#allocation73_spill] sm:$0xff] %v6236_v7 }
 0x1bf   :  { %4866 = vmatprep.subr.mxu0 %v6106_v10  ;;  %v6230_v10 = vld [vmem:[#allocation7 + $0x2b0] sm:$0xff]  ;;  %6976 = vst [vmem:[#allocation72_spill] sm:$0xff] %v6233_v9 }
 0x1c0   :  { %4867 = vmatpush3.msra.mxu0 %v6109_v11  ;;  %v6227_v11 = vld [vmem:[#allocation7 + $0x238] sm:$0xff]  ;;  %6975 = vst [vmem:[#allocation71_spill] sm:$0xff] %v6230_v10 }
 0x1c1   :  { %4868 = vmatprep.subr.mxu0 %v6112_v12  ;;  %v6224_v12 = vld [vmem:[#allocation7 + $0x2b8] sm:$0xff]  ;;  %6974 = vst [vmem:[#allocation70_spill] sm:$0xff] %v6227_v11 }
 0x1c2   :  { %4869 = vmatpush3.msra.mxu0 %v6115_v13  ;;  %v6221_v13 = vld [vmem:[#allocation7 + $0x240] sm:$0xff]  ;;  %6973 = vst [vmem:[#allocation69_spill] sm:$0xff] %v6224_v12 }
 0x1c3   :  { %4870 = vmatprep.subr.mxu0 %v6118_v14  ;;  %v6218_v14 = vld [vmem:[#allocation7 + $0x2c0] sm:$0xff]  ;;  %6972 = vst [vmem:[#allocation68_spill] sm:$0xff] %v6221_v13 }
 0x1c4   :  { %4871 = vmatpush3.msra.mxu0 %v6121_v15  ;;  %v6215_v15 = vld [vmem:[#allocation7 + $0x248] sm:$0xff]  ;;  %6971 = vst [vmem:[#allocation67_spill] sm:$0xff] %v6218_v14 }
 0x1c5   :  { %4872 = vmatprep.subr.mxu0 %v6124_v16  ;;  %v6212_v16 = vld [vmem:[#allocation7 + $0x2c8] sm:$0xff]  ;;  %6970 = vst [vmem:[#allocation66_spill] sm:$0xff] %v6215_v15 }
 0x1c6   :  { %4873 = vmatpush3.msra.mxu0 %v6127_v19  ;;  %v6209_v19 = vld [vmem:[#allocation7 + $0x250] sm:$0xff] }
 0x1c7   :  { %4874 = vmatprep.subr.mxu0 %v6130_v8  ;;  %v6206_v8 = vld [vmem:[#allocation7 + $0x2d0] sm:$0xff] }
 0x1c8   :  { %4875 = vmatpush3.msra.mxu0 %v6133_v34  ;;  %v6179_v34 = vld [vmem:[#allocation7 + $0x278] sm:$0xff] }
 0x1c9   :  { %4876 = vmatprep.subr.mxu0 %v6136_v26 }
 0x1ca   :  { %4877 = vmatpush3.msra.mxu0 %v6139_v29 }
 0x1cb   :  { %4878 = vmatprep.subr.mxu0 %v6142_v32 }
 0x1cc   :  { %4879 = vmatpush3.msra.mxu0 %v6145_v36  ;;  %v6169_v36 = vld [vmem:[#allocation7 + $0x100] sm:$0xff] }
 0x1cd   :  { %4880 = vmatprep.subr.mxu0 %v6148_v39  ;;  %6968 = vst [vmem:[#allocation65_spill] sm:$0xff] %v6169_v36  ;;  %v6969_v39 = vmov 0.0  }
 0x1ce   :  { %4881 = vmatpush3.msra.mxu0 %v6151_v42  ;;  %v814_v42 = vpop.f32.mrf.mxu1 }
 0x1cf   :  { %4882 = vmatprep.subr.mxu0 %v6154_v45 }
 0x1d0   :  { %4883 = vmatpush3.msra.mxu0 %v6157_v48  ;;  %v816_v32 = vpop.f32.mrf.mxu1 }
 0x1d1   :  { %4884 = vmatprep.subr.mxu0 %v6160_v51  ;;  %v6182_v51 = vld [vmem:[#allocation7 + $0x2f0] sm:$0xff] }
 0x1d2   :  { %4885 = vmatpush3.msra.mxu0 %v6163_v55  ;;  %v6203_v55 = vld [vmem:[#allocation7 + $0x258] sm:$0xff] }
 0x1d3   :  { %4886 = vmatprep.subr.mxu0 %v6166_v5  ;;  %v6185_v5 = vld [vmem:[#allocation7 + $0x270] sm:$0xff] }
 0x1d4   :  { %4887 = vmatpush3.msra.mxu0 %v6169_v36  ;;  %v6188_v36 = vld [vmem:[#allocation7 + $0x2e8] sm:$0xff] }
 0x1d5   :  { %5267 = vmatprep.subr.mxu0 %v6969_v39 }
 0x1d9   :  { %v743_v45 = vpop.f32.mrf.mxu0 }
 0x1da   :  { %v6177_v48 = vadd.f32 %v814_v42, %v743_v45  ;;  %v6197_v42 = vld [vmem:[#allocation7 + $0x260] sm:$0xff]  ;;  %v6200_v45 = vld [vmem:[#allocation7 + $0x2d8] sm:$0xff] }
 0x1db   :  { %v745_v29 = vpop.f32.mrf.mxu0 }
 0x1dc   :  { %v6175_v26 = vadd.f32 %v816_v32, %v745_v29  ;;  %v6191_v29 = vld [vmem:[#allocation7 + $0x268] sm:$0xff]  ;;  %v6194_v32 = vld [vmem:[#allocation7 + $0x2e0] sm:$0xff] }
 0x1de   :  { %1411 = vmatprep.mubr.f32.mxu1 %v6175_v26 }
 0x1df   :  { %1412 = vmatmul.mubr.f32.vlgmr.msra.gmra.mxu1 %v6177_v48 }
 0x1e0   :  { %4892 = vmatpush3.msra.mxu1 %v6179_v34 }
 0x1e1   :  { %4893 = vmatprep.subr.mxu1 %v6182_v51 }
 0x1e2   :  { %4894 = vmatpush3.msra.mxu1 %v6185_v5 }
 0x1e3   :  { %4895 = vmatprep.subr.mxu1 %v6188_v36 }
 0x1e4   :  { %4896 = vmatpush3.msra.mxu1 %v6191_v29 }
 0x1e5   :  { %4897 = vmatprep.subr.mxu1 %v6194_v32 }
 0x1e6   :  { %4898 = vmatpush3.msra.mxu1 %v6197_v42 }
 0x1e7   :  { %4899 = vmatprep.subr.mxu1 %v6200_v45 }
 0x1e8   :  { %4900 = vmatpush3.msra.mxu1 %v6203_v55 }
 0x1e9   :  { %4901 = vmatprep.subr.mxu1 %v6206_v8 }
 0x1ea   :  { %4902 = vmatpush3.msra.mxu1 %v6209_v19 }
 0x1eb   :  { %4903 = vmatprep.subr.mxu1 %v6212_v16 }
 0x1ec   :  { %4904 = vmatpush3.msra.mxu1 %v6215_v15  ;;  %v6279_v15 = vld [vmem:[#allocation7 + $0x318] sm:$0xff] }
 0x1ed   :  { %4905 = vmatprep.subr.mxu1 %v6218_v14  ;;  %6988 = vst [vmem:[#allocation84_spill] sm:$0xff] %v6279_v15 }
 0x1ee   :  { %4906 = vmatpush3.msra.mxu1 %v6221_v13  ;;  %v6245_v13 = vld [vmem:[#allocation7 + $0x220] sm:$0xff] }
 0x1ef   :  { %4907 = vmatprep.subr.mxu1 %v6224_v12  ;;  %6980 = vst [vmem:[#allocation76_spill] sm:$0xff] %v6245_v13  ;;  %v6248_v12 = vld [vmem:[#allocation7 + $0x298] sm:$0xff] }
 0x1f0   :  { %4908 = vmatpush3.msra.mxu1 %v6227_v11  ;;  %6981 = vst [vmem:[#allocation77_spill] sm:$0xff] %v6248_v12  ;;  %v6251_v11 = vld [vmem:[#allocation7 + $0x218] sm:$0xff] }
 0x1f1   :  { %4909 = vmatprep.subr.mxu1 %v6230_v10  ;;  %6982 = vst [vmem:[#allocation78_spill] sm:$0xff] %v6251_v11  ;;  %v6254_v10 = vld [vmem:[#allocation7 + $0x290] sm:$0xff] }
 0x1f2   :  { %4910 = vmatpush3.msra.mxu1 %v6233_v9  ;;  %6983 = vst [vmem:[#allocation79_spill] sm:$0xff] %v6254_v10  ;;  %v6257_v9 = vld [vmem:[#allocation7 + $0x210] sm:$0xff] }
 0x1f3   :  { %4911 = vmatprep.subr.mxu1 %v6236_v7  ;;  %6984 = vst [vmem:[#allocation80_spill] sm:$0xff] %v6257_v9  ;;  %v6260_v7 = vld [vmem:[#allocation7 + $0x288] sm:$0xff] }
 0x1f4   :  { %4912 = vmatpush3.msra.mxu1 %v6239_v6  ;;  %v6263_v6 = vld [vmem:[#allocation7 + $0x208] sm:$0xff] }
 0x1f5   :  { %4913 = vmatprep.subr.mxu1 %v6242_v3  ;;  %6985 = vst [vmem:[#allocation81_spill] sm:$0xff] %v6263_v6  ;;  %v6266_v3 = vld [vmem:[#allocation7 + $0x280] sm:$0xff] }
 0x1f6   :  { %4914 = vmatpush3.msra.mxu1 %v6245_v13  ;;  %v6269_v13 = vld [vmem:[#allocation7 + $0x200] sm:$0xff] }
 0x1f7   :  { %4915 = vmatprep.subr.mxu1 %v6248_v12  ;;  %6986 = vst [vmem:[#allocation82_spill] sm:$0xff] %v6269_v13 }
 0x1f8   :  { %4916 = vmatpush3.msra.mxu1 %v6251_v11 }
 0x1f9   :  { %4917 = vmatprep.subr.mxu1 %v6254_v10 }
 0x1fa   :  { %4918 = vmatpush3.msra.mxu1 %v6257_v9 }
 0x1fb   :  { %4919 = vmatprep.subr.mxu1 %v6260_v7 }
 0x1fc   :  { %4920 = vmatpush3.msra.mxu1 %v6263_v6  ;;  %v6283_v6 = vld [vmem:[#allocation7 + $0x310] sm:$0xff] }
 0x1fd   :  { %4921 = vmatprep.subr.mxu1 %v6266_v3  ;;  %6989 = vst [vmem:[#allocation85_spill] sm:$0xff] %v6283_v6 }
 0x1fe   :  { %4922 = vmatpush3.msra.mxu1 %v6269_v13 }
 0x1ff   :  { %4931 = vmatprep.subr.mxu1 %v5962_v17  ;;  %v6289_v17 = vld [vmem:[#allocation7 + $0x308] sm:$0xff] }
 0x206   :  { %v885_v11 = vpop.f32.mrf.mxu1 }
 0x207   :  { %v956_v10 = vpop.f32.mrf.mxu0 }
 0x208   :  { %v887_v12 = vpop.f32.mrf.mxu1  ;;  %v6277_v9 = vadd.f32 %v956_v10, %v885_v11  ;;  %v6293_v10 = vld [vmem:[#allocation7 + $0x300] sm:$0xff] }
 0x209   :  { %v958_v14 = vpop.f32.mrf.mxu0 }
 0x20a   :  { %v6275_v2 = vadd.f32 %v958_v14, %v887_v12  ;;  %6987 = vst [vmem:[#allocation83_spill] sm:$0xff] %v6277_v9 }
 0x20c   :  { %1481 = vmatprep.mubr.f32.mxu0 %v6275_v2 }
 0x20d   :  { %1482 = vmatmul.mubr.f32.vlgmr.msra.gmra.mxu0 %v6277_v9 }
 0x20e   :  { %5268 = vmatpush3.msra.mxu0 %v6279_v15  ;;  %5275 = vmatprep.mubr.msk.f32.mxu0 %vm5740_vm1, %v6969_v39 }
 0x20f   :  { %5269 = vmatprep.subr.mxu0 %v6969_v39 }
 0x210   :  { %5270 = vmatpush3.msra.mxu0 %v6283_v6  ;;  %v1637_v6 = vmul.f32 %v6175_v26, %v6175_v26 }
 0x211   :  { %5271 = vmatprep.subr.mxu0 %v6969_v39 }
 0x212   :  { %5272 = vmatpush3.msra.mxu0 %v6289_v17 }
 0x213   :  { %5273 = vmatprep.subr.mxu0 %v6969_v39 }
 0x214   :  { %5274 = vmatpush3.msra.mxu0 %v6293_v10 }
 0x215   :  { %4966 = vmatprep.subr.mxu0 %v6056_v56  ;;  %v7009_v56 = vld [vmem:[#allocation48_spill] sm:$0xff] }
 0x236   :  { %v1098_v11 = vpop.f32.mrf.mxu1 }
 0x238   :  { %v1100_v14 = vpop.f32.mrf.mxu1 }
 0x247   :  { %v1027_v12 = vpop.f32.mrf.mxu0 }
 0x248   :  { %v6301_v13 = vadd.f32 %v1098_v11, %v1027_v12  ;;  %v7033_v12 = vld [vmem:[#allocation64_spill] sm:$0xff] }
 0x249   :  { %v1029_v15 = vpop.f32.mrf.mxu0 }
 0x24a   :  { %v6299_v9 = vadd.f32 %v1100_v14, %v1029_v15  ;;  %v7021_v15 = vld [vmem:[#allocation81_spill] sm:$0xff] }
 0x24b   :  { %v7034_v14 = vld [vmem:[#allocation65_spill] sm:$0xff] }
 0x24c   :  { %1551 = vmatprep.mubr.f32.mxu1 %v6299_v9 }
 0x24d   :  { %1552 = vmatmul.mubr.f32.vlgmr.msra.gmra.mxu1 %v6301_v13 }
 0x24e   :  { %4932 = vmatpush3.msra.mxu1 %v5965_v18  ;;  %1710 = vmatprep.mubr.f32.mxu1 %v1637_v6  ;;  %v1636_v18 = vmul.f32 %v6177_v48, %v6177_v48  ;;  %v7020_v6 = vld [vmem:[#allocation54_spill] sm:$0xff] }
 0x24f   :  { %4933 = vmatprep.subr.mxu1 %v5970_v20 }
 0x250   :  { %4934 = vmatpush3.msra.mxu1 %v5973_v21  ;;  %v1641_v21 = vmul.f32 %v6299_v9, %v6299_v9 }
 0x251   :  { %4935 = vmatprep.subr.mxu1 %v5977_v1 }
 0x252   :  { %4936 = vmatpush3.msra.mxu1 %v5980_v22 }
 0x253   :  { %4937 = vmatprep.subr.mxu1 %v5984_v23 }
 0x254   :  { %4938 = vmatpush3.msra.mxu1 %v5987_v24 }
 0x255   :  { %4939 = vmatprep.subr.mxu1 %v5991_v27 }
 0x256   :  { %4940 = vmatpush3.msra.mxu1 %v5994_v28  ;;  %v6991_v28 = vld [vmem:[#allocation39_spill] sm:$0xff] }
 0x257   :  { %4941 = vmatprep.subr.mxu1 %v5998_v30  ;;  %v6992_v30 = vld [vmem:[#allocation67_spill] sm:$0xff] }
 0x258   :  { %4942 = vmatpush3.msra.mxu1 %v6001_v31  ;;  %v4818_v20 = vpop.f32.mrf.mxu1  ;;  %v6993_v31 = vld [vmem:[#allocation40_spill] sm:$0xff] }
 0x259   :  { %4943 = vmatprep.subr.mxu1 %v6005_v33  ;;  %v6994_v33 = vld [vmem:[#allocation68_spill] sm:$0xff] }
 0x25a   :  { %4944 = vmatpush3.msra.mxu1 %v6008_v35  ;;  %v4819_v1 = vpop.f32.mrf.mxu1  ;;  %v6995_v35 = vld [vmem:[#allocation41_spill] sm:$0xff] }
 0x25b   :  { %4945 = vmatprep.subr.mxu1 %v6012_v37  ;;  %v4820_v22 = vadd.f32 %v4819_v1, %v4818_v20  ;;  %v6996_v37 = vld [vmem:[#allocation69_spill] sm:$0xff]  ;;  %v6430_v1 = vld [vmem:[#allocation8 + $0x8] sm:$0xff] }
 0x25c   :  { %4946 = vmatpush3.msra.mxu1 %v6015_v38  ;;  %v6997_v38 = vld [vmem:[#allocation42_spill] sm:$0xff]  ;;  %v7036_v20 = vld [vmem:[#allocation85_spill] sm:$0xff] }
 0x25d   :  { %4947 = vmatprep.subr.mxu1 %v6019_v40  ;;  %v6998_v40 = vld [vmem:[#allocation70_spill] sm:$0xff] }
 0x25e   :  { %4948 = vmatpush3.msra.mxu1 %v6022_v41  ;;  %v6999_v41 = vld [vmem:[#allocation43_spill] sm:$0xff] }
 0x25f   :  { %4949 = vmatprep.subr.mxu1 %v6026_v43  ;;  %v7000_v43 = vld [vmem:[#allocation71_spill] sm:$0xff] }
 0x260   :  { %4950 = vmatpush3.msra.mxu1 %v6029_v44  ;;  %v7001_v44 = vld [vmem:[#allocation44_spill] sm:$0xff] }
 0x261   :  { %4951 = vmatprep.subr.mxu1 %v6033_v46  ;;  %v7002_v46 = vld [vmem:[#allocation72_spill] sm:$0xff] }
 0x262   :  { %4952 = vmatpush3.msra.mxu1 %v6036_v47  ;;  %v7003_v47 = vld [vmem:[#allocation45_spill] sm:$0xff] }
 0x263   :  { %4953 = vmatprep.subr.mxu1 %v6040_v49  ;;  %v7004_v49 = vld [vmem:[#allocation73_spill] sm:$0xff] }
 0x264   :  { %4954 = vmatpush3.msra.mxu1 %v6043_v50  ;;  %v7005_v50 = vld [vmem:[#allocation46_spill] sm:$0xff] }
 0x265   :  { %4955 = vmatprep.subr.mxu1 %v6047_v52  ;;  %v7006_v52 = vld [vmem:[#allocation74_spill] sm:$0xff] }
 0x266   :  { %4956 = vmatpush3.msra.mxu1 %v6050_v53  ;;  %v7007_v53 = vld [vmem:[#allocation47_spill] sm:$0xff] }
 0x267   :  { %4957 = vmatprep.subr.mxu1 %v6054_v54  ;;  %v7008_v54 = vld [vmem:[#allocation75_spill] sm:$0xff] }
 0x268   :  { %4958 = vmatpush3.msra.mxu1 %v6059_v57  ;;  %v7010_v57 = vld [vmem:[#allocation76_spill] sm:$0xff] }
 0x269   :  { %4959 = vmatprep.subr.mxu1 %v6065_v59  ;;  %v7012_v59 = vld [vmem:[#allocation77_spill] sm:$0xff] }
 0x26a   :  { %4960 = vmatpush3.msra.mxu1 %v6070_v61  ;;  %v7014_v61 = vld [vmem:[#allocation78_spill] sm:$0xff] }
 0x26b   :  { %4961 = vmatprep.subr.mxu1 %v6076_v63  ;;  %v7016_v63 = vld [vmem:[#allocation79_spill] sm:$0xff] }
 0x26c   :  { %4962 = vmatpush3.msra.mxu1 %v6082_v0  ;;  %v7018_v0 = vld [vmem:[#allocation80_spill] sm:$0xff] }
 0x26d   :  { %1711 = vmatmul.mubr.f32.vlgmr.msra.gmra.mxu1 %v1636_v18  ;;  %5001 = vmatprep.subr.mxu1 %v6091_v4  ;;  %v7019_v4 = vld [vmem:[#allocation53_spill] sm:$0xff]  ;;  %v7035_v18 = vld [vmem:[#allocation84_spill] sm:$0xff] }
 0x26e   :  { %5002 = vmatpush3.msra.mxu1 %v6179_v34  ;;  %1850 = vmatprep.mubr.f32.mxu1 %v1641_v21  ;;  %v7024_v34 = vld [vmem:[#allocation82_spill] sm:$0xff] }
 0x26f   :  { %5003 = vmatprep.subr.mxu1 %v6182_v51  ;;  %v7026_v51 = vld [vmem:[#allocation58_spill] sm:$0xff] }
 0x270   :  { %5004 = vmatpush3.msra.mxu1 %v6185_v5  ;;  %v1639_v5 = vmul.f32 %v6275_v2, %v6275_v2 }
 0x271   :  { %5005 = vmatprep.subr.mxu1 %v6188_v36  ;;  %v7025_v36 = vld [vmem:[#allocation57_spill] sm:$0xff] }
 0x272   :  { %5006 = vmatpush3.msra.mxu1 %v6191_v29  ;;  %v7028_v29 = vld [vmem:[#allocation60_spill] sm:$0xff] }
 0x273   :  { %5007 = vmatprep.subr.mxu1 %v6194_v32  ;;  %v7029_v32 = vld [vmem:[#allocation61_spill] sm:$0xff] }
 0x274   :  { %v1239_v23 = vpop.f32.mrf.mxu0  ;;  %5008 = vmatpush3.msra.mxu1 %v6197_v42  ;;  %v7030_v42 = vld [vmem:[#allocation62_spill] sm:$0xff] }
 0x275   :  { %v6349_v24 = vadd.f32 %v4820_v22, %v1239_v23  ;;  %5009 = vmatprep.subr.mxu1 %v6200_v45  ;;  %v7032_v45 = vld [vmem:[#allocation83_spill] sm:$0xff]  ;;  %v6432_v22 = vld [vmem:[#allocation8] sm:$0xff]  ;;  %v1946_v23 = vld [vmem:[#allocation8 + $0x18] sm:$0xff] }
 0x276   :  { %v1241_v27 = vpop.f32.mrf.mxu0  ;;  %5010 = vmatpush3.msra.mxu1 %v6203_v55  ;;  %v6990_v55 = vld [vmem:[#allocation66_spill] sm:$0xff]  ;;  %v1638_v11 = vmul.f32 %v7032_v45, %v7032_v45 }
 0x277   :  { %5276 = vmatmul.mubr.msk.f32.vlgmr.msra.gmra.mxu0 %vm1343_vm2, %v6349_v24  ;;  %5011 = vmatprep.subr.mxu1 %v6206_v8  ;;  %v7023_v8 = vld [vmem:[#allocation56_spill] sm:$0xff]  ;;  %v1642_v21 = vmul.f32 %v6349_v24, %v6349_v24 }
 0x278   :  { %4967 = vmatpush3.msra.mxu0 %v6061_v58  ;;  %1780 = vmatprep.mubr.f32.mxu0 %v1639_v5  ;;  %v7011_v58 = vld [vmem:[#allocation49_spill] sm:$0xff] }
 0x279   :  { %4968 = vmatprep.subr.mxu0 %v6067_v60  ;;  %5012 = vmatpush3.msra.mxu1 %v6209_v19  ;;  %v7013_v60 = vld [vmem:[#allocation50_spill] sm:$0xff]  ;;  %v1640_v19 = vmul.f32 %v6301_v13, %v6301_v13 }
 0x27a   :  { %4969 = vmatpush3.msra.mxu0 %v6073_v62  ;;  %5013 = vmatprep.subr.mxu1 %v6212_v16  ;;  %v7015_v62 = vld [vmem:[#allocation51_spill] sm:$0xff] }
 0x27b   :  { %4970 = vmatprep.subr.mxu0 %v6079_v25  ;;  %5014 = vmatpush3.msra.mxu1 %v6990_v55  ;;  %v7017_v25 = vld [vmem:[#allocation52_spill] sm:$0xff]  ;;  %v7022_v16 = vld [vmem:[#allocation55_spill] sm:$0xff] }
 0x27c   :  { %4971 = vmatpush3.msra.mxu0 %v6991_v28  ;;  %5015 = vmatprep.subr.mxu1 %v6992_v30 }
 0x27d   :  { %4972 = vmatprep.subr.mxu0 %v6993_v31  ;;  %5016 = vmatpush3.msra.mxu1 %v6994_v33 }
 0x27e   :  { %4973 = vmatpush3.msra.mxu0 %v6995_v35  ;;  %5017 = vmatprep.subr.mxu1 %v6996_v37 }
 0x27f   :  { %4974 = vmatprep.subr.mxu0 %v6997_v38  ;;  %5018 = vmatpush3.msra.mxu1 %v6998_v40 }
 0x280   :  { %4975 = vmatpush3.msra.mxu0 %v6999_v41  ;;  %5019 = vmatprep.subr.mxu1 %v7000_v43 }
 0x281   :  { %4976 = vmatprep.subr.mxu0 %v7001_v44  ;;  %5020 = vmatpush3.msra.mxu1 %v7002_v46 }
 0x282   :  { %4977 = vmatpush3.msra.mxu0 %v7003_v47  ;;  %5021 = vmatprep.subr.mxu1 %v7004_v49 }
 0x283   :  { %4978 = vmatprep.subr.mxu0 %v7005_v50  ;;  %5022 = vmatpush3.msra.mxu1 %v7006_v52 }
 0x284   :  { %4979 = vmatpush3.msra.mxu0 %v7007_v53  ;;  %5023 = vmatprep.subr.mxu1 %v7008_v54 }
 0x285   :  { %4980 = vmatprep.subr.mxu0 %v7009_v56  ;;  %5024 = vmatpush3.msra.mxu1 %v7010_v57 }
 0x286   :  { %4981 = vmatpush3.msra.mxu0 %v7011_v58  ;;  %5025 = vmatprep.subr.mxu1 %v7012_v59 }
 0x287   :  { %4982 = vmatprep.subr.mxu0 %v7013_v60  ;;  %5026 = vmatpush3.msra.mxu1 %v7014_v61 }
 0x288   :  { %4983 = vmatpush3.msra.mxu0 %v7015_v62  ;;  %5027 = vmatprep.subr.mxu1 %v7016_v63 }
 0x289   :  { %4984 = vmatprep.subr.mxu0 %v7017_v25  ;;  %5028 = vmatpush3.msra.mxu1 %v7018_v0 }
 0x28a   :  { %4985 = vmatpush3.msra.mxu0 %v7019_v4  ;;  %5029 = vmatprep.subr.mxu1 %v6260_v7  ;;  %v7027_v7 = vld [vmem:[#allocation59_spill] sm:$0xff] }
 0x28b   :  { %4986 = vmatprep.subr.mxu0 %v7020_v6  ;;  %5030 = vmatpush3.msra.mxu1 %v7021_v15 }
 0x28c   :  { %4987 = vmatpush3.msra.mxu0 %v7022_v16  ;;  %5031 = vmatprep.subr.mxu1 %v6266_v3  ;;  %v7031_v3 = vld [vmem:[#allocation63_spill] sm:$0xff] }
 0x28d   :  { %4988 = vmatprep.subr.mxu0 %v7023_v8  ;;  %5032 = vmatpush3.msra.mxu1 %v7024_v34 }
 0x28e   :  { %4989 = vmatpush3.msra.mxu0 %v7025_v36  ;;  %1851 = vmatmul.mubr.f32.vlgmr.msra.gmra.mxu1 %v1640_v19 }
 0x28f   :  { %4990 = vmatprep.subr.mxu0 %v7026_v51  ;;  %2375 = vmatprep.mubr.f32.mxu1 %v6969_v39 }
 0x290   :  { %4991 = vmatpush3.msra.mxu0 %v7027_v7  ;;  %2341 = vmatprep.subr.mxu1 %v1946_v23 }
 0x291   :  { %4992 = vmatprep.subr.mxu0 %v7028_v29 }
 0x292   :  { %4993 = vmatpush3.msra.mxu0 %v7029_v32 }
 0x293   :  { %4994 = vmatprep.subr.mxu0 %v7030_v42 }
 0x294   :  { %4995 = vmatpush3.msra.mxu0 %v7031_v3 }
 0x295   :  { %4996 = vmatprep.subr.mxu0 %v7033_v12  ;;  %v1936_v12 = vld [vmem:[#allocation10] sm:$0x1] }
 0x296   :  { %4997 = vmatpush3.msra.mxu0 %v7034_v14 }
 0x297   :  { %1781 = vmatmul.mubr.f32.vlgmr.msra.gmra.mxu0 %v1638_v11  ;;  %5278 = vmatprep.subr.mxu0 %v6969_v39 }
 0x298   :  { %5279 = vmatpush3.msra.mxu0 %v7035_v18  ;;  %5286 = vmatprep.mubr.msk.f32.mxu0 %vm5740_vm1, %v6969_v39 }
 0x299   :  { %5280 = vmatprep.subr.mxu0 %v6969_v39 }
 0x29a   :  { %5281 = vmatpush3.msra.mxu0 %v7036_v20  ;;  %v1948_v20 = vld [vmem:[#allocation8 + $0x28] sm:$0xff] }
 0x29b   :  { %5282 = vmatprep.subr.mxu0 %v6969_v39 }
 0x29c   :  { %5283 = vmatpush3.msra.mxu0 %v6289_v17  ;;  %v1945_v17 = vld [vmem:[#allocation8 + $0x10] sm:$0xff] }
 0x29d   :  { %5284 = vmatprep.subr.mxu0 %v6969_v39  ;;  %2342 = vmatpush1.msra.mxu1 %v1945_v17 }
 0x29e   :  { %5285 = vmatpush3.msra.mxu0 %v6293_v10  ;;  %5294 = vmatprep.subr.mxu1 %v6969_v39 }
 0x29f   :  { %5287 = vmatmul.mubr.msk.f32.vlgmr.msra.gmra.mxu0 %vm1343_vm2, %v1642_v21  ;;  %1984 = vmatprep.subr.mxu0 %v6430_v1  ;;  %v4853_v55 = vpop.f32.mrf.mxu1  ;;  %v1940_v21 = vld [vmem:[#allocation11] sm:$0x1] }
 0x2a0   :  { %2018 = vmatprep.mubr.f32.mxu0 %v6969_v39  ;;  %1985 = vmatpush1.msra.mxu0 %v6432_v22 }
 0x2a1   :  { %2055 = vmatprep.subr.mxu0 %v1946_v23  ;;  %v4854_v30 = vpop.f32.mrf.mxu1 }
 0x2a2   :  { %v4855_v37 = vadd.f32 %v4854_v30, %v4853_v55  ;;  %v2789_v55 = vld [vmem:[#allocation13 + $0x5e8] sm:$0xff]  ;;  %v2784_v30 = vld [vmem:[#allocation13 + $0x5c0] sm:$0xff] }
 0x2cd   :  { %v4888_v10 = vpop.f32.mrf.mxu0 }
 0x2cf   :  { %v4889_v27 = vpop.f32.mrf.mxu0 }
 0x2d0   :  { %v4890_v35 = vadd.f32 %v4889_v27, %v4888_v10  ;;  %v1947_v10 = vld [vmem:[#allocation8 + $0x20] sm:$0xff] }
 0x2d2   :  { %v1484_v40 = vadd.f32 %v4890_v35, %v4855_v37  ;;  %v2777_v35 = vld [vmem:[#allocation13 + $0x588] sm:$0xff]  ;;  %v2776_v37 = vld [vmem:[#allocation13 + $0x580] sm:$0xff] }
 0x30d   :  { %v4923_v31 = vpop.f32.mrf.mxu1 }
 0x30f   :  { %v4924_v33 = vpop.f32.mrf.mxu1 }
 0x310   :  { %v4925_v38 = vadd.f32 %v4924_v33, %v4923_v31  ;;  %v2781_v31 = vld [vmem:[#allocation13 + $0x5a8] sm:$0xff]  ;;  %v2780_v33 = vld [vmem:[#allocation13 + $0x5a0] sm:$0xff] }
 0x312   :  { %v1554_v41 = vadd.f32 %v4925_v38, %v1484_v40  ;;  %v2661_v38 = vld [vmem:[#allocation13 + $0x1e8] sm:$0xff]  ;;  %v2772_v40 = vld [vmem:[#allocation13 + $0x560] sm:$0xff] }
 0x32d   :  { %v4963_v44 = vpop.f32.mrf.mxu1 }
 0x32f   :  { %v4964_v47 = vpop.f32.mrf.mxu1 }
 0x330   :  { %v4965_v57 = vadd.f32 %v4964_v47, %v4963_v44  ;;  %v2657_v44 = vld [vmem:[#allocation13 + $0x1c8] sm:$0xff]  ;;  %v2656_v47 = vld [vmem:[#allocation13 + $0x1c0] sm:$0xff] }
 0x337   :  { %v1623_v5 = vpop.f32.mrf.mxu0 }
 0x338   :  { %v1624_v43 = vadd.f32 %v1623_v5, %v1554_v41  ;;  %v1949_v5 = vld [vmem:[#allocation8 + $0x30] sm:$0xff]  ;;  %v2769_v41 = vld [vmem:[#allocation13 + $0x548] sm:$0xff] }
 0x339   :  { %v5277_v28 = vpop.f32.mrf.mxu0 }
 0x33a   :  { %v1628_v46 = vsel %vm1627_vm3, %v1624_v43, 0.0  ;;  %v2785_v28 = vld [vmem:[#allocation13 + $0x5c8] sm:$0xff]  ;;  %v2768_v43 = vld [vmem:[#allocation13 + $0x540] sm:$0xff] }
 0x33b   :  { %v1629_v49 = vrot.slane %v1628_v46, 4 }
 0x33d   :  { %v1630_v52 = vadd.f32 %v1629_v49, %v1628_v46  ;;  %v2765_v46 = vld [vmem:[#allocation13 + $0x528] sm:$0xff]  ;;  %v2764_v49 = vld [vmem:[#allocation13 + $0x520] sm:$0xff] }
 0x33f   :  { %v1631_v59 = vrot.slane %v1630_v52, 2 }
 0x341   :  { %v1632_v63 = vadd.f32 %v1631_v59, %v1630_v52  ;;  %v2761_v52 = vld [vmem:[#allocation13 + $0x508] sm:$0xff]  ;;  %v2756_v59 = vld [vmem:[#allocation13 + $0x4e0] sm:$0xff] }
 0x343   :  { %v1633_v15 = vrot.slane %v1632_v63, 1 }
 0x345   :  { %v1634_v8 = vadd.f32 %v1633_v15, %v1632_v63  ;;  %v2752_v63 = vld [vmem:[#allocation13 + $0x4c0] sm:$0xff]  ;;  %v2637_v15 = vld [vmem:[#allocation13 + $0x128] sm:$0xff] }
 0x347   :  { %v1635_v51 = vmul.f32 0.5, %v1634_v8  ;;  %v2744_v8 = vld [vmem:[#allocation13 + $0x480] sm:$0xff] }
 0x349   :  { %v1934_v32 = vmul.f32 %v1635_v51, %v1635_v51 }
 0x34e   :  { %v5033_v50 = vpop.f32.mrf.mxu1 }
 0x350   :  { %v5034_v54 = vpop.f32.mrf.mxu1 }
 0x351   :  { %v5035_v60 = vadd.f32 %v5034_v54, %v5033_v50  ;;  %v2653_v50 = vld [vmem:[#allocation13 + $0x1a8] sm:$0xff]  ;;  %v2760_v54 = vld [vmem:[#allocation13 + $0x500] sm:$0xff] }
 0x357   :  { %v4998_v53 = vpop.f32.mrf.mxu0 }
 0x359   :  { %v4999_v56 = vpop.f32.mrf.mxu0 }
 0x35a   :  { %v5000_v58 = vadd.f32 %v4999_v56, %v4998_v53  ;;  %v2652_v53 = vld [vmem:[#allocation13 + $0x1a0] sm:$0xff]  ;;  %v2649_v56 = vld [vmem:[#allocation13 + $0x188] sm:$0xff] }
 0x35c   :  { %v1783_v61 = vadd.f32 %v5000_v58, %v4965_v57  ;;  %v2757_v57 = vld [vmem:[#allocation13 + $0x4e8] sm:$0xff]  ;;  %v2648_v58 = vld [vmem:[#allocation13 + $0x180] sm:$0xff] }
 0x35e   :  { %v1853_v62 = vadd.f32 %v5035_v60, %v1783_v61  ;;  %v2645_v60 = vld [vmem:[#allocation13 + $0x168] sm:$0xff] }
 0x35f   :  { %v1922_v25 = vpop.f32.mrf.mxu0  ;;  %v2753_v61 = vld [vmem:[#allocation13 + $0x4c8] sm:$0xff] }
 0x360   :  { %v1923_v0 = vadd.f32 %v1922_v25, %v1853_v62  ;;  %v2644_v62 = vld [vmem:[#allocation13 + $0x160] sm:$0xff]  ;;  %v2641_v25 = vld [vmem:[#allocation13 + $0x148] sm:$0xff] }
 0x361   :  { %v5288_v4 = vpop.f32.mrf.mxu0 }
 0x362   :  { %v1926_v6 = vsel %vm1627_vm3, %v1923_v0, 0.0  ;;  %v2749_v0 = vld [vmem:[#allocation13 + $0x4a8] sm:$0xff]  ;;  %v2640_v4 = vld [vmem:[#allocation13 + $0x140] sm:$0xff] }
 0x363   :  { %v1927_v16 = vrot.slane %v1926_v6, 4 }
 0x365   :  { %v1928_v19 = vadd.f32 %v1927_v16, %v1926_v6  ;;  %v2748_v6 = vld [vmem:[#allocation13 + $0x4a0] sm:$0xff]  ;;  %v2745_v16 = vld [vmem:[#allocation13 + $0x488] sm:$0xff] }
 0x367   :  { %v1929_v34 = vrot.slane %v1928_v19, 2 }
 0x369   :  { %v1930_v36 = vadd.f32 %v1929_v34, %v1928_v19  ;;  %v2636_v19 = vld [vmem:[#allocation13 + $0x120] sm:$0xff]  ;;  %v2633_v34 = vld [vmem:[#allocation13 + $0x108] sm:$0xff] }
 0x36b   :  { %v1931_v7 = vrot.slane %v1930_v36, 1 }
 0x36d   :  { %v1932_v29 = vadd.f32 %v1931_v7, %v1930_v36  ;;  %v2741_v36 = vld [vmem:[#allocation13 + $0x468] sm:$0xff]  ;;  %v2740_v7 = vld [vmem:[#allocation13 + $0x460] sm:$0xff] }
 0x36f   :  { %v1933_v42 = vmul.f32 0.5, %v1932_v29  ;;  %v2629_v29 = vld [vmem:[#allocation13 + $0xe8] sm:$0xff] }
 0x371   :  { %v1935_v3 = vsub.f32 %v1933_v42, %v1934_v32  ;;  %v2737_v32 = vld [vmem:[#allocation13 + $0x448] sm:$0xff]  ;;  %v2628_v42 = vld [vmem:[#allocation13 + $0xe0] sm:$0xff] }
 0x373   :  { %v1937_v11 = vadd.f32 1e-05, %v1935_v3  ;;  %v2736_v3 = vld [vmem:[#allocation13 + $0x440] sm:$0xff] }
 0x375   :  { %5353 = vrsqrt.f32 %v1937_v11  ;;  %v2625_v11 = vld [vmem:[#allocation13 + $0xc8] sm:$0xff] }
 0x382   :  { %v5354_v14 = vpop.eup %5353 }
 0x383   :  { %v1939_v18 = vmul.f32 %v5354_v14, %v1936_v12  ;;  %v2733_v12 = vld [vmem:[#allocation13 + $0x428] sm:$0xff]  ;;  %v2624_v14 = vld [vmem:[#allocation13 + $0xc0] sm:$0xff] }
 0x385   :  { %4765 = vmatmul.mubr.msk.f32.vlgmr.msra.gmra.mxu0 %vm1950_vm4, %v1939_v18  ;;  %v1941_v23 = vmul.f32 %v1939_v18, %v1635_v51  ;;  %v2632_v51 = vld [vmem:[#allocation13 + $0x100] sm:$0xff] }
 0x386   :  { %2056 = vmatpush1.msra.mxu0 %v1945_v17  ;;  %2089 = vmatprep.mubr.f32.mxu0 %v6969_v39  ;;  %v2788_v17 = vld [vmem:[#allocation13 + $0x5e0] sm:$0xff] }
 0x387   :  { %2126 = vmatprep.subr.mxu0 %v1948_v20  ;;  %v1942_v27 = vsub.f32 %v1940_v21, %v1941_v23  ;;  %v2729_v21 = vld [vmem:[#allocation13 + $0x408] sm:$0xff]  ;;  %v2620_v23 = vld [vmem:[#allocation13 + $0xa0] sm:$0xff] }
 0x389   :  { %4766 = vmatmul.mubr.msk.f32.vlgmr.msra.gmra.mxu0 %vm1950_vm4, %v1939_v18  ;;  %4770 = vmatmul.mubr.msk.f32.vlgmr.msra.gmra.mxu1 %vm1950_vm4, %v1942_v27 }
 0x38a   :  { %2127 = vmatpush1.msra.mxu0 %v1947_v10  ;;  %2160 = vmatprep.mubr.f32.mxu0 %v6969_v39 }
 0x38b   :  { %5289 = vmatprep.subr.mxu0 %v6969_v39  ;;  %5295 = vmatpush3.msra.mxu1 %v1949_v5 }
 0x38c   :  { %5296 = vmatprep.mubr.msk.f32.mxu1 %vm5740_vm1, %v6969_v39  ;;  %3074 = vmatprep.subr.mxu1 %v2789_v55  ;;  %v2616_v55 = vld [vmem:[#allocation13 + $0x80] sm:$0xff] }
 0x38d   :  { %4767 = vmatmul.mubr.msk.f32.vlgmr.msra.gmra.mxu0 %vm1950_vm4, %v1939_v18  ;;  %5297 = vmatmul.mubr.msk.f32.vlgmr.msra.gmra.mxu1 %vm1950_vm4, %v1942_v27 }
 0x38e   :  { %5290 = vmatpush3.msra.mxu0 %v1949_v5  ;;  %5291 = vmatprep.mubr.msk.f32.mxu0 %vm5740_vm1, %v6969_v39  ;;  %v2853_v5 = vld [vmem:[#allocation13 + $0x7e8] sm:$0xff] }
 0x38f   :  { %2270 = vmatprep.subr.mxu0 %v6430_v1  ;;  %3075 = vmatpush1.msra.mxu1 %v2788_v17  ;;  %v2773_v1 = vld [vmem:[#allocation13 + $0x568] sm:$0xff]  ;;  %v2852_v17 = vld [vmem:[#allocation13 + $0x7e0] sm:$0xff] }
 0x390   :  { %3076 = vmatprep.subr.mxu1 %v2785_v28  ;;  %v2613_v28 = vld [vmem:[#allocation13 + $0x68] sm:$0xff] }
 0x391   :  { %5292 = vmatmul.mubr.msk.f32.vlgmr.msra.gmra.mxu0 %vm1950_vm4, %v1939_v18  ;;  %3077 = vmatpush1.msra.mxu1 %v2784_v30  ;;  %v2732_v18 = vld [vmem:[#allocation13 + $0x420] sm:$0xff]  ;;  %v2849_v30 = vld [vmem:[#allocation13 + $0x7c8] sm:$0xff] }
 0x392   :  { %2271 = vmatpush1.msra.mxu0 %v6432_v22  ;;  %2304 = vmatprep.mubr.f32.mxu0 %v6969_v39  ;;  %v2660_v22 = vld [vmem:[#allocation13 + $0x1e0] sm:$0xff] }
 0x393   :  { %2412 = vmatprep.subr.mxu0 %v1948_v20  ;;  %3078 = vmatprep.subr.mxu1 %v2781_v31  ;;  %v2621_v20 = vld [vmem:[#allocation13 + $0xa8] sm:$0xff]  ;;  %v2612_v31 = vld [vmem:[#allocation13 + $0x60] sm:$0xff] }
 0x394   :  { %3079 = vmatpush1.msra.mxu1 %v2780_v33  ;;  %v2848_v33 = vld [vmem:[#allocation13 + $0x7c0] sm:$0xff] }
 0x395   :  { %4769 = vmatmul.mubr.msk.f32.vlgmr.msra.gmra.mxu0 %vm1950_vm4, %v1942_v27  ;;  %3080 = vmatprep.subr.mxu1 %v2777_v35  ;;  %v2609_v35 = vld [vmem:[#allocation13 + $0x48] sm:$0xff] }
 0x396   :  { %2413 = vmatpush1.msra.mxu0 %v1947_v10  ;;  %2446 = vmatprep.mubr.f32.mxu0 %v6969_v39  ;;  %v2728_v10 = vld [vmem:[#allocation13 + $0x400] sm:$0xff] }
 0x397   :  { %3081 = vmatpush1.msra.mxu1 %v2776_v37  ;;  %3003 = vmatprep.subr.mxu0 %v2661_v38  ;;  %v2845_v37 = vld [vmem:[#allocation13 + $0x7a8] sm:$0xff]  ;;  %v2608_v38 = vld [vmem:[#allocation13 + $0x40] sm:$0xff] }
 0x398   :  { %3082 = vmatprep.subr.mxu1 %v2773_v1  ;;  %v2844_v1 = vld [vmem:[#allocation13 + $0x7a0] sm:$0xff] }
 0x399   :  { %4771 = vmatmul.mubr.msk.f32.vlgmr.msra.gmra.mxu0 %vm1950_vm4, %v1942_v27  ;;  %3083 = vmatpush1.msra.mxu1 %v2772_v40  ;;  %v2617_v27 = vld [vmem:[#allocation13 + $0x88] sm:$0xff] }
 0x39a   :  { %3084 = vmatprep.subr.mxu1 %v2769_v41  ;;  %3004 = vmatpush1.msra.mxu0 %v2660_v22  ;;  %v2605_v40 = vld [vmem:[#allocation13 + $0x28] sm:$0xff]  ;;  %v2604_v22 = vld [vmem:[#allocation13 + $0x20] sm:$0xff] }
 0x39b   :  { %3085 = vmatpush1.msra.mxu1 %v2768_v43  ;;  %3005 = vmatprep.subr.mxu0 %v2657_v44  ;;  %v2841_v41 = vld [vmem:[#allocation13 + $0x788] sm:$0xff]  ;;  %v2840_v43 = vld [vmem:[#allocation13 + $0x780] sm:$0xff] }
 0x39c   :  { %3086 = vmatprep.subr.mxu1 %v2765_v46  ;;  %3006 = vmatpush1.msra.mxu0 %v2656_v47  ;;  %v2601_v44 = vld [vmem:[#allocation13 + $0x8] sm:$0xff]  ;;  %v2600_v47 = vld [vmem:[#allocation13] sm:$0xff] }
 0x39d   :  { %3087 = vmatpush1.msra.mxu1 %v2764_v49  ;;  %3007 = vmatprep.subr.mxu0 %v2653_v50  ;;  %v2837_v46 = vld [vmem:[#allocation13 + $0x768] sm:$0xff]  ;;  %v2836_v49 = vld [vmem:[#allocation13 + $0x760] sm:$0xff] }
 0x39e   :  { %3088 = vmatprep.subr.mxu1 %v2761_v52  ;;  %3008 = vmatpush1.msra.mxu0 %v2652_v53  ;;  %v2725_v50 = vld [vmem:[#allocation13 + $0x3e8] sm:$0xff]  ;;  %v2724_v53 = vld [vmem:[#allocation13 + $0x3e0] sm:$0xff] }
 0x39f   :  { %3089 = vmatpush1.msra.mxu1 %v2760_v54  ;;  %3009 = vmatprep.subr.mxu0 %v2649_v56  ;;  %v2833_v52 = vld [vmem:[#allocation13 + $0x748] sm:$0xff]  ;;  %v2832_v54 = vld [vmem:[#allocation13 + $0x740] sm:$0xff] }
 0x3a0   :  { %3090 = vmatprep.subr.mxu1 %v2757_v57  ;;  %3010 = vmatpush1.msra.mxu0 %v2648_v58  ;;  %v2721_v56 = vld [vmem:[#allocation13 + $0x3c8] sm:$0xff]  ;;  %v2720_v58 = vld [vmem:[#allocation13 + $0x3c0] sm:$0xff] }
 0x3a1   :  { %3091 = vmatpush1.msra.mxu1 %v2756_v59  ;;  %3011 = vmatprep.subr.mxu0 %v2645_v60  ;;  %v2829_v57 = vld [vmem:[#allocation13 + $0x728] sm:$0xff]  ;;  %v2828_v59 = vld [vmem:[#allocation13 + $0x720] sm:$0xff] }
 0x3a2   :  { %3092 = vmatprep.subr.mxu1 %v2753_v61  ;;  %3012 = vmatpush1.msra.mxu0 %v2644_v62  ;;  %v2717_v60 = vld [vmem:[#allocation13 + $0x3a8] sm:$0xff]  ;;  %v2716_v62 = vld [vmem:[#allocation13 + $0x3a0] sm:$0xff] }
 0x3a3   :  { %3093 = vmatpush1.msra.mxu1 %v2752_v63  ;;  %3013 = vmatprep.subr.mxu0 %v2641_v25  ;;  %v2825_v61 = vld [vmem:[#allocation13 + $0x708] sm:$0xff]  ;;  %v2824_v63 = vld [vmem:[#allocation13 + $0x700] sm:$0xff] }
 0x3a4   :  { %3094 = vmatprep.subr.mxu1 %v2749_v0  ;;  %3014 = vmatpush1.msra.mxu0 %v2640_v4  ;;  %v2713_v25 = vld [vmem:[#allocation13 + $0x388] sm:$0xff]  ;;  %v2712_v4 = vld [vmem:[#allocation13 + $0x380] sm:$0xff] }
 0x3a5   :  { %3095 = vmatpush1.msra.mxu1 %v2748_v6  ;;  %3015 = vmatprep.subr.mxu0 %v2637_v15  ;;  %v2821_v0 = vld [vmem:[#allocation13 + $0x6e8] sm:$0xff]  ;;  %v2820_v6 = vld [vmem:[#allocation13 + $0x6e0] sm:$0xff] }
 0x3a6   :  { %3096 = vmatprep.subr.mxu1 %v2745_v16  ;;  %3016 = vmatpush1.msra.mxu0 %v2636_v19  ;;  %v2709_v15 = vld [vmem:[#allocation13 + $0x368] sm:$0xff]  ;;  %v2708_v19 = vld [vmem:[#allocation13 + $0x360] sm:$0xff] }
 0x3a7   :  { %3097 = vmatpush1.msra.mxu1 %v2744_v8  ;;  %3017 = vmatprep.subr.mxu0 %v2633_v34  ;;  %v2817_v16 = vld [vmem:[#allocation13 + $0x6c8] sm:$0xff]  ;;  %v2816_v8 = vld [vmem:[#allocation13 + $0x6c0] sm:$0xff] }
 0x3a8   :  { %3098 = vmatprep.subr.mxu1 %v2741_v36  ;;  %3018 = vmatpush1.msra.mxu0 %v2632_v51  ;;  %v2705_v34 = vld [vmem:[#allocation13 + $0x348] sm:$0xff]  ;;  %v2704_v51 = vld [vmem:[#allocation13 + $0x340] sm:$0xff] }
 0x3a9   :  { %3099 = vmatpush1.msra.mxu1 %v2740_v7  ;;  %3019 = vmatprep.subr.mxu0 %v2629_v29  ;;  %v2813_v36 = vld [vmem:[#allocation13 + $0x6a8] sm:$0xff]  ;;  %v2812_v7 = vld [vmem:[#allocation13 + $0x6a0] sm:$0xff] }
 0x3aa   :  { %3100 = vmatprep.subr.mxu1 %v2737_v32  ;;  %3020 = vmatpush1.msra.mxu0 %v2628_v42  ;;  %v2701_v29 = vld [vmem:[#allocation13 + $0x328] sm:$0xff]  ;;  %v2700_v42 = vld [vmem:[#allocation13 + $0x320] sm:$0xff] }
 0x3ab   :  { %3101 = vmatpush1.msra.mxu1 %v2736_v3  ;;  %3021 = vmatprep.subr.mxu0 %v2625_v11  ;;  %v2809_v32 = vld [vmem:[#allocation13 + $0x688] sm:$0xff]  ;;  %v2808_v3 = vld [vmem:[#allocation13 + $0x680] sm:$0xff] }
 0x3ac   :  { %3102 = vmatprep.subr.mxu1 %v2733_v12  ;;  %3022 = vmatpush1.msra.mxu0 %v2624_v14  ;;  %v2697_v11 = vld [vmem:[#allocation13 + $0x308] sm:$0xff]  ;;  %v2696_v14 = vld [vmem:[#allocation13 + $0x300] sm:$0xff] }
 0x3ad   :  { %3103 = vmatpush1.msra.mxu1 %v2732_v18  ;;  %3023 = vmatprep.subr.mxu0 %v2621_v20  ;;  %v2805_v12 = vld [vmem:[#allocation13 + $0x668] sm:$0xff]  ;;  %v2804_v18 = vld [vmem:[#allocation13 + $0x660] sm:$0xff] }
 0x3ae   :  { %3104 = vmatprep.subr.mxu1 %v2729_v21  ;;  %3024 = vmatpush1.msra.mxu0 %v2620_v23  ;;  %v2693_v20 = vld [vmem:[#allocation13 + $0x2e8] sm:$0xff]  ;;  %v2692_v23 = vld [vmem:[#allocation13 + $0x2e0] sm:$0xff] }
 0x3af   :  { %3105 = vmatpush1.msra.mxu1 %v2728_v10  ;;  %3025 = vmatprep.subr.mxu0 %v2617_v27  ;;  %v2801_v21 = vld [vmem:[#allocation13 + $0x648] sm:$0xff]  ;;  %v2800_v10 = vld [vmem:[#allocation13 + $0x640] sm:$0xff] }
 0x3b0   :  { %3106 = vmatprep.subr.mxu1 %v2853_v5  ;;  %3026 = vmatpush1.msra.mxu0 %v2616_v55  ;;  %v2689_v27 = vld [vmem:[#allocation13 + $0x2c8] sm:$0xff]  ;;  %v2688_v55 = vld [vmem:[#allocation13 + $0x2c0] sm:$0xff] }
 0x3b1   :  { %3107 = vmatpush2.msra.mxu1 %v2852_v17  ;;  %3027 = vmatprep.subr.mxu0 %v2613_v28  ;;  %v2797_v5 = vld [vmem:[#allocation13 + $0x628] sm:$0xff]  ;;  %v2796_v17 = vld [vmem:[#allocation13 + $0x620] sm:$0xff] }
 0x3b2   :  { %3108 = vmatprep.subr.mxu1 %v2849_v30  ;;  %3028 = vmatpush1.msra.mxu0 %v2612_v31  ;;  %v2685_v28 = vld [vmem:[#allocation13 + $0x2a8] sm:$0xff]  ;;  %v2684_v31 = vld [vmem:[#allocation13 + $0x2a0] sm:$0xff] }
 0x3b3   :  { %3109 = vmatpush2.msra.mxu1 %v2848_v33  ;;  %3029 = vmatprep.subr.mxu0 %v2609_v35  ;;  %v2793_v30 = vld [vmem:[#allocation13 + $0x608] sm:$0xff]  ;;  %v2792_v33 = vld [vmem:[#allocation13 + $0x600] sm:$0xff] }
 0x3b4   :  { %3110 = vmatprep.subr.mxu1 %v2845_v37  ;;  %3030 = vmatpush1.msra.mxu0 %v2608_v38  ;;  %v2681_v35 = vld [vmem:[#allocation13 + $0x288] sm:$0xff]  ;;  %v2680_v38 = vld [vmem:[#allocation13 + $0x280] sm:$0xff] }
 0x3b5   :  { %3111 = vmatpush2.msra.mxu1 %v2844_v1  ;;  %3031 = vmatprep.subr.mxu0 %v2605_v40  ;;  %v2997_v37 = vld [vmem:[#allocation13 + $0xc68] sm:$0xff]  ;;  %v2676_v40 = vld [vmem:[#allocation13 + $0x260] sm:$0xff] }
 0x3b6   :  { %3112 = vmatprep.subr.mxu1 %v2841_v41  ;;  %3032 = vmatpush1.msra.mxu0 %v2604_v22  ;;  %v2677_v1 = vld [vmem:[#allocation13 + $0x268] sm:$0xff]  ;;  %v2672_v22 = vld [vmem:[#allocation13 + $0x240] sm:$0xff] }
 0x3b7   :  { %3113 = vmatpush2.msra.mxu1 %v2840_v43  ;;  %3033 = vmatprep.subr.mxu0 %v2601_v44  ;;  %v2673_v41 = vld [vmem:[#allocation13 + $0x248] sm:$0xff]  ;;  %v2668_v44 = vld [vmem:[#allocation13 + $0x220] sm:$0xff] }
 0x3b8   :  { %3114 = vmatprep.subr.mxu1 %v2837_v46  ;;  %3034 = vmatpush1.msra.mxu0 %v2600_v47  ;;  %v2669_v43 = vld [vmem:[#allocation13 + $0x228] sm:$0xff]  ;;  %v2664_v47 = vld [vmem:[#allocation13 + $0x200] sm:$0xff] }
 0x3b9   :  { %3115 = vmatpush2.msra.mxu1 %v2836_v49  ;;  %3035 = vmatprep.subr.mxu0 %v2725_v50  ;;  %v2665_v46 = vld [vmem:[#allocation13 + $0x208] sm:$0xff] }
 0x3ba   :  { %3116 = vmatprep.subr.mxu1 %v2833_v52  ;;  %3036 = vmatpush2.msra.mxu0 %v2724_v53  ;;  %v2917_v49 = vld [vmem:[#allocation13 + $0x9e8] sm:$0xff] }
 0x3bb   :  { %3117 = vmatpush2.msra.mxu1 %v2832_v54  ;;  %3037 = vmatprep.subr.mxu0 %v2721_v56  ;;  %v7037_v53 = vld [vmem:[#allocation38_spill] sm:$0xff] }
 0x3bc   :  { %3118 = vmatprep.subr.mxu1 %v2829_v57  ;;  %3038 = vmatpush2.msra.mxu0 %v2720_v58  ;;  %v6459_v54 = vsub.s32 0, %v7037_v53  ;;  %v2654_v53 = vld [vmem:[#allocation13 + $0x1b0] sm:$0xff] }
 0x3bd   :  { %3119 = vmatpush2.msra.mxu1 %v2828_v59  ;;  %3039 = vmatprep.subr.mxu0 %v2717_v60 }
 0x3be   :  { %3120 = vmatprep.subr.mxu1 %v2825_v61  ;;  %3040 = vmatpush2.msra.mxu0 %v2716_v62  ;;  %7038 = vst [vmem:[#allocation66_spill] sm:$0xff] %v6459_v54 }
 0x3bf   :  { %3121 = vmatpush2.msra.mxu1 %v2824_v63  ;;  %3041 = vmatprep.subr.mxu0 %v2713_v25 }
 0x3c0   :  { %3122 = vmatprep.subr.mxu1 %v2821_v0  ;;  %3042 = vmatpush2.msra.mxu0 %v2712_v4 }
 0x3c1   :  { %3123 = vmatpush2.msra.mxu1 %v2820_v6  ;;  %3043 = vmatprep.subr.mxu0 %v2709_v15 }
 0x3c2   :  { %3124 = vmatprep.subr.mxu1 %v2817_v16  ;;  %3044 = vmatpush2.msra.mxu0 %v2708_v19 }
 0x3c3   :  { %3125 = vmatpush2.msra.mxu1 %v2816_v8  ;;  %3045 = vmatprep.subr.mxu0 %v2705_v34 }
 0x3c4   :  { %3126 = vmatprep.subr.mxu1 %v2813_v36  ;;  %3046 = vmatpush2.msra.mxu0 %v2704_v51 }
 0x3c5   :  { %3127 = vmatpush2.msra.mxu1 %v2812_v7  ;;  %3047 = vmatprep.subr.mxu0 %v2701_v29  ;;  %v2996_v29 = vld [vmem:[#allocation13 + $0xc60] sm:$0xff] }
 0x3c6   :  { %3128 = vmatprep.subr.mxu1 %v2809_v32  ;;  %3048 = vmatpush2.msra.mxu0 %v2700_v42 }
 0x3c7   :  { %3129 = vmatpush2.msra.mxu1 %v2808_v3  ;;  %3049 = vmatprep.subr.mxu0 %v2697_v11  ;;  %v2993_v3 = vld [vmem:[#allocation13 + $0xc48] sm:$0xff] }
 0x3c8   :  { %3130 = vmatprep.subr.mxu1 %v2805_v12  ;;  %3050 = vmatpush2.msra.mxu0 %v2696_v14  ;;  %v2992_v14 = vld [vmem:[#allocation13 + $0xc40] sm:$0xff] }
 0x3c9   :  { %3131 = vmatpush2.msra.mxu1 %v2804_v18  ;;  %3051 = vmatprep.subr.mxu0 %v2693_v20 }
 0x3ca   :  { %3132 = vmatprep.subr.mxu1 %v2801_v21  ;;  %3052 = vmatpush2.msra.mxu0 %v2692_v23  ;;  %v2989_v21 = vld [vmem:[#allocation13 + $0xc28] sm:$0xff] }
 0x3cb   :  { %3133 = vmatpush2.msra.mxu1 %v2800_v10  ;;  %3053 = vmatprep.subr.mxu0 %v2689_v27  ;;  %v2988_v10 = vld [vmem:[#allocation13 + $0xc20] sm:$0xff] }
 0x3cc   :  { %3134 = vmatprep.subr.mxu1 %v2797_v5  ;;  %3054 = vmatpush2.msra.mxu0 %v2688_v55 }
 0x3cd   :  { %3135 = vmatpush2.msra.mxu1 %v2796_v17  ;;  %3055 = vmatprep.subr.mxu0 %v2685_v28  ;;  %v2985_v28 = vld [vmem:[#allocation13 + $0xc08] sm:$0xff] }
 0x3ce   :  { %3136 = vmatprep.subr.mxu1 %v2793_v30  ;;  %3056 = vmatpush2.msra.mxu0 %v2684_v31  ;;  %v2984_v31 = vld [vmem:[#allocation13 + $0xc00] sm:$0xff] }
 0x3cf   :  { %3137 = vmatpush2.msra.mxu1 %v2792_v33  ;;  %3057 = vmatprep.subr.mxu0 %v2681_v35 }
 0x3d0   :  { %3240 = vmatprep.subr.mxu1 %v2997_v37  ;;  %3058 = vmatpush2.msra.mxu0 %v2680_v38 }
 0x3d1   :  { %3059 = vmatprep.subr.mxu0 %v2677_v1 }
 0x3d2   :  { %3060 = vmatpush2.msra.mxu0 %v2676_v40  ;;  %v2662_v40 = vld [vmem:[#allocation13 + $0x1f0] sm:$0xff] }
 0x3d3   :  { %3061 = vmatprep.subr.mxu0 %v2673_v41 }
 0x3d4   :  { %3062 = vmatpush2.msra.mxu0 %v2672_v22 }
 0x3d5   :  { %3063 = vmatprep.subr.mxu0 %v2669_v43 }
 0x3d6   :  { %3064 = vmatpush2.msra.mxu0 %v2668_v44 }
 0x3d7   :  { %3065 = vmatprep.subr.mxu0 %v2665_v46  ;;  %v2658_v46 = vld [vmem:[#allocation13 + $0x1d0] sm:$0xff] }
 0x3d8   :  { %3066 = vmatpush2.msra.mxu0 %v2664_v47 }
 0x3d9   :  { %3145 = vmatprep.subr.mxu0 %v2917_v49 }
 0x445   :  { %v2020_v50 = vpop.f32.mrf.mxu0 }
 0x446   :  { %v2526_v32 = vrot.slane %v2020_v50, %v6459_v54  ;;  %v2655_v50 = vld [vmem:[#allocation13 + $0x1b8] sm:$0xff] }
 0x447   :  { %v2022_v52 = vpop.f32.mrf.mxu0 }
 0x448   :  { %v2551_v27 = vmul.f32 %v2526_v32, %v6177_v48  ;;  %v2663_v48 = vld [vmem:[#allocation13 + $0x1f8] sm:$0xff]  ;;  %v2893_v32 = vld [vmem:[#allocation13 + $0x928] sm:$0xff] }
 0x449   :  { %v2091_v56 = vpop.f32.mrf.mxu0  ;;  %v2377_v57 = vpop.f32.mrf.mxu1 }
 0x44a   :  { %v2534_v58 = vrot.slane %v2091_v56, %v6459_v54  ;;  %v2569_v63 = vrot.slane %v2377_v57, %v6459_v54  ;;  %v2912_v57 = vld [vmem:[#allocation13 + $0x9c0] sm:$0xff] }
 0x44b   :  { %v2093_v59 = vpop.f32.mrf.mxu0  ;;  %v2379_v60 = vpop.f32.mrf.mxu1 }
 0x44c   :  { %v2553_v61 = vmul.f32 %v2534_v58, %v7032_v45  ;;  %v2538_v62 = vrot.slane %v2093_v59, %v6459_v54  ;;  %v2573_v6 = vrot.slane %v2379_v60, %v6459_v54  ;;  %v2909_v58 = vld [vmem:[#allocation13 + $0x9a8] sm:$0xff]  ;;  %v2651_v59 = vld [vmem:[#allocation13 + $0x198] sm:$0xff]  ;;  %v2908_v60 = vld [vmem:[#allocation13 + $0x9a0] sm:$0xff] }
 0x44d   :  { %v2162_v25 = vpop.f32.mrf.mxu0  ;;  %v2519_v0 = vpop.f32.mrf.mxu1 }
 0x44e   :  { %v2554_v4 = vmul.f32 %v2538_v62, %v6275_v2  ;;  %v6467_v15 = vadd.f32 %v2569_v63, %v2553_v61  ;;  %v2530_v2 = vrot.slane %v2022_v52, %v6459_v54  ;;  %v2585_v11 = vrot.slane %v2519_v0, %v6459_v54  ;;  %v2913_v52 = vld [vmem:[#allocation13 + $0x9c8] sm:$0xff]  ;;  %v2650_v61 = vld [vmem:[#allocation13 + $0x190] sm:$0xff]  ;;  %v2647_v63 = vld [vmem:[#allocation13 + $0x178] sm:$0xff] }
 0x44f   :  { %v2164_v16 = vpop.f32.mrf.mxu0  ;;  %v5298_v19 = vpop.f32.mrf.mxu1  ;;  %v2542_v18 = vrot.slane %v2162_v25, %v6459_v54  ;;  %v2905_v62 = vld [vmem:[#allocation13 + $0x988] sm:$0xff]  ;;  %v2904_v25 = vld [vmem:[#allocation13 + $0x980] sm:$0xff]  ;;  %v2646_v0 = vld [vmem:[#allocation13 + $0x170] sm:$0xff] }
 0x450   :  { %v6469_v8 = vadd.f32 %v2573_v6, %v2554_v4  ;;  %v2595_v51 = vmax.f32 %v6467_v15, 0.0  ;;  %v2552_v5 = vmul.f32 %v2530_v2, %v6175_v26  ;;  %v2546_v55 = vrot.slane %v2164_v16, %v6459_v54  ;;  %v2901_v4 = vld [vmem:[#allocation13 + $0x968] sm:$0xff]  ;;  %v2643_v6 = vld [vmem:[#allocation13 + $0x158] sm:$0xff]  ;;  %v2900_v16 = vld [vmem:[#allocation13 + $0x960] sm:$0xff] }
 0x451   :  { %v2233_v34 = vpop.f32.mrf.mxu0  ;;  %v2555_v33 = vmul.f32 %v2542_v18, %v6301_v13  ;;  %v2659_v13 = vld [vmem:[#allocation13 + $0x1d8] sm:$0xff]  ;;  %v2642_v19 = vld [vmem:[#allocation13 + $0x150] sm:$0xff] }
 0x452   :  { %v2596_v36 = vmax.f32 %v6469_v8, 0.0  ;;  %v2550_v45 = vrot.slane %v2233_v34, %v6459_v54  ;;  %v2556_v41 = vmul.f32 %v2546_v55, %v6299_v9  ;;  %v2916_v9 = vld [vmem:[#allocation13 + $0x9e0] sm:$0xff]  ;;  %v2897_v34 = vld [vmem:[#allocation13 + $0x948] sm:$0xff]  ;;  %v2635_v2 = vld [vmem:[#allocation13 + $0x118] sm:$0xff] }
 0x453   :  { %v5293_v7 = vpop.f32.mrf.mxu0  ;;  %v2630_v18 = vld [vmem:[#allocation13 + $0xf0] sm:$0xff]  ;;  %v2880_v55 = vld [vmem:[#allocation13 + $0x8c0] sm:$0xff]  ;;  %v2899_v8 = vld [vmem:[#allocation13 + $0x958] sm:$0xff] }
 0x454   :  { %v2557_v42 = vmul.f32 %v2550_v45, %v6349_v24  ;;  %3138 = vmatprep.mubr.f32.mxu1 %v2596_v36  ;;  %v2639_v45 = vld [vmem:[#allocation13 + $0x138] sm:$0xff]  ;;  %v2896_v7 = vld [vmem:[#allocation13 + $0x940] sm:$0xff]  ;;  %v6529_v15 = vld [vmem:[#allocation14 + $0xf0] sm:$0xff] }
 0x455   :  { %v2306_v12 = vpop.f32.mrf.mxu0  ;;  %3139 = vmatmul.mubr.f32.vlgmr.msra.gmra.mxu1 %v2595_v51 }
 0x456   :  { %v2561_v20 = vrot.slane %v2306_v12, %v6459_v54  ;;  %3241 = vmatpush1.msra.mxu1 %v2996_v29  ;;  %3280 = vmatprep.mubr.f32.mxu1 %v6969_v39  ;;  %v6485_v24 = vadd.f32 %v2585_v11, %v2557_v42  ;;  %v2638_v29 = vld [vmem:[#allocation13 + $0x130] sm:$0xff]  ;;  %v2892_v42 = vld [vmem:[#allocation13 + $0x920] sm:$0xff]  ;;  %v2889_v11 = vld [vmem:[#allocation13 + $0x908] sm:$0xff] }
 0x457   :  { %3242 = vmatprep.subr.mxu1 %v2993_v3  ;;  %v2308_v23 = vpop.f32.mrf.mxu0  ;;  %v2634_v3 = vld [vmem:[#allocation13 + $0x110] sm:$0xff]  ;;  %v2631_v12 = vld [vmem:[#allocation13 + $0xf8] sm:$0xff] }
 0x458   :  { %v2565_v17 = vrot.slane %v2308_v23, %v6459_v54  ;;  %3243 = vmatpush1.msra.mxu1 %v2992_v14  ;;  %v6492_v35 = vadd.f32 %v2561_v20, %v2551_v27  ;;  %v2599_v26 = vmax.f32 %v6485_v24, 0.0  ;;  %v2888_v14 = vld [vmem:[#allocation13 + $0x900] sm:$0xff]  ;;  %v2885_v20 = vld [vmem:[#allocation13 + $0x8e8] sm:$0xff] }
 0x459   :  { %3244 = vmatprep.subr.mxu1 %v2989_v21  ;;  %v2448_v30 = vpop.f32.mrf.mxu0  ;;  %v2627_v21 = vld [vmem:[#allocation13 + $0xd8] sm:$0xff]  ;;  %v2884_v23 = vld [vmem:[#allocation13 + $0x8e0] sm:$0xff]  ;;  %v2881_v27 = vld [vmem:[#allocation13 + $0x8c8] sm:$0xff] }
 0x45a   :  { %v2587_v37 = vadd.f32 %v2565_v17, %v2552_v5  ;;  %v2577_v38 = vrot.slane %v2448_v30, %v6459_v54  ;;  %3245 = vmatpush1.msra.mxu1 %v2988_v10  ;;  %v2593_v47 = vmax.f32 %v6492_v35, 0.0  ;;  %v2626_v10 = vld [vmem:[#allocation13 + $0xd0] sm:$0xff]  ;;  %v2623_v5 = vld [vmem:[#allocation13 + $0xb8] sm:$0xff]  ;;  %v6547_v24 = vld [vmem:[#allocation14 + $0x60] sm:$0xff] }
 0x45b   :  { %3246 = vmatprep.subr.mxu1 %v2985_v28  ;;  %v2450_v1 = vpop.f32.mrf.mxu0  ;;  %v2622_v17 = vld [vmem:[#allocation13 + $0xb0] sm:$0xff]  ;;  %v2877_v28 = vld [vmem:[#allocation13 + $0x8a8] sm:$0xff]  ;;  %v2619_v30 = vld [vmem:[#allocation13 + $0x98] sm:$0xff] }
 0x45c   :  { %v2594_v22 = vmax.f32 %v2587_v37, 0.0  ;;  %v6497_v43 = vadd.f32 %v2577_v38, %v2555_v33  ;;  %v2581_v44 = vrot.slane %v2450_v1, %v6459_v54  ;;  %3247 = vmatpush1.msra.mxu1 %v2984_v31  ;;  %v2876_v31 = vld [vmem:[#allocation13 + $0x8a0] sm:$0xff]  ;;  %v2618_v33 = vld [vmem:[#allocation13 + $0x90] sm:$0xff]  ;;  %v2873_v37 = vld [vmem:[#allocation13 + $0x888] sm:$0xff] }
 0x45d   :  { %4773 = vmatmul.mubr.msk.f32.vlgmr.msra.gmra.mxu1 %vm1343_vm2, %v2599_v26  ;;  %3287 = vmatprep.subr.mxu1 %v2663_v48  ;;  %v2615_v38 = vld [vmem:[#allocation13 + $0x78] sm:$0xff]  ;;  %v2872_v48 = vld [vmem:[#allocation13 + $0x880] sm:$0xff]  ;;  %v2614_v1 = vld [vmem:[#allocation13 + $0x70] sm:$0xff] }
 0x45e   :  { %v6504_v49 = vadd.f32 %v2581_v44, %v2556_v41  ;;  %3288 = vmatpush1.msra.mxu1 %v2662_v40  ;;  %3067 = vmatprep.mubr.f32.mxu0 %v2594_v22  ;;  %v2869_v40 = vld [vmem:[#allocation13 + $0x868] sm:$0xff]  ;;  %v2611_v41 = vld [vmem:[#allocation13 + $0x58] sm:$0xff]  ;;  %v2610_v44 = vld [vmem:[#allocation13 + $0x50] sm:$0xff] }
 0x45f   :  { %3289 = vmatprep.subr.mxu1 %v2659_v13  ;;  %3351 = vmatprep.mubr.f32.mxu1 %v2594_v22  ;;  %v2868_v22 = vld [vmem:[#allocation13 + $0x860] sm:$0xff]  ;;  %v2865_v13 = vld [vmem:[#allocation13 + $0x848] sm:$0xff]  ;;  %v2786_v35 = vld [vmem:[#allocation13 + $0x5d0] sm:$0xff] }
 0x460   :  { %v2598_v56 = vmax.f32 %v6504_v49, 0.0  ;;  %3068 = vmatmul.mubr.f32.vlgmr.msra.gmra.mxu0 %v2593_v47  ;;  %3290 = vmatpush1.msra.mxu1 %v2658_v46  ;;  %v2607_v46 = vld [vmem:[#allocation13 + $0x38] sm:$0xff]  ;;  %v2782_v49 = vld [vmem:[#allocation13 + $0x5b0] sm:$0xff]  ;;  %v6718_v54 = vld [vmem:[#allocation14 + $0x100] sm:$0xff] }
 0x461   :  { %3146 = vmatpush1.msra.mxu0 %v2916_v9  ;;  %3291 = vmatprep.subr.mxu1 %v2655_v50  ;;  %v2864_v9 = vld [vmem:[#allocation13 + $0x840] sm:$0xff]  ;;  %v2606_v50 = vld [vmem:[#allocation13 + $0x30] sm:$0xff] }
 0x462   :  { %3147 = vmatprep.subr.mxu0 %v2913_v52  ;;  %3292 = vmatpush1.msra.mxu1 %v2654_v53  ;;  %v2861_v52 = vld [vmem:[#allocation13 + $0x828] sm:$0xff]  ;;  %v2603_v53 = vld [vmem:[#allocation13 + $0x18] sm:$0xff] }
 0x463   :  { %3148 = vmatpush1.msra.mxu0 %v2912_v57  ;;  %3209 = vmatprep.mubr.f32.mxu0 %v2598_v56  ;;  %v2860_v57 = vld [vmem:[#allocation13 + $0x820] sm:$0xff] }
 0x464   :  { %3149 = vmatprep.subr.mxu0 %v2909_v58  ;;  %3293 = vmatprep.subr.mxu1 %v2651_v59  ;;  %v2602_v58 = vld [vmem:[#allocation13 + $0x10] sm:$0xff]  ;;  %v2857_v59 = vld [vmem:[#allocation13 + $0x808] sm:$0xff] }
 0x465   :  { %3150 = vmatpush1.msra.mxu0 %v2908_v60  ;;  %3294 = vmatpush1.msra.mxu1 %v2650_v61  ;;  %v2727_v60 = vld [vmem:[#allocation13 + $0x3f8] sm:$0xff]  ;;  %v2856_v61 = vld [vmem:[#allocation13 + $0x800] sm:$0xff] }
 0x466   :  { %3151 = vmatprep.subr.mxu0 %v2905_v62  ;;  %3295 = vmatprep.subr.mxu1 %v2647_v63  ;;  %v2726_v62 = vld [vmem:[#allocation13 + $0x3f0] sm:$0xff]  ;;  %v2981_v63 = vld [vmem:[#allocation13 + $0xbe8] sm:$0xff] }
 0x467   :  { %3152 = vmatpush1.msra.mxu0 %v2904_v25  ;;  %3296 = vmatpush1.msra.mxu1 %v2646_v0  ;;  %v2723_v25 = vld [vmem:[#allocation13 + $0x3d8] sm:$0xff]  ;;  %v2980_v0 = vld [vmem:[#allocation13 + $0xbe0] sm:$0xff] }
 0x468   :  { %3153 = vmatprep.subr.mxu0 %v2901_v4  ;;  %3297 = vmatprep.subr.mxu1 %v2643_v6  ;;  %v2722_v4 = vld [vmem:[#allocation13 + $0x3d0] sm:$0xff]  ;;  %v2977_v6 = vld [vmem:[#allocation13 + $0xbc8] sm:$0xff] }
 0x469   :  { %3154 = vmatpush1.msra.mxu0 %v2900_v16  ;;  %3298 = vmatpush1.msra.mxu1 %v2642_v19  ;;  %v2719_v16 = vld [vmem:[#allocation13 + $0x3b8] sm:$0xff]  ;;  %v2976_v19 = vld [vmem:[#allocation13 + $0xbc0] sm:$0xff] }
 0x46a   :  { %3155 = vmatprep.subr.mxu0 %v2897_v34  ;;  %3299 = vmatprep.subr.mxu1 %v2639_v45  ;;  %v2718_v34 = vld [vmem:[#allocation13 + $0x3b0] sm:$0xff]  ;;  %v2973_v45 = vld [vmem:[#allocation13 + $0xba8] sm:$0xff] }
 0x46b   :  { %3156 = vmatpush1.msra.mxu0 %v2896_v7  ;;  %3300 = vmatpush1.msra.mxu1 %v2638_v29  ;;  %v2715_v7 = vld [vmem:[#allocation13 + $0x398] sm:$0xff]  ;;  %v2972_v29 = vld [vmem:[#allocation13 + $0xba0] sm:$0xff] }
 0x46c   :  { %3157 = vmatprep.subr.mxu0 %v2893_v32  ;;  %3301 = vmatprep.subr.mxu1 %v2635_v2  ;;  %v2714_v32 = vld [vmem:[#allocation13 + $0x390] sm:$0xff]  ;;  %v2969_v2 = vld [vmem:[#allocation13 + $0xb88] sm:$0xff] }
 0x46d   :  { %3158 = vmatpush1.msra.mxu0 %v2892_v42  ;;  %3302 = vmatpush1.msra.mxu1 %v2634_v3  ;;  %v2711_v42 = vld [vmem:[#allocation13 + $0x378] sm:$0xff]  ;;  %v2968_v3 = vld [vmem:[#allocation13 + $0xb80] sm:$0xff] }
 0x46e   :  { %3159 = vmatprep.subr.mxu0 %v2889_v11  ;;  %3303 = vmatprep.subr.mxu1 %v2631_v12  ;;  %v2710_v11 = vld [vmem:[#allocation13 + $0x370] sm:$0xff]  ;;  %v2965_v12 = vld [vmem:[#allocation13 + $0xb68] sm:$0xff] }
 0x46f   :  { %3160 = vmatpush1.msra.mxu0 %v2888_v14  ;;  %3304 = vmatpush1.msra.mxu1 %v2630_v18  ;;  %v2707_v14 = vld [vmem:[#allocation13 + $0x358] sm:$0xff]  ;;  %v2964_v18 = vld [vmem:[#allocation13 + $0xb60] sm:$0xff] }
 0x470   :  { %3161 = vmatprep.subr.mxu0 %v2885_v20  ;;  %3305 = vmatprep.subr.mxu1 %v2627_v21  ;;  %v2706_v20 = vld [vmem:[#allocation13 + $0x350] sm:$0xff]  ;;  %v2961_v21 = vld [vmem:[#allocation13 + $0xb48] sm:$0xff] }
 0x471   :  { %3162 = vmatpush1.msra.mxu0 %v2884_v23  ;;  %3306 = vmatpush1.msra.mxu1 %v2626_v10  ;;  %v2703_v23 = vld [vmem:[#allocation13 + $0x338] sm:$0xff]  ;;  %v2960_v10 = vld [vmem:[#allocation13 + $0xb40] sm:$0xff] }
 0x472   :  { %3163 = vmatprep.subr.mxu0 %v2881_v27  ;;  %3307 = vmatprep.subr.mxu1 %v2623_v5  ;;  %v2702_v27 = vld [vmem:[#allocation13 + $0x330] sm:$0xff]  ;;  %v2957_v5 = vld [vmem:[#allocation13 + $0xb28] sm:$0xff] }
 0x473   :  { %3164 = vmatpush1.msra.mxu0 %v2880_v55  ;;  %3308 = vmatpush1.msra.mxu1 %v2622_v17  ;;  %v2699_v55 = vld [vmem:[#allocation13 + $0x318] sm:$0xff]  ;;  %v2956_v17 = vld [vmem:[#allocation13 + $0xb20] sm:$0xff] }
 0x474   :  { %3165 = vmatprep.subr.mxu0 %v2877_v28  ;;  %3309 = vmatprep.subr.mxu1 %v2619_v30  ;;  %v2698_v28 = vld [vmem:[#allocation13 + $0x310] sm:$0xff]  ;;  %v2953_v30 = vld [vmem:[#allocation13 + $0xb08] sm:$0xff] }
 0x475   :  { %3166 = vmatpush1.msra.mxu0 %v2876_v31  ;;  %3310 = vmatpush1.msra.mxu1 %v2618_v33  ;;  %v2695_v31 = vld [vmem:[#allocation13 + $0x2f8] sm:$0xff]  ;;  %v2952_v33 = vld [vmem:[#allocation13 + $0xb00] sm:$0xff] }
 0x476   :  { %3167 = vmatprep.subr.mxu0 %v2873_v37  ;;  %3311 = vmatprep.subr.mxu1 %v2615_v38  ;;  %v2694_v37 = vld [vmem:[#allocation13 + $0x2f0] sm:$0xff]  ;;  %v2949_v38 = vld [vmem:[#allocation13 + $0xae8] sm:$0xff] }
 0x477   :  { %3168 = vmatpush1.msra.mxu0 %v2872_v48  ;;  %3312 = vmatpush1.msra.mxu1 %v2614_v1  ;;  %v2691_v48 = vld [vmem:[#allocation13 + $0x2d8] sm:$0xff]  ;;  %v2948_v1 = vld [vmem:[#allocation13 + $0xae0] sm:$0xff] }
 0x478   :  { %3169 = vmatprep.subr.mxu0 %v2869_v40  ;;  %3313 = vmatprep.subr.mxu1 %v2611_v41  ;;  %v2690_v40 = vld [vmem:[#allocation13 + $0x2d0] sm:$0xff]  ;;  %v2945_v41 = vld [vmem:[#allocation13 + $0xac8] sm:$0xff] }
 0x479   :  { %3170 = vmatpush1.msra.mxu0 %v2868_v22  ;;  %3314 = vmatpush1.msra.mxu1 %v2610_v44  ;;  %v2687_v22 = vld [vmem:[#allocation13 + $0x2b8] sm:$0xff]  ;;  %v2944_v44 = vld [vmem:[#allocation13 + $0xac0] sm:$0xff] }
 0x47a   :  { %3171 = vmatprep.subr.mxu0 %v2865_v13  ;;  %3315 = vmatprep.subr.mxu1 %v2607_v46  ;;  %v2686_v13 = vld [vmem:[#allocation13 + $0x2b0] sm:$0xff]  ;;  %v2941_v46 = vld [vmem:[#allocation13 + $0xaa8] sm:$0xff] }
 0x47b   :  { %3172 = vmatpush1.msra.mxu0 %v2864_v9  ;;  %3316 = vmatpush1.msra.mxu1 %v2606_v50  ;;  %v2683_v9 = vld [vmem:[#allocation13 + $0x298] sm:$0xff]  ;;  %v2940_v50 = vld [vmem:[#allocation13 + $0xaa0] sm:$0xff] }
 0x47c   :  { %3173 = vmatprep.subr.mxu0 %v2861_v52  ;;  %3317 = vmatprep.subr.mxu1 %v2603_v53  ;;  %v2682_v52 = vld [vmem:[#allocation13 + $0x290] sm:$0xff]  ;;  %v2937_v53 = vld [vmem:[#allocation13 + $0xa88] sm:$0xff] }
 0x47d   :  { %3174 = vmatpush1.msra.mxu0 %v2860_v57  ;;  %3318 = vmatpush1.msra.mxu1 %v2602_v58  ;;  %v2679_v57 = vld [vmem:[#allocation13 + $0x278] sm:$0xff]  ;;  %v2936_v58 = vld [vmem:[#allocation13 + $0xa80] sm:$0xff] }
 0x47e   :  { %3175 = vmatprep.subr.mxu0 %v2857_v59  ;;  %3319 = vmatprep.subr.mxu1 %v2727_v60  ;;  %v2678_v59 = vld [vmem:[#allocation13 + $0x270] sm:$0xff]  ;;  %v2933_v60 = vld [vmem:[#allocation13 + $0xa68] sm:$0xff] }
 0x47f   :  { %3176 = vmatpush1.msra.mxu0 %v2856_v61  ;;  %3320 = vmatpush2.msra.mxu1 %v2726_v62  ;;  %v2675_v61 = vld [vmem:[#allocation13 + $0x258] sm:$0xff]  ;;  %v2932_v62 = vld [vmem:[#allocation13 + $0xa60] sm:$0xff] }
 0x480   :  { %3177 = vmatprep.subr.mxu0 %v2981_v63  ;;  %3321 = vmatprep.subr.mxu1 %v2723_v25  ;;  %v2674_v63 = vld [vmem:[#allocation13 + $0x250] sm:$0xff]  ;;  %v2929_v25 = vld [vmem:[#allocation13 + $0xa48] sm:$0xff] }
 0x481   :  { %3178 = vmatpush2.msra.mxu0 %v2980_v0  ;;  %3322 = vmatpush2.msra.mxu1 %v2722_v4  ;;  %v2671_v0 = vld [vmem:[#allocation13 + $0x238] sm:$0xff]  ;;  %v2928_v4 = vld [vmem:[#allocation13 + $0xa40] sm:$0xff] }
 0x482   :  { %3179 = vmatprep.subr.mxu0 %v2977_v6  ;;  %3323 = vmatprep.subr.mxu1 %v2719_v16  ;;  %v2670_v6 = vld [vmem:[#allocation13 + $0x230] sm:$0xff]  ;;  %v2925_v16 = vld [vmem:[#allocation13 + $0xa28] sm:$0xff] }
 0x483   :  { %3180 = vmatpush2.msra.mxu0 %v2976_v19  ;;  %3324 = vmatpush2.msra.mxu1 %v2718_v34  ;;  %v2667_v19 = vld [vmem:[#allocation13 + $0x218] sm:$0xff]  ;;  %v2924_v34 = vld [vmem:[#allocation13 + $0xa20] sm:$0xff] }
 0x484   :  { %3181 = vmatprep.subr.mxu0 %v2973_v45  ;;  %3325 = vmatprep.subr.mxu1 %v2715_v7  ;;  %v2666_v45 = vld [vmem:[#allocation13 + $0x210] sm:$0xff]  ;;  %v2921_v7 = vld [vmem:[#allocation13 + $0xa08] sm:$0xff] }
 0x485   :  { %3182 = vmatpush2.msra.mxu0 %v2972_v29  ;;  %3326 = vmatpush2.msra.mxu1 %v2714_v32  ;;  %v2919_v29 = vld [vmem:[#allocation13 + $0x9f8] sm:$0xff]  ;;  %v2920_v32 = vld [vmem:[#allocation13 + $0xa00] sm:$0xff] }
 0x486   :  { %3183 = vmatprep.subr.mxu0 %v2969_v2  ;;  %3327 = vmatprep.subr.mxu1 %v2711_v42  ;;  %v2918_v2 = vld [vmem:[#allocation13 + $0x9f0] sm:$0xff]  ;;  %v2791_v42 = vld [vmem:[#allocation13 + $0x5f8] sm:$0xff] }
 0x487   :  { %3184 = vmatpush2.msra.mxu0 %v2968_v3  ;;  %3328 = vmatpush2.msra.mxu1 %v2710_v11  ;;  %v2597_v3 = vmax.f32 %v6497_v43, 0.0  ;;  %v2915_v11 = vld [vmem:[#allocation13 + $0x9d8] sm:$0xff] }
 0x488   :  { %3185 = vmatprep.subr.mxu0 %v2965_v12  ;;  %3329 = vmatprep.subr.mxu1 %v2707_v14  ;;  %v2790_v12 = vld [vmem:[#allocation13 + $0x5f0] sm:$0xff]  ;;  %v6525_v43 = vld [vmem:[#allocation14 + $0xf8] sm:$0xff] }
 0x489   :  { %3186 = vmatpush2.msra.mxu0 %v2964_v18  ;;  %3330 = vmatpush2.msra.mxu1 %v2706_v20  ;;  %v2914_v14 = vld [vmem:[#allocation13 + $0x9d0] sm:$0xff]  ;;  %v2787_v18 = vld [vmem:[#allocation13 + $0x5d8] sm:$0xff] }
 0x48a   :  { %3187 = vmatprep.subr.mxu0 %v2961_v21  ;;  %3331 = vmatprep.subr.mxu1 %v2703_v23  ;;  %v2911_v20 = vld [vmem:[#allocation13 + $0x9b8] sm:$0xff] }
 0x48b   :  { %3188 = vmatpush2.msra.mxu0 %v2960_v10  ;;  %3332 = vmatpush2.msra.mxu1 %v2702_v27  ;;  %v2783_v21 = vld [vmem:[#allocation13 + $0x5b8] sm:$0xff] }
 0x48c   :  { %3189 = vmatprep.subr.mxu0 %v2957_v5  ;;  %3333 = vmatprep.subr.mxu1 %v2699_v55  ;;  %v2907_v23 = vld [vmem:[#allocation13 + $0x998] sm:$0xff]  ;;  %v2778_v5 = vld [vmem:[#allocation13 + $0x590] sm:$0xff] }
 0x48d   :  { %3190 = vmatpush2.msra.mxu0 %v2956_v17  ;;  %3334 = vmatpush2.msra.mxu1 %v2698_v28  ;;  %v2779_v10 = vld [vmem:[#allocation13 + $0x598] sm:$0xff]  ;;  %v2902_v55 = vld [vmem:[#allocation13 + $0x970] sm:$0xff] }
 0x48e   :  { %3191 = vmatprep.subr.mxu0 %v2953_v30  ;;  %3335 = vmatprep.subr.mxu1 %v2695_v31  ;;  %v2903_v27 = vld [vmem:[#allocation13 + $0x978] sm:$0xff]  ;;  %v2898_v28 = vld [vmem:[#allocation13 + $0x950] sm:$0xff] }
 0x48f   :  { %3192 = vmatpush2.msra.mxu0 %v2952_v33  ;;  %3336 = vmatpush2.msra.mxu1 %v2694_v37  ;;  %v2775_v17 = vld [vmem:[#allocation13 + $0x578] sm:$0xff]  ;;  %v2770_v33 = vld [vmem:[#allocation13 + $0x550] sm:$0xff] }
 0x490   :  { %3193 = vmatprep.subr.mxu0 %v2949_v38  ;;  %3337 = vmatprep.subr.mxu1 %v2691_v48  ;;  %v2771_v30 = vld [vmem:[#allocation13 + $0x558] sm:$0xff]  ;;  %v2894_v37 = vld [vmem:[#allocation13 + $0x930] sm:$0xff] }
 0x491   :  { %3194 = vmatpush2.msra.mxu0 %v2948_v1  ;;  %3338 = vmatpush2.msra.mxu1 %v2690_v40  ;;  %v2895_v31 = vld [vmem:[#allocation13 + $0x938] sm:$0xff]  ;;  %v2766_v1 = vld [vmem:[#allocation13 + $0x530] sm:$0xff] }
 0x492   :  { %3195 = vmatprep.subr.mxu0 %v2945_v41  ;;  %3339 = vmatprep.subr.mxu1 %v2687_v22  ;;  %v2767_v38 = vld [vmem:[#allocation13 + $0x538] sm:$0xff]  ;;  %v2890_v40 = vld [vmem:[#allocation13 + $0x910] sm:$0xff] }
 0x493   :  { %3196 = vmatpush2.msra.mxu0 %v2944_v44  ;;  %3340 = vmatpush2.msra.mxu1 %v2686_v13  ;;  %v2891_v48 = vld [vmem:[#allocation13 + $0x918] sm:$0xff]  ;;  %v2762_v44 = vld [vmem:[#allocation13 + $0x510] sm:$0xff] }
 0x494   :  { %3197 = vmatprep.subr.mxu0 %v2941_v46  ;;  %3341 = vmatprep.subr.mxu1 %v2683_v9  ;;  %v2763_v41 = vld [vmem:[#allocation13 + $0x518] sm:$0xff]  ;;  %v2886_v13 = vld [vmem:[#allocation13 + $0x8f0] sm:$0xff] }
 0x495   :  { %3198 = vmatpush2.msra.mxu0 %v2940_v50  ;;  %3342 = vmatpush2.msra.mxu1 %v2682_v52  ;;  %v2887_v22 = vld [vmem:[#allocation13 + $0x8f8] sm:$0xff]  ;;  %v2758_v50 = vld [vmem:[#allocation13 + $0x4f0] sm:$0xff] }
 0x496   :  { %3199 = vmatprep.subr.mxu0 %v2937_v53  ;;  %3343 = vmatprep.subr.mxu1 %v2679_v57  ;;  %v2759_v46 = vld [vmem:[#allocation13 + $0x4f8] sm:$0xff]  ;;  %v2882_v52 = vld [vmem:[#allocation13 + $0x8d0] sm:$0xff] }
 0x497   :  { %3200 = vmatpush2.msra.mxu0 %v2936_v58  ;;  %3344 = vmatpush2.msra.mxu1 %v2678_v59  ;;  %v2883_v9 = vld [vmem:[#allocation13 + $0x8d8] sm:$0xff]  ;;  %v2754_v58 = vld [vmem:[#allocation13 + $0x4d0] sm:$0xff] }
 0x498   :  { %3201 = vmatprep.subr.mxu0 %v2933_v60  ;;  %3345 = vmatprep.subr.mxu1 %v2675_v61  ;;  %v2755_v53 = vld [vmem:[#allocation13 + $0x4d8] sm:$0xff]  ;;  %v2878_v59 = vld [vmem:[#allocation13 + $0x8b0] sm:$0xff] }
 0x499   :  { %3202 = vmatpush2.msra.mxu0 %v2932_v62  ;;  %3346 = vmatpush2.msra.mxu1 %v2674_v63  ;;  %v2879_v57 = vld [vmem:[#allocation13 + $0x8b8] sm:$0xff]  ;;  %v2750_v62 = vld [vmem:[#allocation13 + $0x4b0] sm:$0xff] }
 0x49a   :  { %3203 = vmatprep.subr.mxu0 %v2929_v25  ;;  %3347 = vmatprep.subr.mxu1 %v2671_v0  ;;  %v2751_v60 = vld [vmem:[#allocation13 + $0x4b8] sm:$0xff]  ;;  %v2874_v63 = vld [vmem:[#allocation13 + $0x890] sm:$0xff] }
 0x49b   :  { %3204 = vmatpush2.msra.mxu0 %v2928_v4  ;;  %3348 = vmatpush2.msra.mxu1 %v2670_v6  ;;  %v2875_v61 = vld [vmem:[#allocation13 + $0x898] sm:$0xff]  ;;  %v2746_v4 = vld [vmem:[#allocation13 + $0x490] sm:$0xff] }
 0x49c   :  { %3205 = vmatprep.subr.mxu0 %v2925_v16  ;;  %3349 = vmatprep.subr.mxu1 %v2667_v19  ;;  %v2747_v25 = vld [vmem:[#allocation13 + $0x498] sm:$0xff]  ;;  %v2870_v6 = vld [vmem:[#allocation13 + $0x870] sm:$0xff] }
 0x49d   :  { %3206 = vmatpush2.msra.mxu0 %v2924_v34  ;;  %3350 = vmatpush2.msra.mxu1 %v2666_v45  ;;  %v2871_v0 = vld [vmem:[#allocation13 + $0x878] sm:$0xff]  ;;  %v2742_v34 = vld [vmem:[#allocation13 + $0x470] sm:$0xff] }
 0x49e   :  { %3207 = vmatprep.subr.mxu0 %v2921_v7  ;;  %3352 = vmatmul.mubr.f32.vlgmr.msra.gmra.mxu1 %v2593_v47  ;;  %v2910_v47 = vld [vmem:[#allocation13 + $0x9b0] sm:$0xff]  ;;  %v2743_v16 = vld [vmem:[#allocation13 + $0x478] sm:$0xff] }
 0x49f   :  { %3429 = vmatprep.subr.mxu1 %v2919_v29  ;;  %3208 = vmatpush2.msra.mxu0 %v2920_v32  ;;  %v2867_v19 = vld [vmem:[#allocation13 + $0x858] sm:$0xff]  ;;  %v2866_v45 = vld [vmem:[#allocation13 + $0x850] sm:$0xff] }
 0x4a0   :  { %3430 = vmatpush1.msra.mxu1 %v2918_v2  ;;  %3493 = vmatprep.mubr.f32.mxu1 %v2598_v56  ;;  %v2906_v56 = vld [vmem:[#allocation13 + $0x990] sm:$0xff]  ;;  %v2739_v7 = vld [vmem:[#allocation13 + $0x458] sm:$0xff] }
 0x4a1   :  { %3210 = vmatmul.mubr.f32.vlgmr.msra.gmra.mxu0 %v2597_v3  ;;  %3358 = vmatprep.subr.mxu0 %v2791_v42  ;;  %v2863_v29 = vld [vmem:[#allocation13 + $0x838] sm:$0xff]  ;;  %v2738_v32 = vld [vmem:[#allocation13 + $0x450] sm:$0xff] }
 0x4a2   :  { %3431 = vmatprep.subr.mxu1 %v2915_v11  ;;  %3359 = vmatpush1.msra.mxu0 %v2790_v12  ;;  %v2862_v2 = vld [vmem:[#allocation13 + $0x830] sm:$0xff]  ;;  %v2735_v42 = vld [vmem:[#allocation13 + $0x438] sm:$0xff] }
 0x4a3   :  { %3422 = vmatprep.mubr.f32.mxu0 %v2596_v36  ;;  %3432 = vmatpush1.msra.mxu1 %v2914_v14  ;;  %v2774_v36 = vld [vmem:[#allocation13 + $0x570] sm:$0xff]  ;;  %v2859_v11 = vld [vmem:[#allocation13 + $0x818] sm:$0xff] }
 0x4a4   :  { %3360 = vmatprep.subr.mxu0 %v2787_v18  ;;  %3433 = vmatprep.subr.mxu1 %v2911_v20  ;;  %v2734_v12 = vld [vmem:[#allocation13 + $0x430] sm:$0xff]  ;;  %v2731_v18 = vld [vmem:[#allocation13 + $0x418] sm:$0xff] }
 0x4a5   :  { %3361 = vmatpush1.msra.mxu0 %v2786_v35  ;;  %3434 = vmatpush1.msra.mxu1 %v2910_v47  ;;  %v2858_v14 = vld [vmem:[#allocation13 + $0x810] sm:$0xff]  ;;  %v2983_v20 = vld [vmem:[#allocation13 + $0xbf8] sm:$0xff] }
 0x4a6   :  { %3362 = vmatprep.subr.mxu0 %v2783_v21  ;;  %3435 = vmatprep.subr.mxu1 %v2907_v23  ;;  %v2730_v35 = vld [vmem:[#allocation13 + $0x410] sm:$0xff]  ;;  %v2855_v21 = vld [vmem:[#allocation13 + $0x7f8] sm:$0xff] }
 0x4a7   :  { %3363 = vmatpush1.msra.mxu0 %v2782_v49  ;;  %3436 = vmatpush1.msra.mxu1 %v2906_v56  ;;  %v2982_v47 = vld [vmem:[#allocation13 + $0xbf0] sm:$0xff]  ;;  %v2979_v23 = vld [vmem:[#allocation13 + $0xbd8] sm:$0xff] }
 0x4a8   :  { %3364 = vmatprep.subr.mxu0 %v2779_v10  ;;  %3437 = vmatprep.subr.mxu1 %v2903_v27  ;;  %v2854_v49 = vld [vmem:[#allocation13 + $0x7f0] sm:$0xff]  ;;  %v2851_v10 = vld [vmem:[#allocation13 + $0x7d8] sm:$0xff] }
 0x4a9   :  { %3365 = vmatpush1.msra.mxu0 %v2778_v5  ;;  %3438 = vmatpush1.msra.mxu1 %v2902_v55  ;;  %v2978_v56 = vld [vmem:[#allocation13 + $0xbd0] sm:$0xff]  ;;  %v2975_v27 = vld [vmem:[#allocation13 + $0xbb8] sm:$0xff] }
 0x4aa   :  { %3366 = vmatprep.subr.mxu0 %v2775_v17  ;;  %3439 = vmatprep.subr.mxu1 %v2899_v8  ;;  %v2850_v5 = vld [vmem:[#allocation13 + $0x7d0] sm:$0xff]  ;;  %v2847_v17 = vld [vmem:[#allocation13 + $0x7b8] sm:$0xff] }
 0x4ab   :  { %3367 = vmatpush1.msra.mxu0 %v2774_v36  ;;  %3440 = vmatpush1.msra.mxu1 %v2898_v28  ;;  %v2974_v55 = vld [vmem:[#allocation13 + $0xbb0] sm:$0xff]  ;;  %v2971_v8 = vld [vmem:[#allocation13 + $0xb98] sm:$0xff] }
 0x4ac   :  { %3368 = vmatprep.subr.mxu0 %v2771_v30  ;;  %3441 = vmatprep.subr.mxu1 %v2895_v31  ;;  %v2846_v36 = vld [vmem:[#allocation13 + $0x7b0] sm:$0xff]  ;;  %v2843_v30 = vld [vmem:[#allocation13 + $0x798] sm:$0xff] }
 0x4ad   :  { %3369 = vmatpush1.msra.mxu0 %v2770_v33  ;;  %3442 = vmatpush1.msra.mxu1 %v2894_v37  ;;  %v2970_v28 = vld [vmem:[#allocation13 + $0xb90] sm:$0xff]  ;;  %v2967_v31 = vld [vmem:[#allocation13 + $0xb78] sm:$0xff] }
 0x4ae   :  { %3370 = vmatprep.subr.mxu0 %v2767_v38  ;;  %3443 = vmatprep.subr.mxu1 %v2891_v48  ;;  %v2842_v33 = vld [vmem:[#allocation13 + $0x790] sm:$0xff]  ;;  %v2839_v38 = vld [vmem:[#allocation13 + $0x778] sm:$0xff] }
 0x4af   :  { %3371 = vmatpush1.msra.mxu0 %v2766_v1  ;;  %3444 = vmatpush1.msra.mxu1 %v2890_v40  ;;  %v2966_v37 = vld [vmem:[#allocation13 + $0xb70] sm:$0xff]  ;;  %v2963_v48 = vld [vmem:[#allocation13 + $0xb58] sm:$0xff] }
 0x4b0   :  { %3372 = vmatprep.subr.mxu0 %v2763_v41  ;;  %3445 = vmatprep.subr.mxu1 %v2887_v22  ;;  %v2838_v1 = vld [vmem:[#allocation13 + $0x770] sm:$0xff]  ;;  %v2835_v41 = vld [vmem:[#allocation13 + $0x758] sm:$0xff] }
 0x4b1   :  { %3373 = vmatpush1.msra.mxu0 %v2762_v44  ;;  %3446 = vmatpush1.msra.mxu1 %v2886_v13  ;;  %v2962_v40 = vld [vmem:[#allocation13 + $0xb50] sm:$0xff]  ;;  %v2959_v22 = vld [vmem:[#allocation13 + $0xb38] sm:$0xff] }
 0x4b2   :  { %3374 = vmatprep.subr.mxu0 %v2759_v46  ;;  %3447 = vmatprep.subr.mxu1 %v2883_v9  ;;  %v2834_v44 = vld [vmem:[#allocation13 + $0x750] sm:$0xff]  ;;  %v2831_v46 = vld [vmem:[#allocation13 + $0x738] sm:$0xff] }
 0x4b3   :  { %3375 = vmatpush1.msra.mxu0 %v2758_v50  ;;  %3448 = vmatpush1.msra.mxu1 %v2882_v52  ;;  %v2958_v13 = vld [vmem:[#allocation13 + $0xb30] sm:$0xff]  ;;  %v2955_v9 = vld [vmem:[#allocation13 + $0xb18] sm:$0xff] }
 0x4b4   :  { %3376 = vmatprep.subr.mxu0 %v2755_v53  ;;  %3449 = vmatprep.subr.mxu1 %v2879_v57  ;;  %v2830_v50 = vld [vmem:[#allocation13 + $0x730] sm:$0xff]  ;;  %v2827_v53 = vld [vmem:[#allocation13 + $0x718] sm:$0xff] }
 0x4b5   :  { %3377 = vmatpush1.msra.mxu0 %v2754_v58  ;;  %3450 = vmatpush1.msra.mxu1 %v2878_v59  ;;  %v2954_v52 = vld [vmem:[#allocation13 + $0xb10] sm:$0xff]  ;;  %v2951_v57 = vld [vmem:[#allocation13 + $0xaf8] sm:$0xff] }
 0x4b6   :  { %3378 = vmatprep.subr.mxu0 %v2751_v60  ;;  %3451 = vmatprep.subr.mxu1 %v2875_v61  ;;  %v2826_v58 = vld [vmem:[#allocation13 + $0x710] sm:$0xff]  ;;  %v2823_v60 = vld [vmem:[#allocation13 + $0x6f8] sm:$0xff] }
 0x4b7   :  { %3379 = vmatpush1.msra.mxu0 %v2750_v62  ;;  %3452 = vmatpush1.msra.mxu1 %v2874_v63  ;;  %v2950_v59 = vld [vmem:[#allocation13 + $0xaf0] sm:$0xff]  ;;  %v2947_v61 = vld [vmem:[#allocation13 + $0xad8] sm:$0xff] }
 0x4b8   :  { %3380 = vmatprep.subr.mxu0 %v2747_v25  ;;  %3453 = vmatprep.subr.mxu1 %v2871_v0  ;;  %v2822_v62 = vld [vmem:[#allocation13 + $0x6f0] sm:$0xff]  ;;  %v2819_v25 = vld [vmem:[#allocation13 + $0x6d8] sm:$0xff] }
 0x4b9   :  { %3381 = vmatpush1.msra.mxu0 %v2746_v4  ;;  %3454 = vmatpush1.msra.mxu1 %v2870_v6  ;;  %v2946_v63 = vld [vmem:[#allocation13 + $0xad0] sm:$0xff]  ;;  %v2943_v0 = vld [vmem:[#allocation13 + $0xab8] sm:$0xff] }
 0x4ba   :  { %3382 = vmatprep.subr.mxu0 %v2743_v16  ;;  %3455 = vmatprep.subr.mxu1 %v2867_v19  ;;  %v2818_v4 = vld [vmem:[#allocation13 + $0x6d0] sm:$0xff]  ;;  %v2815_v16 = vld [vmem:[#allocation13 + $0x6b8] sm:$0xff] }
 0x4bb   :  { %3383 = vmatpush1.msra.mxu0 %v2742_v34  ;;  %3456 = vmatpush1.msra.mxu1 %v2866_v45  ;;  %v2942_v6 = vld [vmem:[#allocation13 + $0xab0] sm:$0xff]  ;;  %v2939_v19 = vld [vmem:[#allocation13 + $0xa98] sm:$0xff] }
 0x4bc   :  { %3384 = vmatprep.subr.mxu0 %v2739_v7  ;;  %3457 = vmatprep.subr.mxu1 %v2863_v29  ;;  %v2814_v34 = vld [vmem:[#allocation13 + $0x6b0] sm:$0xff]  ;;  %v2811_v7 = vld [vmem:[#allocation13 + $0x698] sm:$0xff] }
 0x4bd   :  { %3385 = vmatpush1.msra.mxu0 %v2738_v32  ;;  %3458 = vmatpush1.msra.mxu1 %v2862_v2  ;;  %v2938_v45 = vld [vmem:[#allocation13 + $0xa90] sm:$0xff]  ;;  %v2935_v29 = vld [vmem:[#allocation13 + $0xa78] sm:$0xff] }
 0x4be   :  { %3386 = vmatprep.subr.mxu0 %v2735_v42  ;;  %3459 = vmatprep.subr.mxu1 %v2859_v11  ;;  %v2810_v32 = vld [vmem:[#allocation13 + $0x690] sm:$0xff]  ;;  %v2807_v42 = vld [vmem:[#allocation13 + $0x678] sm:$0xff] }
 0x4bf   :  { %3387 = vmatpush1.msra.mxu0 %v2734_v12  ;;  %3460 = vmatpush1.msra.mxu1 %v2858_v14  ;;  %v2934_v2 = vld [vmem:[#allocation13 + $0xa70] sm:$0xff]  ;;  %v2931_v11 = vld [vmem:[#allocation13 + $0xa58] sm:$0xff] }
 0x4c0   :  { %3388 = vmatprep.subr.mxu0 %v2731_v18  ;;  %3461 = vmatprep.subr.mxu1 %v2983_v20  ;;  %v2806_v12 = vld [vmem:[#allocation13 + $0x670] sm:$0xff]  ;;  %v2803_v18 = vld [vmem:[#allocation13 + $0x658] sm:$0xff] }
 0x4c1   :  { %3389 = vmatpush1.msra.mxu0 %v2730_v35  ;;  %3462 = vmatpush2.msra.mxu1 %v2982_v47  ;;  %v2930_v14 = vld [vmem:[#allocation13 + $0xa50] sm:$0xff]  ;;  %v2927_v20 = vld [vmem:[#allocation13 + $0xa38] sm:$0xff] }
 0x4c2   :  { %3390 = vmatprep.subr.mxu0 %v2855_v21  ;;  %3463 = vmatprep.subr.mxu1 %v2979_v23  ;;  %v2802_v35 = vld [vmem:[#allocation13 + $0x650] sm:$0xff]  ;;  %v2799_v21 = vld [vmem:[#allocation13 + $0x638] sm:$0xff] }
 0x4c3   :  { %3391 = vmatpush2.msra.mxu0 %v2854_v49  ;;  %3464 = vmatpush2.msra.mxu1 %v2978_v56  ;;  %v2926_v47 = vld [vmem:[#allocation13 + $0xa30] sm:$0xff]  ;;  %v2923_v23 = vld [vmem:[#allocation13 + $0xa18] sm:$0xff] }
 0x4c4   :  { %3392 = vmatprep.subr.mxu0 %v2851_v10  ;;  %3465 = vmatprep.subr.mxu1 %v2975_v27  ;;  %v2798_v49 = vld [vmem:[#allocation13 + $0x630] sm:$0xff]  ;;  %v2795_v10 = vld [vmem:[#allocation13 + $0x618] sm:$0xff] }
 0x4c5   :  { %3393 = vmatpush2.msra.mxu0 %v2850_v5  ;;  %3466 = vmatpush2.msra.mxu1 %v2974_v55  ;;  %v2922_v56 = vld [vmem:[#allocation13 + $0xa10] sm:$0xff]  ;;  %v2999_v5 = vld [vmem:[#allocation13 + $0xc78] sm:$0xff] }
 0x4c6   :  { %3394 = vmatprep.subr.mxu0 %v2847_v17  ;;  %3467 = vmatprep.subr.mxu1 %v2971_v8  ;;  %v2794_v27 = vld [vmem:[#allocation13 + $0x610] sm:$0xff]  ;;  %v2995_v17 = vld [vmem:[#allocation13 + $0xc58] sm:$0xff] }
 0x4c7   :  { %3395 = vmatpush2.msra.mxu0 %v2846_v36  ;;  %3468 = vmatpush2.msra.mxu1 %v2970_v28  ;;  %v2998_v55 = vld [vmem:[#allocation13 + $0xc70] sm:$0xff]  ;;  %v2991_v36 = vld [vmem:[#allocation13 + $0xc38] sm:$0xff] }
 0x4c8   :  { %3396 = vmatprep.subr.mxu0 %v2843_v30  ;;  %3469 = vmatprep.subr.mxu1 %v2967_v31  ;;  %v2994_v8 = vld [vmem:[#allocation13 + $0xc50] sm:$0xff]  ;;  %v2987_v30 = vld [vmem:[#allocation13 + $0xc18] sm:$0xff] }
 0x4c9   :  { %3397 = vmatpush2.msra.mxu0 %v2842_v33  ;;  %3470 = vmatpush2.msra.mxu1 %v2966_v37  ;;  %v2990_v28 = vld [vmem:[#allocation13 + $0xc30] sm:$0xff]  ;;  %v6538_v33 = vld [vmem:[#allocation14 + $0xe8] sm:$0xff] }
 0x4ca   :  { %3398 = vmatprep.subr.mxu0 %v2839_v38  ;;  %3471 = vmatprep.subr.mxu1 %v2963_v48  ;;  %v2986_v31 = vld [vmem:[#allocation13 + $0xc10] sm:$0xff]  ;;  %v6541_v37 = vld [vmem:[#allocation14 + $0x68] sm:$0xff]  ;;  %v6544_v38 = vld [vmem:[#allocation14 + $0xe0] sm:$0xff] }
 0x4cb   :  { %3399 = vmatpush2.msra.mxu0 %v2838_v1  ;;  %3472 = vmatpush2.msra.mxu1 %v2962_v40  ;;  %v6553_v48 = vld [vmem:[#allocation14 + $0x58] sm:$0xff]  ;;  %v6556_v1 = vld [vmem:[#allocation14 + $0xd0] sm:$0xff] }
 0x4cc   :  { %3400 = vmatprep.subr.mxu0 %v2835_v41  ;;  %3473 = vmatprep.subr.mxu1 %v2959_v22  ;;  %v6559_v40 = vld [vmem:[#allocation14 + $0x50] sm:$0xff]  ;;  %v6562_v41 = vld [vmem:[#allocation14 + $0xc8] sm:$0xff] }
 0x4cd   :  { %3401 = vmatpush2.msra.mxu0 %v2834_v44  ;;  %3474 = vmatpush2.msra.mxu1 %v2958_v13  ;;  %v6565_v22 = vld [vmem:[#allocation14 + $0x48] sm:$0xff]  ;;  %v6568_v44 = vld [vmem:[#allocation14 + $0xc0] sm:$0xff] }
 0x4ce   :  { %3402 = vmatprep.subr.mxu0 %v2831_v46  ;;  %3475 = vmatprep.subr.mxu1 %v2955_v9  ;;  %v6571_v13 = vld [vmem:[#allocation14 + $0x40] sm:$0xff]  ;;  %v6574_v46 = vld [vmem:[#allocation14 + $0xb8] sm:$0xff] }
 0x4cf   :  { %3403 = vmatpush2.msra.mxu0 %v2830_v50  ;;  %3476 = vmatpush2.msra.mxu1 %v2954_v52  ;;  %v6577_v9 = vld [vmem:[#allocation14 + $0x38] sm:$0xff]  ;;  %v6580_v50 = vld [vmem:[#allocation14 + $0xb0] sm:$0xff] }
 0x4d0   :  { %3404 = vmatprep.subr.mxu0 %v2827_v53  ;;  %3477 = vmatprep.subr.mxu1 %v2951_v57  ;;  %v6583_v52 = vld [vmem:[#allocation14 + $0x30] sm:$0xff]  ;;  %v6586_v53 = vld [vmem:[#allocation14 + $0xa8] sm:$0xff] }
 0x4d1   :  { %3405 = vmatpush2.msra.mxu0 %v2826_v58  ;;  %3478 = vmatpush2.msra.mxu1 %v2950_v59  ;;  %v6589_v57 = vld [vmem:[#allocation14 + $0x28] sm:$0xff]  ;;  %v6592_v58 = vld [vmem:[#allocation14 + $0xa0] sm:$0xff] }
 0x4d2   :  { %3406 = vmatprep.subr.mxu0 %v2823_v60  ;;  %3479 = vmatprep.subr.mxu1 %v2947_v61  ;;  %v6595_v59 = vld [vmem:[#allocation14 + $0x20] sm:$0xff]  ;;  %v6598_v60 = vld [vmem:[#allocation14 + $0x98] sm:$0xff] }
 0x4d3   :  { %3407 = vmatpush2.msra.mxu0 %v2822_v62  ;;  %3480 = vmatpush2.msra.mxu1 %v2946_v63  ;;  %v6601_v61 = vld [vmem:[#allocation14 + $0x18] sm:$0xff]  ;;  %v6604_v62 = vld [vmem:[#allocation14 + $0x90] sm:$0xff] }
 0x4d4   :  { %3408 = vmatprep.subr.mxu0 %v2819_v25  ;;  %3481 = vmatprep.subr.mxu1 %v2943_v0  ;;  %v6607_v63 = vld [vmem:[#allocation14 + $0x10] sm:$0xff]  ;;  %v6610_v25 = vld [vmem:[#allocation14 + $0x88] sm:$0xff] }
 0x4d5   :  { %3409 = vmatpush2.msra.mxu0 %v2818_v4  ;;  %3482 = vmatpush2.msra.mxu1 %v2942_v6  ;;  %v6613_v0 = vld [vmem:[#allocation14 + $0x8] sm:$0xff]  ;;  %v6616_v4 = vld [vmem:[#allocation14 + $0x80] sm:$0xff] }
 0x4d6   :  { %3410 = vmatprep.subr.mxu0 %v2815_v16  ;;  %3483 = vmatprep.subr.mxu1 %v2939_v19  ;;  %v6619_v6 = vld [vmem:[#allocation14] sm:$0xff]  ;;  %v6624_v16 = vld [vmem:[#allocation14 + $0x1f8] sm:$0xff] }
 0x4d7   :  { %3411 = vmatpush2.msra.mxu0 %v2814_v34  ;;  %3484 = vmatpush2.msra.mxu1 %v2938_v45  ;;  %v6626_v19 = vld [vmem:[#allocation14 + $0x178] sm:$0xff]  ;;  %v6628_v34 = vld [vmem:[#allocation14 + $0x1f0] sm:$0xff] }
 0x4d8   :  { %3412 = vmatprep.subr.mxu0 %v2811_v7  ;;  %3485 = vmatprep.subr.mxu1 %v2935_v29  ;;  %v6632_v45 = vld [vmem:[#allocation14 + $0x170] sm:$0xff]  ;;  %v6635_v7 = vld [vmem:[#allocation14 + $0x1e8] sm:$0xff] }
 0x4d9   :  { %3413 = vmatpush2.msra.mxu0 %v2810_v32  ;;  %3486 = vmatpush2.msra.mxu1 %v2934_v2  ;;  %v6638_v29 = vld [vmem:[#allocation14 + $0x168] sm:$0xff]  ;;  %v6641_v32 = vld [vmem:[#allocation14 + $0x1e0] sm:$0xff] }
 0x4da   :  { %3414 = vmatprep.subr.mxu0 %v2807_v42  ;;  %3487 = vmatprep.subr.mxu1 %v2931_v11  ;;  %v6644_v2 = vld [vmem:[#allocation14 + $0x160] sm:$0xff]  ;;  %v6647_v42 = vld [vmem:[#allocation14 + $0x1d8] sm:$0xff] }
 0x4db   :  { %3415 = vmatpush2.msra.mxu0 %v2806_v12  ;;  %3488 = vmatpush2.msra.mxu1 %v2930_v14  ;;  %v6650_v11 = vld [vmem:[#allocation14 + $0x158] sm:$0xff]  ;;  %v6653_v12 = vld [vmem:[#allocation14 + $0x1d0] sm:$0xff] }
 0x4dc   :  { %3416 = vmatprep.subr.mxu0 %v2803_v18  ;;  %3489 = vmatprep.subr.mxu1 %v2927_v20  ;;  %v6656_v14 = vld [vmem:[#allocation14 + $0x150] sm:$0xff]  ;;  %v6659_v18 = vld [vmem:[#allocation14 + $0x1c8] sm:$0xff] }
 0x4dd   :  { %3417 = vmatpush2.msra.mxu0 %v2802_v35  ;;  %3490 = vmatpush2.msra.mxu1 %v2926_v47  ;;  %v6662_v20 = vld [vmem:[#allocation14 + $0x148] sm:$0xff]  ;;  %v6665_v35 = vld [vmem:[#allocation14 + $0x1c0] sm:$0xff] }
 0x4de   :  { %3418 = vmatprep.subr.mxu0 %v2799_v21  ;;  %3491 = vmatprep.subr.mxu1 %v2923_v23  ;;  %v6668_v47 = vld [vmem:[#allocation14 + $0x140] sm:$0xff]  ;;  %v6671_v21 = vld [vmem:[#allocation14 + $0x1b8] sm:$0xff] }
 0x4df   :  { %3419 = vmatpush2.msra.mxu0 %v2798_v49  ;;  %3492 = vmatpush2.msra.mxu1 %v2922_v56  ;;  %v6676_v23 = vld [vmem:[#allocation14 + $0x138] sm:$0xff]  ;;  %v6679_v49 = vld [vmem:[#allocation14 + $0x1b0] sm:$0xff] }
 0x4e0   :  { %3420 = vmatprep.subr.mxu0 %v2795_v10  ;;  %3494 = vmatmul.mubr.f32.vlgmr.msra.gmra.mxu1 %v2597_v3  ;;  %v6527_v3 = vld [vmem:[#allocation14 + $0x78] sm:$0xff]  ;;  %7039 = vst [vmem:[#allocation39_spill] sm:$0xff] %v6676_v23  ;;  %7040 = vst [vmem:[#allocation67_spill] sm:$0xff] %v6679_v49  ;;  %v6682_v56 = vld [vmem:[#allocation14 + $0x130] sm:$0xff] }
 0x4e1   :  { %3421 = vmatpush2.msra.mxu0 %v2794_v27  ;;  %5080 = vmatprep.subr.mxu1 %v6624_v16  ;;  %7041 = vst [vmem:[#allocation40_spill] sm:$0xff] %v6682_v56  ;;  %v6685_v10 = vld [vmem:[#allocation14 + $0x1a8] sm:$0xff] }
 0x4e2   :  { %3423 = vmatmul.mubr.f32.vlgmr.msra.gmra.mxu0 %v2595_v51  ;;  %3524 = vmatprep.subr.mxu0 %v2999_v5  ;;  %v6535_v51 = vld [vmem:[#allocation14 + $0x70] sm:$0xff]  ;;  %7042 = vst [vmem:[#allocation68_spill] sm:$0xff] %v6685_v10  ;;  %v6688_v27 = vld [vmem:[#allocation14 + $0x128] sm:$0xff]  ;;  %v6691_v5 = vld [vmem:[#allocation14 + $0x1a0] sm:$0xff] }
 0x4e3   :  { %3525 = vmatpush1.msra.mxu0 %v2998_v55  ;;  %3564 = vmatprep.mubr.f32.mxu0 %v6969_v39  ;;  %7043 = vst [vmem:[#allocation41_spill] sm:$0xff] %v6688_v27  ;;  %7044 = vst [vmem:[#allocation69_spill] sm:$0xff] %v6691_v5  ;;  %v6694_v55 = vld [vmem:[#allocation14 + $0x120] sm:$0xff] }
 0x4e4   :  { %3526 = vmatprep.subr.mxu0 %v2995_v17  ;;  %5081 = vmatpush3.msra.mxu1 %v6626_v19  ;;  %7045 = vst [vmem:[#allocation42_spill] sm:$0xff] %v6694_v55  ;;  %v6696_v17 = vld [vmem:[#allocation14 + $0x198] sm:$0xff] }
 0x4e5   :  { %3527 = vmatpush1.msra.mxu0 %v2994_v8  ;;  %5082 = vmatprep.subr.mxu1 %v6628_v34  ;;  %7046 = vst [vmem:[#allocation70_spill] sm:$0xff] %v6696_v17  ;;  %v6698_v8 = vld [vmem:[#allocation14 + $0x118] sm:$0xff] }
 0x4e6   :  { %3528 = vmatprep.subr.mxu0 %v2991_v36  ;;  %5083 = vmatpush3.msra.mxu1 %v6632_v45  ;;  %7047 = vst [vmem:[#allocation43_spill] sm:$0xff] %v6698_v8  ;;  %v6701_v36 = vld [vmem:[#allocation14 + $0x190] sm:$0xff] }
 0x4e7   :  { %3529 = vmatpush1.msra.mxu0 %v2990_v28  ;;  %5084 = vmatprep.subr.mxu1 %v6635_v7  ;;  %7048 = vst [vmem:[#allocation71_spill] sm:$0xff] %v6701_v36  ;;  %v6706_v28 = vld [vmem:[#allocation14 + $0x110] sm:$0xff] }
 0x4e8   :  { %3530 = vmatprep.subr.mxu0 %v2987_v30  ;;  %5085 = vmatpush3.msra.mxu1 %v6638_v29  ;;  %7049 = vst [vmem:[#allocation44_spill] sm:$0xff] %v6706_v28  ;;  %v6709_v30 = vld [vmem:[#allocation14 + $0x188] sm:$0xff] }
 0x4e9   :  { %3531 = vmatpush1.msra.mxu0 %v2986_v31  ;;  %5086 = vmatprep.subr.mxu1 %v6641_v32  ;;  %7050 = vst [vmem:[#allocation72_spill] sm:$0xff] %v6709_v30  ;;  %v6712_v31 = vld [vmem:[#allocation14 + $0x108] sm:$0xff] }
 0x4ea   :  { %4774 = vmatmul.mubr.msk.f32.vlgmr.msra.gmra.mxu0 %vm1343_vm2, %v2599_v26  ;;  %5045 = vmatprep.subr.mxu0 %v6525_v43  ;;  %v6550_v26 = vld [vmem:[#allocation14 + $0xd8] sm:$0xff]  ;;  %7051 = vst [vmem:[#allocation45_spill] sm:$0xff] %v6712_v31 }
 0x4eb   :  { %5046 = vmatpush3.msra.mxu0 %v6527_v3  ;;  %5087 = vmatpush3.msra.mxu1 %v6644_v2 }
 0x4ec   :  { %5047 = vmatprep.subr.mxu0 %v6529_v15  ;;  %5088 = vmatprep.subr.mxu1 %v6647_v42 }
 0x4ed   :  { %5048 = vmatpush3.msra.mxu0 %v6535_v51  ;;  %5089 = vmatpush3.msra.mxu1 %v6650_v11 }
 0x4ee   :  { %5049 = vmatprep.subr.mxu0 %v6538_v33  ;;  %5090 = vmatprep.subr.mxu1 %v6653_v12 }
 0x4ef   :  { %5050 = vmatpush3.msra.mxu0 %v6541_v37  ;;  %5091 = vmatpush3.msra.mxu1 %v6656_v14 }
 0x4f0   :  { %5051 = vmatprep.subr.mxu0 %v6544_v38  ;;  %5092 = vmatprep.subr.mxu1 %v6659_v18 }
 0x4f1   :  { %5052 = vmatpush3.msra.mxu0 %v6547_v24  ;;  %5093 = vmatpush3.msra.mxu1 %v6662_v20 }
 0x4f2   :  { %5053 = vmatprep.subr.mxu0 %v6550_v26  ;;  %5094 = vmatprep.subr.mxu1 %v6665_v35 }
 0x4f3   :  { %5054 = vmatpush3.msra.mxu0 %v6553_v48  ;;  %5095 = vmatpush3.msra.mxu1 %v6668_v47 }
 0x4f4   :  { %5055 = vmatprep.subr.mxu0 %v6556_v1  ;;  %5096 = vmatprep.subr.mxu1 %v6671_v21 }
 0x4f5   :  { %5056 = vmatpush3.msra.mxu0 %v6559_v40  ;;  %5097 = vmatpush3.msra.mxu1 %v6676_v23 }
 0x4f6   :  { %5057 = vmatprep.subr.mxu0 %v6562_v41  ;;  %5098 = vmatprep.subr.mxu1 %v6679_v49 }
 0x4f7   :  { %5058 = vmatpush3.msra.mxu0 %v6565_v22  ;;  %5099 = vmatpush3.msra.mxu1 %v6682_v56 }
 0x4f8   :  { %5059 = vmatprep.subr.mxu0 %v6568_v44  ;;  %5100 = vmatprep.subr.mxu1 %v6685_v10 }
 0x4f9   :  { %5060 = vmatpush3.msra.mxu0 %v6571_v13  ;;  %5101 = vmatpush3.msra.mxu1 %v6688_v27 }
 0x4fa   :  { %5061 = vmatprep.subr.mxu0 %v6574_v46  ;;  %5102 = vmatprep.subr.mxu1 %v6691_v5 }
 0x4fb   :  { %5062 = vmatpush3.msra.mxu0 %v6577_v9  ;;  %5103 = vmatpush3.msra.mxu1 %v6694_v55 }
 0x4fc   :  { %5063 = vmatprep.subr.mxu0 %v6580_v50  ;;  %5104 = vmatprep.subr.mxu1 %v6696_v17 }
 0x4fd   :  { %5064 = vmatpush3.msra.mxu0 %v6583_v52  ;;  %5105 = vmatpush3.msra.mxu1 %v6698_v8 }
 0x4fe   :  { %5065 = vmatprep.subr.mxu0 %v6586_v53  ;;  %5106 = vmatprep.subr.mxu1 %v6701_v36 }
 0x4ff   :  { %5066 = vmatpush3.msra.mxu0 %v6589_v57  ;;  %5107 = vmatpush3.msra.mxu1 %v6706_v28 }
 0x500   :  { %5067 = vmatprep.subr.mxu0 %v6592_v58  ;;  %5108 = vmatprep.subr.mxu1 %v6709_v30 }
 0x501   :  { %5068 = vmatpush3.msra.mxu0 %v6595_v59  ;;  %5109 = vmatpush3.msra.mxu1 %v6712_v31 }
 0x502   :  { %5069 = vmatprep.subr.mxu0 %v6598_v60 }
 0x503   :  { %5070 = vmatpush3.msra.mxu0 %v6601_v61 }
 0x504   :  { %5071 = vmatprep.subr.mxu0 %v6604_v62 }
 0x505   :  { %5072 = vmatpush3.msra.mxu0 %v6607_v63 }
 0x506   :  { %5073 = vmatprep.subr.mxu0 %v6610_v25 }
 0x507   :  { %5074 = vmatpush3.msra.mxu0 %v6613_v0 }
 0x508   :  { %5075 = vmatprep.subr.mxu0 %v6616_v4 }
 0x509   :  { %5076 = vmatpush3.msra.mxu0 %v6619_v6 }
 0x50a   :  { %5115 = vmatprep.subr.mxu0 %v6525_v43  ;;  %v6715_v43 = vld [vmem:[#allocation14 + $0x180] sm:$0xff] }
 0x50b   :  { %7052 = vst [vmem:[#allocation73_spill] sm:$0xff] %v6715_v43  ;;  %5110 = vmatprep.subr.mxu1 %v6715_v43 }
 0x50c   :  { %5111 = vmatpush3.msra.mxu1 %v6718_v54 }
 0x50d   :  { %5150 = vmatprep.subr.mxu1 %v6624_v16 }
 0x515   :  { %v3140_v36 = vpop.f32.mrf.mxu1 }
 0x517   :  { %v3142_v8 = vpop.f32.mrf.mxu1 }
 0x51d   :  { %v3282_v55 = vpop.f32.mrf.mxu1 }
 0x51f   :  { %v3284_v49 = vpop.f32.mrf.mxu1 }
 0x520   :  { %v3069_v28 = vpop.f32.mrf.mxu0 }
 0x521   :  { %v3141_v30 = vadd.f32 %v3140_v36, %v3069_v28 }
 0x522   :  { %v3071_v17 = vpop.f32.mrf.mxu0 }
 0x523   :  { %v3143_v27 = vadd.f32 %v3142_v8, %v3071_v17 }
 0x561   :  { %v3211_v5 = vpop.f32.mrf.mxu0 }
 0x562   :  { %v3212_v10 = vadd.f32 %v3211_v5, %v3141_v30 }
 0x563   :  { %v3213_v31 = vpop.f32.mrf.mxu0 }
 0x564   :  { %v3214_v56 = vadd.f32 %v3213_v31, %v3143_v27  ;;  %v6724_v43 = vadd.f32 %v3282_v55, %v3212_v10 }
 0x566   :  { %v6722_v23 = vadd.f32 %v3284_v49, %v3214_v56 }
 0x568   :  { %3699 = vmatprep.mubr.f32.mxu0 %v6722_v23  ;;  %v3784_v16 = vmul.f32 %v6722_v23, %v6722_v23 }
 0x569   :  { %3700 = vmatmul.mubr.f32.vlgmr.msra.gmra.mxu0 %v6724_v43 }
 0x56a   :  { %5116 = vmatpush3.msra.mxu0 %v6527_v3  ;;  %3851 = vmatprep.mubr.f32.mxu0 %v3784_v16  ;;  %v3783_v3 = vmul.f32 %v6724_v43, %v6724_v43 }
 0x56b   :  { %5117 = vmatprep.subr.mxu0 %v6529_v15  ;;  %v3353_v15 = vpop.f32.mrf.mxu1 }
 0x56c   :  { %5118 = vmatpush3.msra.mxu0 %v6535_v51 }
 0x56d   :  { %5119 = vmatprep.subr.mxu0 %v6538_v33  ;;  %v3355_v33 = vpop.f32.mrf.mxu1 }
 0x56e   :  { %5120 = vmatpush3.msra.mxu0 %v6541_v37 }
 0x56f   :  { %5121 = vmatprep.subr.mxu0 %v6544_v38 }
 0x570   :  { %5122 = vmatpush3.msra.mxu0 %v6547_v24 }
 0x571   :  { %5123 = vmatprep.subr.mxu0 %v6550_v26 }
 0x572   :  { %5124 = vmatpush3.msra.mxu0 %v6553_v48 }
 0x573   :  { %5125 = vmatprep.subr.mxu0 %v6556_v1 }
 0x574   :  { %5126 = vmatpush3.msra.mxu0 %v6559_v40 }
 0x575   :  { %5127 = vmatprep.subr.mxu0 %v6562_v41 }
 0x576   :  { %5128 = vmatpush3.msra.mxu0 %v6565_v22 }
 0x577   :  { %5129 = vmatprep.subr.mxu0 %v6568_v44 }
 0x578   :  { %5130 = vmatpush3.msra.mxu0 %v6571_v13 }
 0x579   :  { %5131 = vmatprep.subr.mxu0 %v6574_v46 }
 0x57a   :  { %5132 = vmatpush3.msra.mxu0 %v6577_v9  ;;  %v7053_v9 = vld [vmem:[#allocation39_spill] sm:$0xff] }
 0x57b   :  { %5133 = vmatprep.subr.mxu0 %v6580_v50  ;;  %v7054_v50 = vld [vmem:[#allocation67_spill] sm:$0xff] }
 0x57c   :  { %5134 = vmatpush3.msra.mxu0 %v6583_v52  ;;  %v7055_v52 = vld [vmem:[#allocation40_spill] sm:$0xff] }
 0x57d   :  { %5135 = vmatprep.subr.mxu0 %v6586_v53  ;;  %v7056_v53 = vld [vmem:[#allocation68_spill] sm:$0xff] }
 0x57e   :  { %5136 = vmatpush3.msra.mxu0 %v6589_v57  ;;  %v7057_v57 = vld [vmem:[#allocation41_spill] sm:$0xff] }
 0x57f   :  { %5137 = vmatprep.subr.mxu0 %v6592_v58  ;;  %v7058_v58 = vld [vmem:[#allocation69_spill] sm:$0xff] }
 0x580   :  { %5138 = vmatpush3.msra.mxu0 %v6595_v59  ;;  %v7059_v59 = vld [vmem:[#allocation42_spill] sm:$0xff] }
 0x581   :  { %5139 = vmatprep.subr.mxu0 %v6598_v60  ;;  %v7060_v60 = vld [vmem:[#allocation70_spill] sm:$0xff] }
 0x582   :  { %5140 = vmatpush3.msra.mxu0 %v6601_v61  ;;  %v7061_v61 = vld [vmem:[#allocation43_spill] sm:$0xff] }
 0x583   :  { %5141 = vmatprep.subr.mxu0 %v6604_v62  ;;  %v7062_v62 = vld [vmem:[#allocation71_spill] sm:$0xff] }
 0x584   :  { %5142 = vmatpush3.msra.mxu0 %v6607_v63  ;;  %v7063_v63 = vld [vmem:[#allocation44_spill] sm:$0xff] }
 0x585   :  { %5143 = vmatprep.subr.mxu0 %v6610_v25  ;;  %v7064_v25 = vld [vmem:[#allocation72_spill] sm:$0xff] }
 0x586   :  { %5144 = vmatpush3.msra.mxu0 %v6613_v0  ;;  %v7065_v0 = vld [vmem:[#allocation45_spill] sm:$0xff] }
 0x587   :  { %5145 = vmatprep.subr.mxu0 %v6616_v4 }
 0x588   :  { %5146 = vmatpush3.msra.mxu0 %v6619_v6  ;;  %v7066_v6 = vld [vmem:[#allocation73_spill] sm:$0xff] }
 0x589   :  { %3852 = vmatmul.mubr.f32.vlgmr.msra.gmra.mxu0 %v3783_v3 }
 0x58a   :  { %4015 = vmatprep.mubr.f32.mxu0 %v6969_v39 }
 0x5a0   :  { %v3495_v38 = vpop.f32.mrf.mxu1 }
 0x5a2   :  { %v3424_v51 = vpop.f32.mrf.mxu0  ;;  %v3497_v48 = vpop.f32.mrf.mxu1 }
 0x5a3   :  { %v3425_v26 = vadd.f32 %v3424_v51, %v3353_v15 }
 0x5a4   :  { %v3426_v37 = vpop.f32.mrf.mxu0 }
 0x5a5   :  { %v3427_v24 = vadd.f32 %v3426_v37, %v3355_v33  ;;  %v3496_v41 = vadd.f32 %v3495_v38, %v3425_v26  ;;  %v3937_v26 = vld [vmem:[#allocation17] sm:$0x1] }
 0x5a7   :  { %v3498_v40 = vadd.f32 %v3497_v48, %v3427_v24 }
 0x5aa   :  { %v3566_v1 = vpop.f32.mrf.mxu0 }
 0x5ab   :  { %v6766_v13 = vadd.f32 %v3566_v1, %v3496_v41 }
 0x5ac   :  { %v3568_v22 = vpop.f32.mrf.mxu0 }
 0x5ad   :  { %v6764_v44 = vadd.f32 %v3568_v22, %v3498_v40  ;;  %v3785_v4 = vmul.f32 %v6766_v13, %v6766_v13  ;;  %v3941_v40 = vld [vmem:[#allocation19] sm:$0x1] }
 0x5ae   :  { %v4313_v22 = vld [vmem:[#allocation20 + $0xf8] sm:$0xff] }
 0x5af   :  { %3769 = vmatprep.mubr.f32.mxu1 %v6764_v44  ;;  %v3786_v46 = vmul.f32 %v6764_v44, %v6764_v44 }
 0x5b0   :  { %3770 = vmatmul.mubr.f32.vlgmr.msra.gmra.mxu1 %v6766_v13 }
 0x5b1   :  { %5151 = vmatpush3.msra.mxu1 %v6626_v19  ;;  %3921 = vmatprep.mubr.f32.mxu1 %v3786_v46  ;;  %v3945_v19 = vld [vmem:[#allocation16 + $0x8] sm:$0xff] }
 0x5b2   :  { %5152 = vmatprep.subr.mxu1 %v6628_v34  ;;  %v3944_v34 = vld [vmem:[#allocation16] sm:$0xff]  ;;  %3981 = vmatprep.subr.mxu0 %v3945_v19 }
 0x5b3   :  { %5153 = vmatpush3.msra.mxu1 %v6632_v45  ;;  %v3947_v45 = vld [vmem:[#allocation16 + $0x18] sm:$0xff]  ;;  %3982 = vmatpush1.msra.mxu0 %v3944_v34 }
 0x5b4   :  { %5154 = vmatprep.subr.mxu1 %v6635_v7  ;;  %v3946_v7 = vld [vmem:[#allocation16 + $0x10] sm:$0xff]  ;;  %4126 = vmatprep.subr.mxu0 %v3945_v19  ;;  %v4309_v19 = vld [vmem:[#allocation20 + $0xd8] sm:$0xff] }
 0x5b5   :  { %5155 = vmatpush3.msra.mxu1 %v6638_v29 }
 0x5b6   :  { %5156 = vmatprep.subr.mxu1 %v6641_v32 }
 0x5b7   :  { %5157 = vmatpush3.msra.mxu1 %v6644_v2 }
 0x5b8   :  { %5158 = vmatprep.subr.mxu1 %v6647_v42 }
 0x5b9   :  { %5159 = vmatpush3.msra.mxu1 %v6650_v11 }
 0x5ba   :  { %5160 = vmatprep.subr.mxu1 %v6653_v12 }
 0x5bb   :  { %5161 = vmatpush3.msra.mxu1 %v6656_v14 }
 0x5bc   :  { %5162 = vmatprep.subr.mxu1 %v6659_v18 }
 0x5bd   :  { %5163 = vmatpush3.msra.mxu1 %v6662_v20 }
 0x5be   :  { %5164 = vmatprep.subr.mxu1 %v6665_v35 }
 0x5bf   :  { %5165 = vmatpush3.msra.mxu1 %v6668_v47 }
 0x5c0   :  { %5166 = vmatprep.subr.mxu1 %v6671_v21 }
 0x5c1   :  { %5167 = vmatpush3.msra.mxu1 %v7053_v9  ;;  %v4347_v9 = vld [vmem:[#allocation22] sm:$0xf] }
 0x5c2   :  { %5168 = vmatprep.subr.mxu1 %v7054_v50  ;;  %v4345_v50 = vld [vmem:[#allocation20 + $0x1f8] sm:$0xff] }
 0x5c3   :  { %5169 = vmatpush3.msra.mxu1 %v7055_v52  ;;  %v4297_v52 = vld [vmem:[#allocation20 + $0x78] sm:$0xff] }
 0x5c4   :  { %5170 = vmatprep.subr.mxu1 %v7056_v53  ;;  %v4312_v53 = vld [vmem:[#allocation20 + $0xf0] sm:$0xff] }
 0x5c5   :  { %5171 = vmatpush3.msra.mxu1 %v7057_v57  ;;  %v4346_v57 = vld [vmem:[#allocation3] sm:$0x3] }
 0x5c6   :  { %5172 = vmatprep.subr.mxu1 %v7058_v58  ;;  %v4296_v58 = vld [vmem:[#allocation20 + $0x70] sm:$0xff] }
 0x5c7   :  { %5173 = vmatpush3.msra.mxu1 %v7059_v59  ;;  %v4329_v59 = vld [vmem:[#allocation20 + $0x178] sm:$0xff] }
 0x5c8   :  { %5174 = vmatprep.subr.mxu1 %v7060_v60  ;;  %v4311_v60 = vld [vmem:[#allocation20 + $0xe8] sm:$0xff] }
 0x5c9   :  { %5175 = vmatpush3.msra.mxu1 %v7061_v61  ;;  %v4344_v61 = vld [vmem:[#allocation20 + $0x1f0] sm:$0xff] }
 0x5ca   :  { %5176 = vmatprep.subr.mxu1 %v7062_v62  ;;  %v4295_v62 = vld [vmem:[#allocation20 + $0x68] sm:$0xff] }
 0x5cb   :  { %5177 = vmatpush3.msra.mxu1 %v7063_v63  ;;  %v4328_v63 = vld [vmem:[#allocation20 + $0x170] sm:$0xff] }
 0x5cc   :  { %5178 = vmatprep.subr.mxu1 %v7064_v25  ;;  %v4310_v25 = vld [vmem:[#allocation20 + $0xe0] sm:$0xff] }
 0x5cd   :  { %5179 = vmatpush3.msra.mxu1 %v7065_v0  ;;  %v4343_v0 = vld [vmem:[#allocation20 + $0x1e8] sm:$0xff] }
 0x5ce   :  { %5180 = vmatprep.subr.mxu1 %v7066_v6  ;;  %v4327_v6 = vld [vmem:[#allocation20 + $0x168] sm:$0xff] }
 0x5cf   :  { %5181 = vmatpush3.msra.mxu1 %v6718_v54 }
 0x5d0   :  { %3922 = vmatmul.mubr.f32.vlgmr.msra.gmra.mxu1 %v3785_v4  ;;  %4052 = vmatprep.subr.mxu1 %v3947_v45  ;;  %v4294_v4 = vld [vmem:[#allocation20 + $0x60] sm:$0xff] }
 0x5d1   :  { %4086 = vmatprep.mubr.f32.mxu1 %v6969_v39  ;;  %4053 = vmatpush1.msra.mxu1 %v3946_v7 }
 0x5d2   :  { %4197 = vmatprep.subr.mxu1 %v3947_v45  ;;  %v4293_v45 = vld [vmem:[#allocation20 + $0x58] sm:$0xff] }
 0x629   :  { %v5077_v32 = vpop.f32.mrf.mxu0 }
 0x62b   :  { %v5078_v42 = vpop.f32.mrf.mxu0 }
 0x62c   :  { %v5079_v12 = vadd.f32 %v5078_v42, %v5077_v32  ;;  %v4341_v32 = vld [vmem:[#allocation20 + $0x1d8] sm:$0xff] }
 0x62d   :  { %v4325_v42 = vld [vmem:[#allocation20 + $0x158] sm:$0xff] }
 0x649   :  { %v5147_v20 = vpop.f32.mrf.mxu0 }
 0x64b   :  { %v5148_v47 = vpop.f32.mrf.mxu0 }
 0x64c   :  { %v5149_v10 = vadd.f32 %v5148_v47, %v5147_v20  ;;  %v4339_v20 = vld [vmem:[#allocation20 + $0x1c8] sm:$0xff] }
 0x64d   :  { %v4323_v47 = vld [vmem:[#allocation20 + $0x148] sm:$0xff] }
 0x670   :  { %v5112_v29 = vpop.f32.mrf.mxu1 }
 0x672   :  { %v5113_v2 = vpop.f32.mrf.mxu1 }
 0x673   :  { %v5114_v11 = vadd.f32 %v5113_v2, %v5112_v29  ;;  %v4308_v29 = vld [vmem:[#allocation20 + $0xd0] sm:$0xff] }
 0x674   :  { %v4292_v2 = vld [vmem:[#allocation20 + $0x50] sm:$0xff] }
 0x675   :  { %v3772_v54 = vadd.f32 %v5114_v11, %v5079_v12  ;;  %v4307_v11 = vld [vmem:[#allocation20 + $0xc8] sm:$0xff]  ;;  %v4340_v12 = vld [vmem:[#allocation20 + $0x1d0] sm:$0xff] }
 0x677   :  { %v3775_v14 = vsel %vm1627_vm3, %v3772_v54, 0.0  ;;  %v4291_v54 = vld [vmem:[#allocation20 + $0x48] sm:$0xff] }
 0x678   :  { %v3776_v18 = vrot.slane %v3775_v14, 4 }
 0x67a   :  { %v3777_v35 = vadd.f32 %v3776_v18, %v3775_v14  ;;  %v4324_v14 = vld [vmem:[#allocation20 + $0x150] sm:$0xff]  ;;  %v4306_v18 = vld [vmem:[#allocation20 + $0xc0] sm:$0xff] }
 0x67c   :  { %v3778_v21 = vrot.slane %v3777_v35, 2 }
 0x67e   :  { %v3779_v5 = vadd.f32 %v3778_v21, %v3777_v35  ;;  %v4290_v35 = vld [vmem:[#allocation20 + $0x40] sm:$0xff]  ;;  %v4305_v21 = vld [vmem:[#allocation20 + $0xb8] sm:$0xff] }
 0x680   :  { %v3780_v8 = vrot.slane %v3779_v5, 1 }
 0x682   :  { %v3781_v30 = vadd.f32 %v3780_v8, %v3779_v5  ;;  %v4321_v5 = vld [vmem:[#allocation20 + $0x138] sm:$0xff]  ;;  %v4288_v8 = vld [vmem:[#allocation20 + $0x30] sm:$0xff] }
 0x684   :  { %v3782_v3 = vmul.f32 0.5, %v3781_v30  ;;  %v4335_v30 = vld [vmem:[#allocation20 + $0x1a8] sm:$0xff] }
 0x686   :  { %v3935_v33 = vmul.f32 %v3782_v3, %v3782_v3 }
 0x690   :  { %v5182_v49 = vpop.f32.mrf.mxu1 }
 0x692   :  { %v5183_v56 = vpop.f32.mrf.mxu1 }
 0x693   :  { %v5184_v27 = vadd.f32 %v5183_v56, %v5182_v49  ;;  %v4338_v49 = vld [vmem:[#allocation20 + $0x1c0] sm:$0xff]  ;;  %v4289_v56 = vld [vmem:[#allocation20 + $0x38] sm:$0xff] }
 0x695   :  { %v3924_v55 = vadd.f32 %v5184_v27, %v5149_v10  ;;  %v4322_v10 = vld [vmem:[#allocation20 + $0x140] sm:$0xff]  ;;  %v4337_v27 = vld [vmem:[#allocation20 + $0x1b8] sm:$0xff] }
 0x697   :  { %v3927_v17 = vsel %vm1627_vm3, %v3924_v55, 0.0  ;;  %v4304_v55 = vld [vmem:[#allocation20 + $0xb0] sm:$0xff] }
 0x698   :  { %v3928_v36 = vrot.slane %v3927_v17, 4 }
 0x69a   :  { %v3929_v28 = vadd.f32 %v3928_v36, %v3927_v17  ;;  %v4336_v17 = vld [vmem:[#allocation20 + $0x1b0] sm:$0xff] }
 0x69b   :  { %v4320_v36 = vld [vmem:[#allocation20 + $0x130] sm:$0xff] }
 0x69c   :  { %v3930_v31 = vrot.slane %v3929_v28, 2 }
 0x69e   :  { %v3931_v16 = vadd.f32 %v3930_v31, %v3929_v28  ;;  %v4303_v28 = vld [vmem:[#allocation20 + $0xa8] sm:$0xff] }
 0x69f   :  { %v4287_v31 = vld [vmem:[#allocation20 + $0x28] sm:$0xff] }
 0x6a0   :  { %v3932_v15 = vrot.slane %v3931_v16, 1 }
 0x6a2   :  { %v3933_v51 = vadd.f32 %v3932_v15, %v3931_v16  ;;  %v4319_v16 = vld [vmem:[#allocation20 + $0x128] sm:$0xff]  ;;  %v4334_v15 = vld [vmem:[#allocation20 + $0x1a0] sm:$0xff] }
 0x6a4   :  { %v3934_v37 = vmul.f32 0.5, %v3933_v51  ;;  %v4286_v51 = vld [vmem:[#allocation20 + $0x20] sm:$0xff] }
 0x6a6   :  { %v3936_v38 = vsub.f32 %v3934_v37, %v3935_v33  ;;  %v4318_v33 = vld [vmem:[#allocation20 + $0x120] sm:$0xff]  ;;  %v4301_v37 = vld [vmem:[#allocation20 + $0x98] sm:$0xff] }
 0x6a8   :  { %v3938_v24 = vadd.f32 1e-05, %v3936_v38  ;;  %v4333_v38 = vld [vmem:[#allocation20 + $0x198] sm:$0xff] }
 0x6aa   :  { %5355 = vrsqrt.f32 %v3938_v24  ;;  %v4285_v24 = vld [vmem:[#allocation20 + $0x18] sm:$0xff] }
 0x6b7   :  { %v5356_v48 = vpop.eup %5355 }
 0x6b8   :  { %v3940_v1 = vmul.f32 %v5356_v48, %v3937_v26  ;;  %v4317_v26 = vld [vmem:[#allocation20 + $0x118] sm:$0xff]  ;;  %v4300_v48 = vld [vmem:[#allocation20 + $0x90] sm:$0xff] }
 0x6ba   :  { %4775 = vmatmul.mubr.msk.f32.vlgmr.msra.gmra.mxu0 %vm1950_vm4, %v3940_v1  ;;  %4776 = vmatmul.mubr.msk.f32.vlgmr.msra.gmra.mxu1 %vm1950_vm4, %v3940_v1  ;;  %v3942_v41 = vmul.f32 %v3940_v1, %v3782_v3  ;;  %v4302_v3 = vld [vmem:[#allocation20 + $0xa0] sm:$0xff]  ;;  %v4332_v1 = vld [vmem:[#allocation20 + $0x190] sm:$0xff] }
 0x6bb   :  { %4127 = vmatpush1.msra.mxu0 %v3944_v34  ;;  %4198 = vmatpush1.msra.mxu1 %v3946_v7  ;;  %v4342_v34 = vld [vmem:[#allocation20 + $0x1e0] sm:$0xff] }
 0x6bc   :  { %4160 = vmatprep.mubr.f32.mxu0 %v6969_v39  ;;  %4231 = vmatprep.mubr.f32.mxu1 %v6969_v39  ;;  %v3943_v46 = vsub.f32 %v3941_v40, %v3942_v41  ;;  %v4326_v7 = vld [vmem:[#allocation20 + $0x160] sm:$0xff]  ;;  %v4284_v40 = vld [vmem:[#allocation20 + $0x10] sm:$0xff] }
 0x6bd   :  { %5299 = vmatprep.subr.mxu0 %v6969_v39  ;;  %5187 = vmatprep.subr.mxu1 %v4313_v22  ;;  %v4316_v41 = vld [vmem:[#allocation20 + $0x110] sm:$0xff]  ;;  %v4299_v22 = vld [vmem:[#allocation20 + $0x88] sm:$0xff] }
 0x6be   :  { %4777 = vmatmul.mubr.msk.f32.vlgmr.msra.gmra.mxu0 %vm1950_vm4, %v3943_v46  ;;  %4778 = vmatmul.mubr.msk.f32.vlgmr.msra.gmra.mxu1 %vm1950_vm4, %v3943_v46  ;;  %v4331_v46 = vld [vmem:[#allocation20 + $0x188] sm:$0xff] }
 0x6bf   :  { %5300 = vmatpush3.msk.msra.mxu0 %vm4352_vm5, %v4347_v9  ;;  %5301 = vmatprep.mubr.msk.f32.mxu0 %vm5740_vm1, %v6969_v39  ;;  %v4283_v9 = vld [vmem:[#allocation20 + $0x8] sm:$0xff] }
 0x6c0   :  { %5222 = vmatprep.subr.mxu0 %v4345_v50  ;;  %5188 = vmatpush3.msra.mxu1 %v4297_v52  ;;  %v4315_v50 = vld [vmem:[#allocation20 + $0x108] sm:$0xff]  ;;  %v4298_v52 = vld [vmem:[#allocation20 + $0x80] sm:$0xff] }
 0x6c1   :  { %5189 = vmatprep.subr.mxu1 %v4312_v53  ;;  %v4330_v53 = vld [vmem:[#allocation20 + $0x180] sm:$0xff] }
 0x6c2   :  { %5302 = vmatmul.mubr.msk.f32.vlgmr.msra.gmra.mxu0 %vm4348_vm6, %v4346_v57  ;;  %5190 = vmatpush3.msra.mxu1 %v4296_v58  ;;  %v4282_v57 = vld [vmem:[#allocation20] sm:$0xff] }
 0x6c3   :  { %5223 = vmatpush3.msra.mxu0 %v4329_v59  ;;  %5191 = vmatprep.subr.mxu1 %v4311_v60  ;;  %v4314_v58 = vld [vmem:[#allocation20 + $0x100] sm:$0xff] }
 0x6c4   :  { %5224 = vmatprep.subr.mxu0 %v4344_v61  ;;  %5192 = vmatpush3.msra.mxu1 %v4295_v62  ;;  %v7067_v61 = vld [vmem:[#allocation66_spill] sm:$0xff] }
 0x6c5   :  { %5225 = vmatpush3.msra.mxu0 %v4328_v63  ;;  %5193 = vmatprep.subr.mxu1 %v4310_v25 }
 0x6c6   :  { %5226 = vmatprep.subr.mxu0 %v4343_v0  ;;  %5194 = vmatpush3.msra.mxu1 %v4294_v4 }
 0x6c7   :  { %5227 = vmatpush3.msra.mxu0 %v4327_v6  ;;  %5195 = vmatprep.subr.mxu1 %v4309_v19 }
 0x6c8   :  { %5228 = vmatprep.subr.mxu0 %v4342_v34  ;;  %5196 = vmatpush3.msra.mxu1 %v4293_v45 }
 0x6c9   :  { %5229 = vmatpush3.msra.mxu0 %v4326_v7  ;;  %5197 = vmatprep.subr.mxu1 %v4308_v29 }
 0x6ca   :  { %5230 = vmatprep.subr.mxu0 %v4341_v32  ;;  %5198 = vmatpush3.msra.mxu1 %v4292_v2 }
 0x6cb   :  { %5231 = vmatpush3.msra.mxu0 %v4325_v42  ;;  %5199 = vmatprep.subr.mxu1 %v4307_v11 }
 0x6cc   :  { %5232 = vmatprep.subr.mxu0 %v4340_v12  ;;  %5200 = vmatpush3.msra.mxu1 %v4291_v54 }
 0x6cd   :  { %5233 = vmatpush3.msra.mxu0 %v4324_v14  ;;  %5201 = vmatprep.subr.mxu1 %v4306_v18 }
 0x6ce   :  { %5234 = vmatprep.subr.mxu0 %v4339_v20  ;;  %5202 = vmatpush3.msra.mxu1 %v4290_v35 }
 0x6cf   :  { %5235 = vmatpush3.msra.mxu0 %v4323_v47  ;;  %5203 = vmatprep.subr.mxu1 %v4305_v21 }
 0x6d0   :  { %5236 = vmatprep.subr.mxu0 %v4338_v49  ;;  %5204 = vmatpush3.msra.mxu1 %v4289_v56 }
 0x6d1   :  { %5237 = vmatpush3.msra.mxu0 %v4322_v10  ;;  %5205 = vmatprep.subr.mxu1 %v4304_v55  ;;  %v4663_v55 = vld [vmem:[#allocation28 + $0x18] sm:$0xff] }
 0x6d2   :  { %5238 = vmatprep.subr.mxu0 %v4337_v27  ;;  %5206 = vmatpush3.msra.mxu1 %v4288_v8  ;;  %v4576_v27 = vld [vmem:[#allocation25 + $0x8] sm:$0xff] }
 0x6d3   :  { %5239 = vmatpush3.msra.mxu0 %v4321_v5  ;;  %5207 = vmatprep.subr.mxu1 %v4303_v28  ;;  %v4575_v5 = vld [vmem:[#allocation25] sm:$0xff] }
 0x6d4   :  { %5240 = vmatprep.subr.mxu0 %v4336_v17  ;;  %5208 = vmatpush3.msra.mxu1 %v4287_v31 }
 0x6d5   :  { %5241 = vmatpush3.msra.mxu0 %v4320_v36  ;;  %5209 = vmatprep.subr.mxu1 %v4302_v3  ;;  %v4781_v3 = vld [vmem:[#allocation23] ss:$0 sm:$0xff] }
 0x6d6   :  { %5242 = vmatprep.subr.mxu0 %v4335_v30  ;;  %5210 = vmatpush3.msra.mxu1 %v4286_v51 }
 0x6d7   :  { %5243 = vmatpush3.msra.mxu0 %v4319_v16  ;;  %5211 = vmatprep.subr.mxu1 %v4301_v37  ;;  %v4662_v37 = vld [vmem:[#allocation28 + $0x10] sm:$0xff] }
 0x6d8   :  { %5244 = vmatprep.subr.mxu0 %v4334_v15  ;;  %5212 = vmatpush3.msra.mxu1 %v4285_v24  ;;  %v4660_v24 = vld [vmem:[#allocation28] sm:$0xff] }
 0x6d9   :  { %5245 = vmatpush3.msra.mxu0 %v4318_v33  ;;  %5213 = vmatprep.subr.mxu1 %v4300_v48 }
 0x6da   :  { %5246 = vmatprep.subr.mxu0 %v4333_v38  ;;  %5214 = vmatpush3.msra.mxu1 %v4284_v40  ;;  %v4661_v38 = vld [vmem:[#allocation28 + $0x8] sm:$0xff] }
 0x6db   :  { %5247 = vmatpush3.msra.mxu0 %v4317_v26  ;;  %5215 = vmatprep.subr.mxu1 %v4299_v22  ;;  %v4782_v26 = vld [vmem:[#allocation26] ss:$0 sm:$0xff]  ;;  %v4784_v22 = vld [vmem:[#allocation2] ss:$0 sm:$0xff] }
 0x6dc   :  { %5248 = vmatprep.subr.mxu0 %v4332_v1  ;;  %5216 = vmatpush3.msra.mxu1 %v4283_v9 }
 0x6dd   :  { %5249 = vmatpush3.msra.mxu0 %v4316_v41  ;;  %5217 = vmatprep.subr.mxu1 %v4298_v52 }
 0x6de   :  { %5250 = vmatprep.subr.mxu0 %v4331_v46  ;;  %5218 = vmatpush3.msra.mxu1 %v4282_v57 }
 0x6df   :  { %5251 = vmatpush3.msra.mxu0 %v4315_v50  ;;  %5304 = vmatprep.subr.mxu1 %v6969_v39 }
 0x6e0   :  { %5252 = vmatprep.subr.mxu0 %v4330_v53 }
 0x6e1   :  { %5253 = vmatpush3.msra.mxu0 %v4314_v58 }
 0x6e2   :  { %5315 = vmatprep.subr.mxu0 %v6969_v39 }
 0x77a   :  { %v4017_v59 = vpop.f32.mrf.mxu0  ;;  %v4088_v60 = vpop.f32.mrf.mxu1 }
 0x77b   :  { %v4241_v62 = vrot.slane %v4017_v59, %v7067_v61  ;;  %v4249_v63 = vrot.slane %v4088_v60, %v7067_v61 }
 0x77c   :  { %v4019_v25 = vpop.f32.mrf.mxu0  ;;  %v4090_v0 = vpop.f32.mrf.mxu1 }
 0x77d   :  { %v4245_v4 = vrot.slane %v4019_v25, %v7067_v61  ;;  %v4253_v6 = vrot.slane %v4090_v0, %v7067_v61  ;;  %v4254_v29 = vmul.f32 %v4241_v62, %v6724_v43  ;;  %v4256_v32 = vmul.f32 %v4249_v63, %v6766_v13 }
 0x77e   :  { %v4162_v19 = vpop.f32.mrf.mxu0  ;;  %v4233_v34 = vpop.f32.mrf.mxu1 }
 0x77f   :  { %v4261_v45 = vrot.slane %v4162_v19, %v7067_v61  ;;  %v4269_v7 = vrot.slane %v4233_v34, %v7067_v61  ;;  %v4255_v11 = vmul.f32 %v4245_v4, %v6722_v23  ;;  %v4257_v12 = vmul.f32 %v4253_v6, %v6764_v44  ;;  %v4578_v23 = vld [vmem:[#allocation25 + $0x18] sm:$0xff]  ;;  %v4577_v44 = vld [vmem:[#allocation25 + $0x10] sm:$0xff] }
 0x780   :  { %v4164_v2 = vpop.f32.mrf.mxu0  ;;  %v4235_v42 = vpop.f32.mrf.mxu1 }
 0x781   :  { %v4265_v54 = vrot.slane %v4164_v2, %v7067_v61  ;;  %v4273_v14 = vrot.slane %v4235_v42, %v7067_v61  ;;  %v4274_v18 = vadd.f32 %v4261_v45, %v4254_v29  ;;  %v4276_v20 = vadd.f32 %v4269_v7, %v4256_v32 }
 0x782   :  { %v4422_v35 = vpop.f32.mrf.mxu0 }
 0x783   :  { %v4275_v47 = vadd.f32 %v4265_v54, %v4255_v11  ;;  %v4277_v21 = vadd.f32 %v4273_v14, %v4257_v12  ;;  %v4278_v10 = vmax.f32 %v4274_v18, 0.0  ;;  %v4280_v13 = vmax.f32 %v4276_v20, 0.0 }
 0x784   :  { %v5303_v49 = vpop.f32.mrf.mxu0 }
 0x785   :  { %v4279_v56 = vmax.f32 %v4275_v47, 0.0  ;;  %v4281_v43 = vmax.f32 %v4277_v21, 0.0 }
 0x787   :  { %4490 = vmatprep.mubr.f32.mxu1 %v4279_v56  ;;  %4560 = vmatprep.mubr.f32.mxu0 %v4281_v43 }
 0x788   :  { %4491 = vmatmul.mubr.f32.vlgmr.msra.gmra.mxu1 %v4278_v10  ;;  %4561 = vmatmul.mubr.f32.vlgmr.msra.gmra.mxu0 %v4280_v13 }
 0x789   :  { %5312 = vmatprep.mubr.msk.f32.mxu1 %vm5740_vm1, %v6969_v39  ;;  %5323 = vmatprep.mubr.msk.f32.mxu0 %vm5740_vm1, %v6969_v39 }
 0x78a   :  { %5305 = vmatpush3.msra.mxu1 %v4578_v23  ;;  %5316 = vmatpush3.msra.mxu0 %v4663_v55 }
 0x78b   :  { %5306 = vmatprep.subr.mxu1 %v6969_v39  ;;  %5317 = vmatprep.subr.mxu0 %v6969_v39 }
 0x78c   :  { %5307 = vmatpush3.msra.mxu1 %v4577_v44  ;;  %5318 = vmatpush3.msra.mxu0 %v4662_v37 }
 0x78d   :  { %5308 = vmatprep.subr.mxu1 %v6969_v39  ;;  %5319 = vmatprep.subr.mxu0 %v6969_v39 }
 0x78e   :  { %5309 = vmatpush3.msra.mxu1 %v4576_v27  ;;  %5320 = vmatpush3.msra.mxu0 %v4661_v38 }
 0x78f   :  { %5310 = vmatprep.subr.mxu1 %v6969_v39  ;;  %5321 = vmatprep.subr.mxu0 %v6969_v39 }
 0x790   :  { %5311 = vmatpush3.msra.mxu1 %v4575_v5  ;;  %5322 = vmatpush3.msra.mxu0 %v4660_v24 }
 0x848   :  { %v5219_v17 = vpop.f32.mrf.mxu1  ;;  %v5254_v8 = vpop.f32.mrf.mxu0 }
 0x84a   :  { %v5220_v36 = vpop.f32.mrf.mxu1  ;;  %v5255_v28 = vpop.f32.mrf.mxu0 }
 0x84b   :  { %v5221_v30 = vadd.f32 %v5220_v36, %v5219_v17  ;;  %v5256_v16 = vadd.f32 %v5255_v28, %v5254_v8 }
 0x84d   :  { %v4493_v31 = vadd.f32 %v5221_v30, %v4422_v35 }
 0x84f   :  { %v4563_v15 = vadd.f32 %v5256_v16, %v4493_v31 }
 0x851   :  { %v4573_v51 = vadd.f32 %v4781_v3, %v4563_v15 }
 0x853   :  { %v4574_v33 = vmax.f32 %v4573_v51, 0.0 }
 0x855   :  { %5313 = vmatmul.mubr.msk.f32.vlgmr.msra.gmra.mxu1 %vm1343_vm2, %v4574_v33 }
 0x915   :  { %v4655_v48 = vpop.f32.mrf.mxu1 }
 0x916   :  { %v4656_v1 = vadd.f32 %v4782_v26, %v4655_v48 }
 0x917   :  { %v5314_v40 = vpop.f32.mrf.mxu1 }
 0x918   :  { %v4659_v41 = vmax.f32 %v4656_v1, 0.0 }
 0x91a   :  { %5324 = vmatmul.mubr.msk.f32.vlgmr.msra.gmra.mxu0 %vm1343_vm2, %v4659_v41 }
 0x9da   :  { %v4740_v46 = vpop.f32.mrf.mxu0 }
 0x9db   :  { %v4741_v9 = vadd.f32 %v4784_v22, %v4740_v46 }
 0x9dc   :  { %v5325_v50 = vpop.f32.mrf.mxu0 }
 0x9dd   :  { %4745 = vst.msk [vmem:[%s6865_s19] sm:$0x3] %vm4744_vm7, %v4741_v9 }
 0x9de   :  { %4750 = vsyncpa [#allocation4], 1 }
 0x9df   :  { %4751 = vsyncpa [#allocation6], 1 }
 0x9e0   :  { %4752 = vsyncpa [#allocation9], 1 }
 0x9e1   :  { %4753 = vsyncpa [#allocation12], 1 }
 0x9e2   :  { %4754 = vsyncpa [#allocation15], 1 }
 0x9e3   :  { %4755 = vsyncpa [#allocation18], 1 }
 0x9e4   :  { %4756 = vsyncpa [#allocation21], 1 }
 0x9e5   :  { %4757 = vsyncpa [#allocation24], 1 }
 0x9e6   :  { %4758 = vsyncpa [#allocation27], 1 }

</bundles_post_ra>
